<compile_context>
chip_gen: v7x
topology: tpu7x:2x2x1
jax: 0.10.0
libtpu: 0.0.40
codegen_flags: <defaults>
</compile_context>

<pallas_src>
import jax
import jax.numpy as jnp
import numpy as np
from jax.experimental import pallas as pl
from jax.experimental.pallas import tpu as pltpu


# ---------------------------------------------------------------------------
# The fused kernel: conv1+bn1+relu -> maxpool -> layer1 (3 BasicBlocks) -> LayerNorm
# ---------------------------------------------------------------------------
def _condition_fuser_kernel(patch_ref, w1_ref, selpool_ref, sel_l1_ref, sel_conv_ref,
                            wb0c1_ref, wds_ref, wtaps_ref, vec_ref, o_ref):
    """One grid step == one image; all activations stay in VMEM.

    Row slabs per image (channels on the 128-lane axis):
      patch_ref : (256, 256)  conv1 7x7/s2 im2col patches (K padded 147->256), bf16
      y         : (256, 128)  conv1+bn1+relu output (16x16 spatial, cout padded 64->128)
      pooled    : ( 64, 128)  3x3/s2 maxpool output (8x8 spatial)
      layer1    : ( 16, 128)  4x4 spatial
    Constant 0/1 row-selection matrices (exact through f32-accumulating matmuls):
      selpool_ref  (576, 256): the 9 maxpool taps; max-reduced over the 9 row groups
      sel_l1_ref   (144,  64): the 9 stride-2 taps of block0.conv1 (tap 4 == 1x1-downsample rows)
      sel_conv_ref (144, 128): the 9 stride-1 taps for every 3x3 conv (K zero-padded 16->128)
    Each conv is then a single K-concatenated (rows, 9*128) x (9*128, 128) MXU matmul.
    """
    f32, bf16 = jnp.float32, jnp.bfloat16
    r = o_ref.shape[0]                      # layer1 rows per image (16)
    rp = sel_l1_ref.shape[1]                # pooled rows per image (64)
    kc = sel_conv_ref.shape[1]              # padded contraction rows for the 3x3 tap select

    vec = vec_ref[...]                      # (16, 128) fp32 bias / LN-param slab

    def vrow(k):                            # (1, 128) broadcast row
        return vec[k:k + 1, :]

    def taps_to_patches(z_bf):              # (9*rows, 128) -> (rows, 9*128); aligned slices/concat
        rows = z_bf.shape[0] // 9
        return jnp.concatenate(
            [z_bf[t * rows:(t + 1) * rows, :] for t in range(9)], axis=-1)

    # ---- conv1 7x7/s2 + bn1 (folded) + relu: one matmul on the prebuilt patch slab ----
    y = jnp.dot(patch_ref[...], w1_ref[...], preferred_element_type=f32) + vrow(0)
    y = jnp.maximum(y, 0.0).astype(bf16)                                    # (256, 128)

    # ---- maxpool 3x3/s2/p1: row-selection matmul, then max over the 9 tap groups ----
    # (invalid taps select the zero row; y >= 0 post-ReLU, so zero-fill is exact)
    p9 = jnp.dot(selpool_ref[...], y, preferred_element_type=f32)           # (9*rp, 128)
    pooled = p9[0:rp, :]
    for t in range(1, 9):
        pooled = jnp.maximum(pooled, p9[t * rp:(t + 1) * rp, :])
    pooled = pooled.astype(bf16)                                            # (64, 128)

    # ---- BasicBlock 0 (stride 2, 1x1-conv downsample) ----
    z0 = jnp.dot(sel_l1_ref[...], pooled, preferred_element_type=f32).astype(bf16)  # (144,128)
    p0 = taps_to_patches(z0)                                                # (16, 1152)
    d0 = z0[4 * r:5 * r, :]        # centre tap == the stride-2 rows fed to the 1x1 downsample

    h0 = jnp.maximum(
        jnp.dot(p0, wb0c1_ref[...], preferred_element_type=f32) + vrow(1), 0.0)
    identity = jnp.dot(d0, wds_ref[...], preferred_element_type=f32) + vrow(2)

    sel_conv = sel_conv_ref[...]                                            # (144, 128)
    zpad = jnp.zeros((kc - r, 128), bf16)                                   # K padding rows

    def conv3x3(x_f32, widx):
        """3x3/s1/p1 conv on the (r,128) slab: tap-select matmul + ONE K=1152 weight matmul."""
        xp = jnp.concatenate([x_f32.astype(bf16), zpad], axis=0)            # (kc, 128)
        zc = jnp.dot(sel_conv, xp, preferred_element_type=f32).astype(bf16)  # (144, 128)
        return jnp.dot(taps_to_patches(zc), wtaps_ref[widx],
                       preferred_element_type=f32)

    x = jnp.maximum(conv3x3(h0, 0) + vrow(3) + identity, 0.0)

    # ---- BasicBlocks 1, 2 (identity shortcut) ----
    vb = 4
    for widx in (1, 3):
        idn = x
        hh = jnp.maximum(conv3x3(x, widx) + vrow(vb), 0.0)
        x = jnp.maximum(conv3x3(hh, widx + 1) + vrow(vb + 1) + idn, 0.0)
        vb += 2

    # ---- LayerNorm(128) over the channel (lane) axis ----
    mean = jnp.mean(x, axis=-1, keepdims=True)
    xc = x - mean
    var = jnp.mean(xc * xc, axis=-1, keepdims=True)
    o_ref[...] = (xc * jax.lax.rsqrt(var + 1e-5) * vrow(8) + vrow(9)).astype(o_ref.dtype)


# ---------------------------------------------------------------------------
# Pallas wrapper (one pallas_call for the whole network)
# ---------------------------------------------------------------------------
def _const_spec(shape):
    nd = len(shape)
    return pl.BlockSpec(tuple(shape), lambda i, _nd=nd: (0,) * _nd)


@jax.jit
def condition_fuser_forward(x_nchw, pk):
    """ConditionFuser.forward: NCHW input -> (N, tokens, 128)."""
    x = jnp.transpose(x_nchw, (0, 2, 3, 1))                     # NHWC

    # conv1 (7x7, stride 2, pad 3) patches: tiny plain-JAX im2col glue feeding the kernel.
    patches, (n, h1, w1) = _im2col(x, 7, 2, 3)                  # (N*256, 147)
    kpad = pk["conv1_w"].shape[0]
    patches = jnp.pad(patches, ((0, 0), (0, kpad - patches.shape[1]))).astype(jnp.bfloat16)

    r1 = h1 * w1                           # conv1 rows per image (256)
    rl = pk["sel_conv"].shape[0] // 9      # layer1 rows (= output tokens) per image (16)

    out = pl.pallas_call(
        _condition_fuser_kernel,
        out_shape=jax.ShapeDtypeStruct((n * rl, 128), jnp.float32),
        grid_spec=pltpu.PrefetchScalarGridSpec(
            num_scalar_prefetch=0,
            grid=(n,),                                          # one image per grid step
            in_specs=[
                pl.BlockSpec((r1, kpad), lambda i: (i, 0)),     # per-image conv1 patches
                _const_spec(pk["conv1_w"].shape),               # (256, 128)
                _const_spec(pk["selpool"].shape),               # (576, 256)
                _const_spec(pk["sel_l1"].shape),                # (144, 64)
                _const_spec(pk["sel_conv"].shape),              # (144, 128)
                _const_spec(pk["b0c1_w"].shape),                # (1152, 128)
                _const_spec(pk["ds_w"].shape),                  # (128, 128)
                _const_spec(pk["taps_w"].shape),                # (5, 1152, 128)
                _const_spec(pk["vec"].shape),                   # (16, 128)
            ],
            out_specs=pl.BlockSpec((rl, 128), lambda i: (i, 0))),
        compiler_params=pltpu.CompilerParams(dimension_semantics=("parallel",)),
    )(patches, pk["conv1_w"], pk["selpool"], pk["sel_l1"], pk["sel_conv"],
      pk["b0c1_w"], pk["ds_w"], pk["taps_w"], pk["vec"])

    # x.flatten(2).permute(0, 2, 1) in NCHW == plain reshape in NHWC -> (N, H*W, C).
    return out.reshape(n, rl, 128)


# ---------------------------------------------------------------------------
# Plain-JAX glue and constant builders
# ---------------------------------------------------------------------------
def _im2col(x, k, stride, pad):
    """NHWC -> (N*Ho*Wo, k*k*C) patch matrix via slicing (plain-JAX glue, conv1 only)."""
    n, hgt, wid, c = x.shape
    xp = jnp.pad(x, ((0, 0), (pad, pad), (pad, pad), (0, 0)))
    ho = (hgt + 2 * pad - k) // stride + 1
    wo = (wid + 2 * pad - k) // stride + 1
    cols = [xp[:, ky:ky + stride * (ho - 1) + 1:stride,
               kx:kx + stride * (wo - 1) + 1:stride, :]
            for ky in range(k) for kx in range(k)]
    patches = jnp.concatenate(cols, axis=-1)
    return patches.reshape(n * ho * wo, k * k * c), (n, ho, wo)


def _build_select(h_in, w_in, h_out, w_out, stride):
    """0/1 row-selection matrix for a 3x3 / pad-1 window walk over a row-major (h_in,w_in)
    image.  Row t*h_out*w_out + (oy*w_out+ox) picks input row (stride*oy-1+t//3,
    stride*ox-1+t%3); rows whose tap falls outside the image are all-zero."""
    s = np.zeros((9 * h_out * w_out, h_in * w_in), np.float32)
    for t in range(9):
        dy, dx = t // 3 - 1, t % 3 - 1
        for oy in range(h_out):
            for ox in range(w_out):
                iy, ix = stride * oy + dy, stride * ox + dx
                if 0 <= iy < h_in and 0 <= ix < w_in:
                    s[t * h_out * w_out + oy * w_out + ox, iy * w_in + ix] = 1.0
    return jnp.asarray(s, jnp.bfloat16)


# ---------------------------------------------------------------------------
# Parameter initialization (deterministic, synthetic) and packing
# ---------------------------------------------------------------------------
def init_params(key):
    keys = iter(jax.random.split(key, 64))

    def conv_w(k, cin, cout):
        # HWIO layout; conv semantics equivalent to the PyTorch OIHW weight.
        return 0.05 * jax.random.normal(next(keys), (k, k, cin, cout), jnp.float32)

    def bn(c):
        gamma = 1.0 + 0.1 * jax.random.normal(next(keys), (c,), jnp.float32)
        beta = 0.1 * jax.random.normal(next(keys), (c,), jnp.float32)
        mean = 0.1 * jax.random.normal(next(keys), (c,), jnp.float32)
        var = 1.0 + 0.5 * jax.random.uniform(next(keys), (c,), jnp.float32)
        scale = gamma / jnp.sqrt(var + 1e-5)          # inference-mode BN, folded
        bias = beta - mean * scale
        return scale, bias

    p = {"conv1_w": conv_w(7, 3, 64)}
    p["bn1_scale"], p["bn1_bias"] = bn(64)

    blocks = []
    b = {"conv1_w": conv_w(3, 64, 128)}               # BasicBlock 0: 64->128, stride 2
    b["bn1_scale"], b["bn1_bias"] = bn(128)
    b["conv2_w"] = conv_w(3, 128, 128)
    b["bn2_scale"], b["bn2_bias"] = bn(128)
    b["ds_w"] = conv_w(1, 64, 128)
    b["ds_scale"], b["ds_bias"] = bn(128)
    blocks.append(b)
    for _ in range(2):                                # BasicBlocks 1, 2: identity shortcut
        b = {"conv1_w": conv_w(3, 128, 128)}
        b["bn1_scale"], b["bn1_bias"] = bn(128)
        b["conv2_w"] = conv_w(3, 128, 128)
        b["bn2_scale"], b["bn2_bias"] = bn(128)
        blocks.append(b)
    p["layer1"] = blocks

    p["ln_gamma"] = 1.0 + 0.1 * jax.random.normal(next(keys), (128,), jnp.float32)
    p["ln_beta"] = 0.1 * jax.random.normal(next(keys), (128,), jnp.float32)
    return p


def pack_params(p, *, h_img=32, w_img=32):
    """Fold BN into the conv weights (bf16), build the constant 0/1 selection matrices, and
    pack the per-channel fp32 vectors (biases + LN gamma/beta) into one (16, 128) slab."""
    bf16, f32 = jnp.bfloat16, jnp.float32
    h1, w1 = (h_img - 1) // 2 + 1, (w_img - 1) // 2 + 1   # after conv1 (7x7/s2/p3)
    hp, wp = (h1 - 1) // 2 + 1, (w1 - 1) // 2 + 1         # after maxpool (3x3/s2/p1)
    hl, wl = (hp - 1) // 2 + 1, (wp - 1) // 2 + 1         # after layer1 block0 (s=2)
    pk = {}

    # conv1: fold bn1; zero-pad K 147 -> 256 and cout 64 -> 128 for lane-dense tiles.
    k_raw, k_pad = 7 * 7 * 3, 256
    w = p["conv1_w"].reshape(k_raw, 64) * p["bn1_scale"][None, :]
    pk["conv1_w"] = jnp.pad(w, ((0, k_pad - k_raw), (0, 64))).astype(bf16)

    b0 = p["layer1"][0]
    # block0 conv1 (3x3/s2): pad cin 64 -> 128 to match the channel-padded conv1 output.
    w = jnp.pad(b0["conv1_w"], ((0, 0), (0, 0), (0, 64), (0, 0))) * b0["bn1_scale"]
    pk["b0c1_w"] = w.reshape(9 * 128, 128).astype(bf16)
    w = jnp.pad(b0["ds_w"], ((0, 0), (0, 0), (0, 64), (0, 0))) * b0["ds_scale"]
    pk["ds_w"] = w.reshape(128, 128).astype(bf16)

    # The 5 stride-1 3x3 convs as K-concatenated (1152, 128) slabs (BN folded), in order
    # [b0.conv2, b1.conv1, b1.conv2, b2.conv1, b2.conv2].
    slabs = [(b0["conv2_w"] * b0["bn2_scale"]).reshape(9 * 128, 128)]
    for b in p["layer1"][1:]:
        slabs.append((b["conv1_w"] * b["bn1_scale"]).reshape(9 * 128, 128))
        slabs.append((b["conv2_w"] * b["bn2_scale"]).reshape(9 * 128, 128))
    pk["taps_w"] = jnp.stack(slabs, axis=0).astype(bf16)          # (5, 1152, 128)

    # Constant 0/1 row-selection matrices (bf16 is exact for 0/1).
    pk["selpool"] = _build_select(h1, w1, hp, wp, 2)              # maxpool taps
    pk["sel_l1"] = _build_select(hp, wp, hl, wl, 2)               # block0 stride-2 conv taps
    sel_conv = _build_select(hl, wl, hl, wl, 1)                   # 3x3/s1 conv taps
    pk["sel_conv"] = jnp.pad(sel_conv, ((0, 0), (0, 128 - hl * wl)))  # pad K 16 -> 128

    rows = jnp.stack([
        jnp.pad(p["bn1_bias"], (0, 64)),
        b0["bn1_bias"], b0["ds_bias"], b0["bn2_bias"],
        p["layer1"][1]["bn1_bias"], p["layer1"][1]["bn2_bias"],
        p["layer1"][2]["bn1_bias"], p["layer1"][2]["bn2_bias"],
        p["ln_gamma"], p["ln_beta"],
    ], axis=0).astype(f32)
    pk["vec"] = jnp.zeros((16, 128), f32).at[:rows.shape[0]].set(rows)
    return pk


# ---------------------------------------------------------------------------
# Pure-JAX reference (mirrors the kernel's bf16-operand / fp32-accumulate numerics)
# ---------------------------------------------------------------------------
def reference_forward(x_nchw, p):
    bf16, f32 = jnp.bfloat16, jnp.float32

    def conv(x_bf, w_f32, scale, stride, pad):
        w = (w_f32 * scale).astype(bf16)
        return jax.lax.conv_general_dilated(
            x_bf, w, (stride, stride), [(pad, pad), (pad, pad)],
            dimension_numbers=("NHWC", "HWIO", "NHWC"), preferred_element_type=f32)

    x = jnp.transpose(x_nchw, (0, 2, 3, 1)).astype(bf16)
    y = jnp.maximum(conv(x, p["conv1_w"], p["bn1_scale"], 2, 3) + p["bn1_bias"], 0.0)
    y = y.astype(bf16)

    # maxpool 3x3/s2/p1 (zero padding is exact: y >= 0 post-ReLU).
    _, h, w_, _ = y.shape
    ho, wo = (h - 1) // 2 + 1, (w_ - 1) // 2 + 1
    yp = jnp.pad(y, ((0, 0), (1, 1), (1, 1), (0, 0)))
    pooled = None
    for ky in range(3):
        for kx in range(3):
            v = yp[:, ky:ky + 2 * (ho - 1) + 1:2, kx:kx + 2 * (wo - 1) + 1:2, :]
            pooled = v if pooled is None else jnp.maximum(pooled, v)

    b0 = p["layer1"][0]
    h0 = jnp.maximum(conv(pooled, b0["conv1_w"], b0["bn1_scale"], 2, 1) + b0["bn1_bias"], 0.0)
    identity = conv(pooled, b0["ds_w"], b0["ds_scale"], 2, 0) + b0["ds_bias"]
    xact = jnp.maximum(
        conv(h0.astype(bf16), b0["conv2_w"], b0["bn2_scale"], 1, 1) + b0["bn2_bias"] + identity,
        0.0)
    for b in p["layer1"][1:]:
        idn = xact
        hh = jnp.maximum(
            conv(xact.astype(bf16), b["conv1_w"], b["bn1_scale"], 1, 1) + b["bn1_bias"], 0.0)
        xact = jnp.maximum(
            conv(hh.astype(bf16), b["conv2_w"], b["bn2_scale"], 1, 1) + b["bn2_bias"] + idn, 0.0)

    n2, h2, w2, c2 = xact.shape
    t = xact.reshape(n2, h2 * w2, c2)
    mean = jnp.mean(t, axis=-1, keepdims=True)
    var = jnp.mean((t - mean) ** 2, axis=-1, keepdims=True)
    return (t - mean) * jax.lax.rsqrt(var + 1e-5) * p["ln_gamma"] + p["ln_beta"]


if __name__ == "__main__":
    key = jax.random.PRNGKey(0)
    kx, kp = jax.random.split(key)
    # Input: (N=2, C=3, H=32, W=32) NCHW, matching the PyTorch module's 3-channel stem.
    x = jax.random.normal(kx, (2, 3, 32, 32), jnp.float32)
    params = init_params(kp)
    packed = pack_params(params, h_img=32, w_img=32)

    out = condition_fuser_forward(x, packed)
    out = jax.block_until_ready(out)

    # 32 -> conv1/2 -> 16 -> maxpool/2 -> 8 -> layer1 stride2 -> 4 ; tokens = 16, C = 128
    assert out.shape == (2, 16, 128), out.shape
    assert bool(jnp.all(jnp.isfinite(out)))

    ref = reference_forward(x, params)
    assert bool(jnp.allclose(out, ref, atol=3e-2, rtol=3e-2)), \
        float(jnp.max(jnp.abs(out - ref)))

    print("KERNEL_OK")
</pallas_src>

<mosaic_0001>
module attributes {stable_mosaic.version = 11 : i64} {
  func.func @_condition_fuser_kernel(%arg0: i32, %arg1: memref<256x256xbf16, #tpu.memory_space<vmem>>, %arg2: memref<256x128xbf16, #tpu.memory_space<vmem>>, %arg3: memref<576x256xbf16, #tpu.memory_space<vmem>>, %arg4: memref<144x64xbf16, #tpu.memory_space<vmem>>, %arg5: memref<144x128xbf16, #tpu.memory_space<vmem>>, %arg6: memref<1152x128xbf16, #tpu.memory_space<vmem>>, %arg7: memref<128x128xbf16, #tpu.memory_space<vmem>>, %arg8: memref<5x1152x128xbf16, #tpu.memory_space<vmem>>, %arg9: memref<16x128xf32, #tpu.memory_space<vmem>>, %arg10: memref<16x128xf32, #tpu.memory_space<vmem>>) attributes {dimension_semantics = [#tpu.dimension_semantics<parallel>], iteration_bounds = array<i64: 2>, scalar_prefetch = 0 : i64, scratch_operands = 0 : i64, tpu.core_type = #tpu.core_type<tc>, window_params = [{transform_indices = @transform_0, window_bounds = array<i64: 256, 256>}, {pipeline_mode = #tpu.pipeline_mode<synchronous>, transform_indices = @transform_1, window_bounds = array<i64: 256, 128>}, {pipeline_mode = #tpu.pipeline_mode<synchronous>, transform_indices = @transform_2, window_bounds = array<i64: 576, 256>}, {pipeline_mode = #tpu.pipeline_mode<synchronous>, transform_indices = @transform_3, window_bounds = array<i64: 144, 64>}, {pipeline_mode = #tpu.pipeline_mode<synchronous>, transform_indices = @transform_4, window_bounds = array<i64: 144, 128>}, {pipeline_mode = #tpu.pipeline_mode<synchronous>, transform_indices = @transform_5, window_bounds = array<i64: 1152, 128>}, {pipeline_mode = #tpu.pipeline_mode<synchronous>, transform_indices = @transform_6, window_bounds = array<i64: 128, 128>}, {pipeline_mode = #tpu.pipeline_mode<synchronous>, transform_indices = @transform_7, window_bounds = array<i64: 5, 1152, 128>}, {pipeline_mode = #tpu.pipeline_mode<synchronous>, transform_indices = @transform_8, window_bounds = array<i64: 16, 128>}, {transform_indices = @transform_9, window_bounds = array<i64: 16, 128>}]} {
    %c0 = arith.constant 0 : index
    %c0_0 = arith.constant 0 : index
    %0 = vector.load %arg9[%c0, %c0_0] : memref<16x128xf32, #tpu.memory_space<vmem>>, vector<16x128xf32>
    %c0_1 = arith.constant 0 : index
    %c0_2 = arith.constant 0 : index
    %1 = vector.load %arg1[%c0_1, %c0_2] : memref<256x256xbf16, #tpu.memory_space<vmem>>, vector<256x256xbf16>
    %c0_3 = arith.constant 0 : index
    %c0_4 = arith.constant 0 : index
    %2 = vector.load %arg2[%c0_3, %c0_4] : memref<256x128xbf16, #tpu.memory_space<vmem>>, vector<256x128xbf16>
    %cst = arith.constant dense<0.000000e+00> : vector<256x128xf32>
    %3 = tpu.matmul %1, %2, %cst {dimension_numbers = #tpu.dot_dimension_numbers<[1], [0], [0], [1], [0, 0, 1, 1], [], []>} : vector<256x256xbf16>, vector<256x128xbf16>, vector<256x128xf32> -> vector<256x128xf32>
    %4 = vector.extract_strided_slice %0 {offsets = [0, 0], sizes = [1, 128], strides = [1, 1]} : vector<16x128xf32> to vector<1x128xf32>
    %5 = vector.broadcast %4 : vector<1x128xf32> to vector<256x128xf32>
    %6 = arith.addf %3, %5 : vector<256x128xf32>
    %cst_5 = arith.constant 0.000000e+00 : f32
    %7 = vector.broadcast %cst_5 : f32 to vector<256x128xf32>
    %8 = arith.maximumf %6, %7 : vector<256x128xf32>
    %9 = arith.truncf %8 : vector<256x128xf32> to vector<256x128xbf16>
    %c0_6 = arith.constant 0 : index
    %c0_7 = arith.constant 0 : index
    %10 = vector.load %arg3[%c0_6, %c0_7] : memref<576x256xbf16, #tpu.memory_space<vmem>>, vector<576x256xbf16>
    %cst_8 = arith.constant dense<0.000000e+00> : vector<576x128xf32>
    %11 = tpu.matmul %10, %9, %cst_8 {dimension_numbers = #tpu.dot_dimension_numbers<[1], [0], [0], [1], [0, 0, 1, 1], [], []>} : vector<576x256xbf16>, vector<256x128xbf16>, vector<576x128xf32> -> vector<576x128xf32>
    %12 = vector.extract_strided_slice %11 {offsets = [0, 0], sizes = [64, 128], strides = [1, 1]} : vector<576x128xf32> to vector<64x128xf32>
    %13 = vector.extract_strided_slice %11 {offsets = [64, 0], sizes = [64, 128], strides = [1, 1]} : vector<576x128xf32> to vector<64x128xf32>
    %14 = arith.maximumf %12, %13 : vector<64x128xf32>
    %15 = vector.extract_strided_slice %11 {offsets = [128, 0], sizes = [64, 128], strides = [1, 1]} : vector<576x128xf32> to vector<64x128xf32>
    %16 = arith.maximumf %14, %15 : vector<64x128xf32>
    %17 = vector.extract_strided_slice %11 {offsets = [192, 0], sizes = [64, 128], strides = [1, 1]} : vector<576x128xf32> to vector<64x128xf32>
    %18 = arith.maximumf %16, %17 : vector<64x128xf32>
    %19 = vector.extract_strided_slice %11 {offsets = [256, 0], sizes = [64, 128], strides = [1, 1]} : vector<576x128xf32> to vector<64x128xf32>
    %20 = arith.maximumf %18, %19 : vector<64x128xf32>
    %21 = vector.extract_strided_slice %11 {offsets = [320, 0], sizes = [64, 128], strides = [1, 1]} : vector<576x128xf32> to vector<64x128xf32>
    %22 = arith.maximumf %20, %21 : vector<64x128xf32>
    %23 = vector.extract_strided_slice %11 {offsets = [384, 0], sizes = [64, 128], strides = [1, 1]} : vector<576x128xf32> to vector<64x128xf32>
    %24 = arith.maximumf %22, %23 : vector<64x128xf32>
    %25 = vector.extract_strided_slice %11 {offsets = [448, 0], sizes = [64, 128], strides = [1, 1]} : vector<576x128xf32> to vector<64x128xf32>
    %26 = arith.maximumf %24, %25 : vector<64x128xf32>
    %27 = vector.extract_strided_slice %11 {offsets = [512, 0], sizes = [64, 128], strides = [1, 1]} : vector<576x128xf32> to vector<64x128xf32>
    %28 = arith.maximumf %26, %27 : vector<64x128xf32>
    %29 = arith.truncf %28 : vector<64x128xf32> to vector<64x128xbf16>
    %c0_9 = arith.constant 0 : index
    %c0_10 = arith.constant 0 : index
    %30 = vector.load %arg4[%c0_9, %c0_10] : memref<144x64xbf16, #tpu.memory_space<vmem>>, vector<144x64xbf16>
    %cst_11 = arith.constant dense<0.000000e+00> : vector<144x128xf32>
    %31 = tpu.matmul %30, %29, %cst_11 {dimension_numbers = #tpu.dot_dimension_numbers<[1], [0], [0], [1], [0, 0, 1, 1], [], []>} : vector<144x64xbf16>, vector<64x128xbf16>, vector<144x128xf32> -> vector<144x128xf32>
    %32 = arith.truncf %31 : vector<144x128xf32> to vector<144x128xbf16>
    %33 = vector.extract_strided_slice %32 {offsets = [0, 0], sizes = [16, 128], strides = [1, 1]} : vector<144x128xbf16> to vector<16x128xbf16>
    %34 = vector.extract_strided_slice %32 {offsets = [16, 0], sizes = [16, 128], strides = [1, 1]} : vector<144x128xbf16> to vector<16x128xbf16>
    %35 = vector.extract_strided_slice %32 {offsets = [32, 0], sizes = [16, 128], strides = [1, 1]} : vector<144x128xbf16> to vector<16x128xbf16>
    %36 = vector.extract_strided_slice %32 {offsets = [48, 0], sizes = [16, 128], strides = [1, 1]} : vector<144x128xbf16> to vector<16x128xbf16>
    %37 = vector.extract_strided_slice %32 {offsets = [64, 0], sizes = [16, 128], strides = [1, 1]} : vector<144x128xbf16> to vector<16x128xbf16>
    %38 = vector.extract_strided_slice %32 {offsets = [80, 0], sizes = [16, 128], strides = [1, 1]} : vector<144x128xbf16> to vector<16x128xbf16>
    %39 = vector.extract_strided_slice %32 {offsets = [96, 0], sizes = [16, 128], strides = [1, 1]} : vector<144x128xbf16> to vector<16x128xbf16>
    %40 = vector.extract_strided_slice %32 {offsets = [112, 0], sizes = [16, 128], strides = [1, 1]} : vector<144x128xbf16> to vector<16x128xbf16>
    %41 = vector.extract_strided_slice %32 {offsets = [128, 0], sizes = [16, 128], strides = [1, 1]} : vector<144x128xbf16> to vector<16x128xbf16>
    %42 = tpu.concatenate %33, %34, %35, %36, %37, %38, %39, %40, %41 in 1 : vector<16x128xbf16>, vector<16x128xbf16>, vector<16x128xbf16>, vector<16x128xbf16>, vector<16x128xbf16>, vector<16x128xbf16>, vector<16x128xbf16>, vector<16x128xbf16>, vector<16x128xbf16> -> vector<16x1152xbf16>
    %43 = vector.extract_strided_slice %32 {offsets = [64, 0], sizes = [16, 128], strides = [1, 1]} : vector<144x128xbf16> to vector<16x128xbf16>
    %c0_12 = arith.constant 0 : index
    %c0_13 = arith.constant 0 : index
    %44 = vector.load %arg6[%c0_12, %c0_13] : memref<1152x128xbf16, #tpu.memory_space<vmem>>, vector<1152x128xbf16>
    %cst_14 = arith.constant dense<0.000000e+00> : vector<16x128xf32>
    %45 = tpu.matmul %42, %44, %cst_14 {dimension_numbers = #tpu.dot_dimension_numbers<[1], [0], [0], [1], [0, 0, 1, 1], [], []>} : vector<16x1152xbf16>, vector<1152x128xbf16>, vector<16x128xf32> -> vector<16x128xf32>
    %46 = vector.extract_strided_slice %0 {offsets = [1, 0], sizes = [1, 128], strides = [1, 1]} : vector<16x128xf32> to vector<1x128xf32>
    %47 = vector.broadcast %46 : vector<1x128xf32> to vector<16x128xf32>
    %48 = arith.addf %45, %47 : vector<16x128xf32>
    %cst_15 = arith.constant 0.000000e+00 : f32
    %49 = vector.broadcast %cst_15 : f32 to vector<16x128xf32>
    %50 = arith.maximumf %48, %49 : vector<16x128xf32>
    %c0_16 = arith.constant 0 : index
    %c0_17 = arith.constant 0 : index
    %51 = vector.load %arg7[%c0_16, %c0_17] : memref<128x128xbf16, #tpu.memory_space<vmem>>, vector<128x128xbf16>
    %cst_18 = arith.constant dense<0.000000e+00> : vector<16x128xf32>
    %52 = tpu.matmul %43, %51, %cst_18 {dimension_numbers = #tpu.dot_dimension_numbers<[1], [0], [0], [1], [0, 0, 1, 1], [], []>} : vector<16x128xbf16>, vector<128x128xbf16>, vector<16x128xf32> -> vector<16x128xf32>
    %53 = vector.extract_strided_slice %0 {offsets = [2, 0], sizes = [1, 128], strides = [1, 1]} : vector<16x128xf32> to vector<1x128xf32>
    %54 = vector.broadcast %53 : vector<1x128xf32> to vector<16x128xf32>
    %55 = arith.addf %52, %54 : vector<16x128xf32>
    %c0_19 = arith.constant 0 : index
    %c0_20 = arith.constant 0 : index
    %56 = vector.load %arg5[%c0_19, %c0_20] : memref<144x128xbf16, #tpu.memory_space<vmem>>, vector<144x128xbf16>
    %cst_21 = arith.constant 0.000000e+00 : bf16
    %57 = vector.broadcast %cst_21 : bf16 to vector<112x128xbf16>
    %58 = arith.truncf %50 : vector<16x128xf32> to vector<16x128xbf16>
    %59 = tpu.concatenate %58, %57 in 0 : vector<16x128xbf16>, vector<112x128xbf16> -> vector<128x128xbf16>
    %cst_22 = arith.constant dense<0.000000e+00> : vector<144x128xf32>
    %60 = tpu.matmul %56, %59, %cst_22 {dimension_numbers = #tpu.dot_dimension_numbers<[1], [0], [0], [1], [0, 0, 1, 1], [], []>} : vector<144x128xbf16>, vector<128x128xbf16>, vector<144x128xf32> -> vector<144x128xf32>
    %61 = arith.truncf %60 : vector<144x128xf32> to vector<144x128xbf16>
    %62 = vector.extract_strided_slice %61 {offsets = [0, 0], sizes = [16, 128], strides = [1, 1]} : vector<144x128xbf16> to vector<16x128xbf16>
    %63 = vector.extract_strided_slice %61 {offsets = [16, 0], sizes = [16, 128], strides = [1, 1]} : vector<144x128xbf16> to vector<16x128xbf16>
    %64 = vector.extract_strided_slice %61 {offsets = [32, 0], sizes = [16, 128], strides = [1, 1]} : vector<144x128xbf16> to vector<16x128xbf16>
    %65 = vector.extract_strided_slice %61 {offsets = [48, 0], sizes = [16, 128], strides = [1, 1]} : vector<144x128xbf16> to vector<16x128xbf16>
    %66 = vector.extract_strided_slice %61 {offsets = [64, 0], sizes = [16, 128], strides = [1, 1]} : vector<144x128xbf16> to vector<16x128xbf16>
    %67 = vector.extract_strided_slice %61 {offsets = [80, 0], sizes = [16, 128], strides = [1, 1]} : vector<144x128xbf16> to vector<16x128xbf16>
    %68 = vector.extract_strided_slice %61 {offsets = [96, 0], sizes = [16, 128], strides = [1, 1]} : vector<144x128xbf16> to vector<16x128xbf16>
    %69 = vector.extract_strided_slice %61 {offsets = [112, 0], sizes = [16, 128], strides = [1, 1]} : vector<144x128xbf16> to vector<16x128xbf16>
    %70 = vector.extract_strided_slice %61 {offsets = [128, 0], sizes = [16, 128], strides = [1, 1]} : vector<144x128xbf16> to vector<16x128xbf16>
    %71 = tpu.concatenate %62, %63, %64, %65, %66, %67, %68, %69, %70 in 1 : vector<16x128xbf16>, vector<16x128xbf16>, vector<16x128xbf16>, vector<16x128xbf16>, vector<16x128xbf16>, vector<16x128xbf16>, vector<16x128xbf16>, vector<16x128xbf16>, vector<16x128xbf16> -> vector<16x1152xbf16>
    %c0_23 = arith.constant 0 : index
    %c0_24 = arith.constant 0 : index
    %c0_25 = arith.constant 0 : index
    %72 = vector.load %arg8[%c0_23, %c0_24, %c0_25] : memref<5x1152x128xbf16, #tpu.memory_space<vmem>>, vector<1x1152x128xbf16>
    %73 = vector.shape_cast %72 : vector<1x1152x128xbf16> to vector<1152x128xbf16>
    %cst_26 = arith.constant dense<0.000000e+00> : vector<16x128xf32>
    %74 = tpu.matmul %71, %73, %cst_26 {dimension_numbers = #tpu.dot_dimension_numbers<[1], [0], [0], [1], [0, 0, 1, 1], [], []>} : vector<16x1152xbf16>, vector<1152x128xbf16>, vector<16x128xf32> -> vector<16x128xf32>
    %75 = vector.extract_strided_slice %0 {offsets = [3, 0], sizes = [1, 128], strides = [1, 1]} : vector<16x128xf32> to vector<1x128xf32>
    %76 = vector.broadcast %75 : vector<1x128xf32> to vector<16x128xf32>
    %77 = arith.addf %74, %76 : vector<16x128xf32>
    %78 = arith.addf %77, %55 : vector<16x128xf32>
    %cst_27 = arith.constant 0.000000e+00 : f32
    %79 = vector.broadcast %cst_27 : f32 to vector<16x128xf32>
    %80 = arith.maximumf %78, %79 : vector<16x128xf32>
    %81 = arith.truncf %80 : vector<16x128xf32> to vector<16x128xbf16>
    %82 = tpu.concatenate %81, %57 in 0 : vector<16x128xbf16>, vector<112x128xbf16> -> vector<128x128xbf16>
    %cst_28 = arith.constant dense<0.000000e+00> : vector<144x128xf32>
    %83 = tpu.matmul %56, %82, %cst_28 {dimension_numbers = #tpu.dot_dimension_numbers<[1], [0], [0], [1], [0, 0, 1, 1], [], []>} : vector<144x128xbf16>, vector<128x128xbf16>, vector<144x128xf32> -> vector<144x128xf32>
    %84 = arith.truncf %83 : vector<144x128xf32> to vector<144x128xbf16>
    %85 = vector.extract_strided_slice %84 {offsets = [0, 0], sizes = [16, 128], strides = [1, 1]} : vector<144x128xbf16> to vector<16x128xbf16>
    %86 = vector.extract_strided_slice %84 {offsets = [16, 0], sizes = [16, 128], strides = [1, 1]} : vector<144x128xbf16> to vector<16x128xbf16>
    %87 = vector.extract_strided_slice %84 {offsets = [32, 0], sizes = [16, 128], strides = [1, 1]} : vector<144x128xbf16> to vector<16x128xbf16>
    %88 = vector.extract_strided_slice %84 {offsets = [48, 0], sizes = [16, 128], strides = [1, 1]} : vector<144x128xbf16> to vector<16x128xbf16>
    %89 = vector.extract_strided_slice %84 {offsets = [64, 0], sizes = [16, 128], strides = [1, 1]} : vector<144x128xbf16> to vector<16x128xbf16>
    %90 = vector.extract_strided_slice %84 {offsets = [80, 0], sizes = [16, 128], strides = [1, 1]} : vector<144x128xbf16> to vector<16x128xbf16>
    %91 = vector.extract_strided_slice %84 {offsets = [96, 0], sizes = [16, 128], strides = [1, 1]} : vector<144x128xbf16> to vector<16x128xbf16>
    %92 = vector.extract_strided_slice %84 {offsets = [112, 0], sizes = [16, 128], strides = [1, 1]} : vector<144x128xbf16> to vector<16x128xbf16>
    %93 = vector.extract_strided_slice %84 {offsets = [128, 0], sizes = [16, 128], strides = [1, 1]} : vector<144x128xbf16> to vector<16x128xbf16>
    %94 = tpu.concatenate %85, %86, %87, %88, %89, %90, %91, %92, %93 in 1 : vector<16x128xbf16>, vector<16x128xbf16>, vector<16x128xbf16>, vector<16x128xbf16>, vector<16x128xbf16>, vector<16x128xbf16>, vector<16x128xbf16>, vector<16x128xbf16>, vector<16x128xbf16> -> vector<16x1152xbf16>
    %c1 = arith.constant 1 : index
    %c0_29 = arith.constant 0 : index
    %c0_30 = arith.constant 0 : index
    %95 = vector.load %arg8[%c1, %c0_29, %c0_30] : memref<5x1152x128xbf16, #tpu.memory_space<vmem>>, vector<1x1152x128xbf16>
    %96 = vector.shape_cast %95 : vector<1x1152x128xbf16> to vector<1152x128xbf16>
    %cst_31 = arith.constant dense<0.000000e+00> : vector<16x128xf32>
    %97 = tpu.matmul %94, %96, %cst_31 {dimension_numbers = #tpu.dot_dimension_numbers<[1], [0], [0], [1], [0, 0, 1, 1], [], []>} : vector<16x1152xbf16>, vector<1152x128xbf16>, vector<16x128xf32> -> vector<16x128xf32>
    %98 = vector.extract_strided_slice %0 {offsets = [4, 0], sizes = [1, 128], strides = [1, 1]} : vector<16x128xf32> to vector<1x128xf32>
    %99 = vector.broadcast %98 : vector<1x128xf32> to vector<16x128xf32>
    %100 = arith.addf %97, %99 : vector<16x128xf32>
    %cst_32 = arith.constant 0.000000e+00 : f32
    %101 = vector.broadcast %cst_32 : f32 to vector<16x128xf32>
    %102 = arith.maximumf %100, %101 : vector<16x128xf32>
    %103 = arith.truncf %102 : vector<16x128xf32> to vector<16x128xbf16>
    %104 = tpu.concatenate %103, %57 in 0 : vector<16x128xbf16>, vector<112x128xbf16> -> vector<128x128xbf16>
    %cst_33 = arith.constant dense<0.000000e+00> : vector<144x128xf32>
    %105 = tpu.matmul %56, %104, %cst_33 {dimension_numbers = #tpu.dot_dimension_numbers<[1], [0], [0], [1], [0, 0, 1, 1], [], []>} : vector<144x128xbf16>, vector<128x128xbf16>, vector<144x128xf32> -> vector<144x128xf32>
    %106 = arith.truncf %105 : vector<144x128xf32> to vector<144x128xbf16>
    %107 = vector.extract_strided_slice %106 {offsets = [0, 0], sizes = [16, 128], strides = [1, 1]} : vector<144x128xbf16> to vector<16x128xbf16>
    %108 = vector.extract_strided_slice %106 {offsets = [16, 0], sizes = [16, 128], strides = [1, 1]} : vector<144x128xbf16> to vector<16x128xbf16>
    %109 = vector.extract_strided_slice %106 {offsets = [32, 0], sizes = [16, 128], strides = [1, 1]} : vector<144x128xbf16> to vector<16x128xbf16>
    %110 = vector.extract_strided_slice %106 {offsets = [48, 0], sizes = [16, 128], strides = [1, 1]} : vector<144x128xbf16> to vector<16x128xbf16>
    %111 = vector.extract_strided_slice %106 {offsets = [64, 0], sizes = [16, 128], strides = [1, 1]} : vector<144x128xbf16> to vector<16x128xbf16>
    %112 = vector.extract_strided_slice %106 {offsets = [80, 0], sizes = [16, 128], strides = [1, 1]} : vector<144x128xbf16> to vector<16x128xbf16>
    %113 = vector.extract_strided_slice %106 {offsets = [96, 0], sizes = [16, 128], strides = [1, 1]} : vector<144x128xbf16> to vector<16x128xbf16>
    %114 = vector.extract_strided_slice %106 {offsets = [112, 0], sizes = [16, 128], strides = [1, 1]} : vector<144x128xbf16> to vector<16x128xbf16>
    %115 = vector.extract_strided_slice %106 {offsets = [128, 0], sizes = [16, 128], strides = [1, 1]} : vector<144x128xbf16> to vector<16x128xbf16>
    %116 = tpu.concatenate %107, %108, %109, %110, %111, %112, %113, %114, %115 in 1 : vector<16x128xbf16>, vector<16x128xbf16>, vector<16x128xbf16>, vector<16x128xbf16>, vector<16x128xbf16>, vector<16x128xbf16>, vector<16x128xbf16>, vector<16x128xbf16>, vector<16x128xbf16> -> vector<16x1152xbf16>
    %c2 = arith.constant 2 : index
    %c0_34 = arith.constant 0 : index
    %c0_35 = arith.constant 0 : index
    %117 = vector.load %arg8[%c2, %c0_34, %c0_35] : memref<5x1152x128xbf16, #tpu.memory_space<vmem>>, vector<1x1152x128xbf16>
    %118 = vector.shape_cast %117 : vector<1x1152x128xbf16> to vector<1152x128xbf16>
    %cst_36 = arith.constant dense<0.000000e+00> : vector<16x128xf32>
    %119 = tpu.matmul %116, %118, %cst_36 {dimension_numbers = #tpu.dot_dimension_numbers<[1], [0], [0], [1], [0, 0, 1, 1], [], []>} : vector<16x1152xbf16>, vector<1152x128xbf16>, vector<16x128xf32> -> vector<16x128xf32>
    %120 = vector.extract_strided_slice %0 {offsets = [5, 0], sizes = [1, 128], strides = [1, 1]} : vector<16x128xf32> to vector<1x128xf32>
    %121 = vector.broadcast %120 : vector<1x128xf32> to vector<16x128xf32>
    %122 = arith.addf %119, %121 : vector<16x128xf32>
    %123 = arith.addf %122, %80 : vector<16x128xf32>
    %cst_37 = arith.constant 0.000000e+00 : f32
    %124 = vector.broadcast %cst_37 : f32 to vector<16x128xf32>
    %125 = arith.maximumf %123, %124 : vector<16x128xf32>
    %126 = arith.truncf %125 : vector<16x128xf32> to vector<16x128xbf16>
    %127 = tpu.concatenate %126, %57 in 0 : vector<16x128xbf16>, vector<112x128xbf16> -> vector<128x128xbf16>
    %cst_38 = arith.constant dense<0.000000e+00> : vector<144x128xf32>
    %128 = tpu.matmul %56, %127, %cst_38 {dimension_numbers = #tpu.dot_dimension_numbers<[1], [0], [0], [1], [0, 0, 1, 1], [], []>} : vector<144x128xbf16>, vector<128x128xbf16>, vector<144x128xf32> -> vector<144x128xf32>
    %129 = arith.truncf %128 : vector<144x128xf32> to vector<144x128xbf16>
    %130 = vector.extract_strided_slice %129 {offsets = [0, 0], sizes = [16, 128], strides = [1, 1]} : vector<144x128xbf16> to vector<16x128xbf16>
    %131 = vector.extract_strided_slice %129 {offsets = [16, 0], sizes = [16, 128], strides = [1, 1]} : vector<144x128xbf16> to vector<16x128xbf16>
    %132 = vector.extract_strided_slice %129 {offsets = [32, 0], sizes = [16, 128], strides = [1, 1]} : vector<144x128xbf16> to vector<16x128xbf16>
    %133 = vector.extract_strided_slice %129 {offsets = [48, 0], sizes = [16, 128], strides = [1, 1]} : vector<144x128xbf16> to vector<16x128xbf16>
    %134 = vector.extract_strided_slice %129 {offsets = [64, 0], sizes = [16, 128], strides = [1, 1]} : vector<144x128xbf16> to vector<16x128xbf16>
    %135 = vector.extract_strided_slice %129 {offsets = [80, 0], sizes = [16, 128], strides = [1, 1]} : vector<144x128xbf16> to vector<16x128xbf16>
    %136 = vector.extract_strided_slice %129 {offsets = [96, 0], sizes = [16, 128], strides = [1, 1]} : vector<144x128xbf16> to vector<16x128xbf16>
    %137 = vector.extract_strided_slice %129 {offsets = [112, 0], sizes = [16, 128], strides = [1, 1]} : vector<144x128xbf16> to vector<16x128xbf16>
    %138 = vector.extract_strided_slice %129 {offsets = [128, 0], sizes = [16, 128], strides = [1, 1]} : vector<144x128xbf16> to vector<16x128xbf16>
    %139 = tpu.concatenate %130, %131, %132, %133, %134, %135, %136, %137, %138 in 1 : vector<16x128xbf16>, vector<16x128xbf16>, vector<16x128xbf16>, vector<16x128xbf16>, vector<16x128xbf16>, vector<16x128xbf16>, vector<16x128xbf16>, vector<16x128xbf16>, vector<16x128xbf16> -> vector<16x1152xbf16>
    %c3 = arith.constant 3 : index
    %c0_39 = arith.constant 0 : index
    %c0_40 = arith.constant 0 : index
    %140 = vector.load %arg8[%c3, %c0_39, %c0_40] : memref<5x1152x128xbf16, #tpu.memory_space<vmem>>, vector<1x1152x128xbf16>
    %141 = vector.shape_cast %140 : vector<1x1152x128xbf16> to vector<1152x128xbf16>
    %cst_41 = arith.constant dense<0.000000e+00> : vector<16x128xf32>
    %142 = tpu.matmul %139, %141, %cst_41 {dimension_numbers = #tpu.dot_dimension_numbers<[1], [0], [0], [1], [0, 0, 1, 1], [], []>} : vector<16x1152xbf16>, vector<1152x128xbf16>, vector<16x128xf32> -> vector<16x128xf32>
    %143 = vector.extract_strided_slice %0 {offsets = [6, 0], sizes = [1, 128], strides = [1, 1]} : vector<16x128xf32> to vector<1x128xf32>
    %144 = vector.broadcast %143 : vector<1x128xf32> to vector<16x128xf32>
    %145 = arith.addf %142, %144 : vector<16x128xf32>
    %cst_42 = arith.constant 0.000000e+00 : f32
    %146 = vector.broadcast %cst_42 : f32 to vector<16x128xf32>
    %147 = arith.maximumf %145, %146 : vector<16x128xf32>
    %148 = arith.truncf %147 : vector<16x128xf32> to vector<16x128xbf16>
    %149 = tpu.concatenate %148, %57 in 0 : vector<16x128xbf16>, vector<112x128xbf16> -> vector<128x128xbf16>
    %cst_43 = arith.constant dense<0.000000e+00> : vector<144x128xf32>
    %150 = tpu.matmul %56, %149, %cst_43 {dimension_numbers = #tpu.dot_dimension_numbers<[1], [0], [0], [1], [0, 0, 1, 1], [], []>} : vector<144x128xbf16>, vector<128x128xbf16>, vector<144x128xf32> -> vector<144x128xf32>
    %151 = arith.truncf %150 : vector<144x128xf32> to vector<144x128xbf16>
    %152 = vector.extract_strided_slice %151 {offsets = [0, 0], sizes = [16, 128], strides = [1, 1]} : vector<144x128xbf16> to vector<16x128xbf16>
    %153 = vector.extract_strided_slice %151 {offsets = [16, 0], sizes = [16, 128], strides = [1, 1]} : vector<144x128xbf16> to vector<16x128xbf16>
    %154 = vector.extract_strided_slice %151 {offsets = [32, 0], sizes = [16, 128], strides = [1, 1]} : vector<144x128xbf16> to vector<16x128xbf16>
    %155 = vector.extract_strided_slice %151 {offsets = [48, 0], sizes = [16, 128], strides = [1, 1]} : vector<144x128xbf16> to vector<16x128xbf16>
    %156 = vector.extract_strided_slice %151 {offsets = [64, 0], sizes = [16, 128], strides = [1, 1]} : vector<144x128xbf16> to vector<16x128xbf16>
    %157 = vector.extract_strided_slice %151 {offsets = [80, 0], sizes = [16, 128], strides = [1, 1]} : vector<144x128xbf16> to vector<16x128xbf16>
    %158 = vector.extract_strided_slice %151 {offsets = [96, 0], sizes = [16, 128], strides = [1, 1]} : vector<144x128xbf16> to vector<16x128xbf16>
    %159 = vector.extract_strided_slice %151 {offsets = [112, 0], sizes = [16, 128], strides = [1, 1]} : vector<144x128xbf16> to vector<16x128xbf16>
    %160 = vector.extract_strided_slice %151 {offsets = [128, 0], sizes = [16, 128], strides = [1, 1]} : vector<144x128xbf16> to vector<16x128xbf16>
    %161 = tpu.concatenate %152, %153, %154, %155, %156, %157, %158, %159, %160 in 1 : vector<16x128xbf16>, vector<16x128xbf16>, vector<16x128xbf16>, vector<16x128xbf16>, vector<16x128xbf16>, vector<16x128xbf16>, vector<16x128xbf16>, vector<16x128xbf16>, vector<16x128xbf16> -> vector<16x1152xbf16>
    %c4 = arith.constant 4 : index
    %c0_44 = arith.constant 0 : index
    %c0_45 = arith.constant 0 : index
    %162 = vector.load %arg8[%c4, %c0_44, %c0_45] : memref<5x1152x128xbf16, #tpu.memory_space<vmem>>, vector<1x1152x128xbf16>
    %163 = vector.shape_cast %162 : vector<1x1152x128xbf16> to vector<1152x128xbf16>
    %cst_46 = arith.constant dense<0.000000e+00> : vector<16x128xf32>
    %164 = tpu.matmul %161, %163, %cst_46 {dimension_numbers = #tpu.dot_dimension_numbers<[1], [0], [0], [1], [0, 0, 1, 1], [], []>} : vector<16x1152xbf16>, vector<1152x128xbf16>, vector<16x128xf32> -> vector<16x128xf32>
    %165 = vector.extract_strided_slice %0 {offsets = [7, 0], sizes = [1, 128], strides = [1, 1]} : vector<16x128xf32> to vector<1x128xf32>
    %166 = vector.broadcast %165 : vector<1x128xf32> to vector<16x128xf32>
    %167 = arith.addf %164, %166 : vector<16x128xf32>
    %168 = arith.addf %167, %125 : vector<16x128xf32>
    %cst_47 = arith.constant 0.000000e+00 : f32
    %169 = vector.broadcast %cst_47 : f32 to vector<16x128xf32>
    %170 = arith.maximumf %168, %169 : vector<16x128xf32>
    %cst_48 = arith.constant dense<0.000000e+00> : vector<16xf32>
    %171 = vector.multi_reduction <add>, %170, %cst_48 [1] : vector<16x128xf32> to vector<16xf32>
    %172 = vector.shape_cast %171 : vector<16xf32> to vector<16x1xf32>
    %cst_49 = arith.constant 1.280000e+02 : f32
    %173 = vector.broadcast %cst_49 : f32 to vector<16x1xf32>
    %174 = arith.divf %172, %173 : vector<16x1xf32>
    %175 = vector.broadcast %174 : vector<16x1xf32> to vector<16x128xf32>
    %176 = arith.subf %170, %175 : vector<16x128xf32>
    %177 = arith.mulf %176, %176 : vector<16x128xf32>
    %cst_50 = arith.constant dense<0.000000e+00> : vector<16xf32>
    %178 = vector.multi_reduction <add>, %177, %cst_50 [1] : vector<16x128xf32> to vector<16xf32>
    %179 = vector.shape_cast %178 : vector<16xf32> to vector<16x1xf32>
    %cst_51 = arith.constant 1.280000e+02 : f32
    %180 = vector.broadcast %cst_51 : f32 to vector<16x1xf32>
    %181 = arith.divf %179, %180 : vector<16x1xf32>
    %cst_52 = arith.constant 9.99999974E-6 : f32
    %182 = vector.broadcast %cst_52 : f32 to vector<16x1xf32>
    %183 = arith.addf %181, %182 : vector<16x1xf32>
    %184 = math.rsqrt %183 : vector<16x1xf32>
    %185 = vector.broadcast %184 : vector<16x1xf32> to vector<16x128xf32>
    %186 = arith.mulf %176, %185 : vector<16x128xf32>
    %187 = vector.extract_strided_slice %0 {offsets = [8, 0], sizes = [1, 128], strides = [1, 1]} : vector<16x128xf32> to vector<1x128xf32>
    %188 = vector.broadcast %187 : vector<1x128xf32> to vector<16x128xf32>
    %189 = arith.mulf %186, %188 : vector<16x128xf32>
    %190 = vector.extract_strided_slice %0 {offsets = [9, 0], sizes = [1, 128], strides = [1, 1]} : vector<16x128xf32> to vector<1x128xf32>
    %191 = vector.broadcast %190 : vector<1x128xf32> to vector<16x128xf32>
    %192 = arith.addf %189, %191 : vector<16x128xf32>
    %c0_53 = arith.constant 0 : index
    %c0_54 = arith.constant 0 : index
    %193 = vector.load %arg10[%c0_53, %c0_54] : memref<16x128xf32, #tpu.memory_space<vmem>>, vector<16x128xf32>
    tpu.vector_store %arg10[%c0_53, %c0_54], %192 {strides = array<i32>} : memref<16x128xf32, #tpu.memory_space<vmem>>, vector<16x128xf32>,
    return
  }
  func.func @transform_0(%arg0: i32) -> (i32, i32) {
    %c0_i32 = arith.constant 0 : i32
    %c0_i32_0 = arith.constant 0 : i32
    return %arg0, %c0_i32 : i32, i32
  }
  func.func @transform_1(%arg0: i32) -> (i32, i32) {
    %c0_i32 = arith.constant 0 : i32
    %c0_i32_0 = arith.constant 0 : i32
    %c0_i32_1 = arith.constant 0 : i32
    return %c0_i32, %c0_i32_0 : i32, i32
  }
  func.func @transform_2(%arg0: i32) -> (i32, i32) {
    %c0_i32 = arith.constant 0 : i32
    %c0_i32_0 = arith.constant 0 : i32
    %c0_i32_1 = arith.constant 0 : i32
    return %c0_i32, %c0_i32_0 : i32, i32
  }
  func.func @transform_3(%arg0: i32) -> (i32, i32) {
    %c0_i32 = arith.constant 0 : i32
    %c0_i32_0 = arith.constant 0 : i32
    %c0_i32_1 = arith.constant 0 : i32
    return %c0_i32, %c0_i32_0 : i32, i32
  }
  func.func @transform_4(%arg0: i32) -> (i32, i32) {
    %c0_i32 = arith.constant 0 : i32
    %c0_i32_0 = arith.constant 0 : i32
    %c0_i32_1 = arith.constant 0 : i32
    return %c0_i32, %c0_i32_0 : i32, i32
  }
  func.func @transform_5(%arg0: i32) -> (i32, i32) {
    %c0_i32 = arith.constant 0 : i32
    %c0_i32_0 = arith.constant 0 : i32
    %c0_i32_1 = arith.constant 0 : i32
    return %c0_i32, %c0_i32_0 : i32, i32
  }
  func.func @transform_6(%arg0: i32) -> (i32, i32) {
    %c0_i32 = arith.constant 0 : i32
    %c0_i32_0 = arith.constant 0 : i32
    %c0_i32_1 = arith.constant 0 : i32
    return %c0_i32, %c0_i32_0 : i32, i32
  }
  func.func @transform_7(%arg0: i32) -> (i32, i32, i32) {
    %c0_i32 = arith.constant 0 : i32
    %c0_i32_0 = arith.constant 0 : i32
    %c0_i32_1 = arith.constant 0 : i32
    %c0_i32_2 = arith.constant 0 : i32
    return %c0_i32, %c0_i32_0, %c0_i32_1 : i32, i32, i32
  }
  func.func @transform_8(%arg0: i32) -> (i32, i32) {
    %c0_i32 = arith.constant 0 : i32
    %c0_i32_0 = arith.constant 0 : i32
    %c0_i32_1 = arith.constant 0 : i32
    return %c0_i32, %c0_i32_0 : i32, i32
  }
  func.func @transform_9(%arg0: i32) -> (i32, i32) {
    %c0_i32 = arith.constant 0 : i32
    %c0_i32_0 = arith.constant 0 : i32
    return %arg0, %c0_i32 : i32, i32
  }
}

</mosaic_0001>

<bundles_post_ra>
// kernel: condition_fuser_forward.1
= control target key start
LH: loop header
LB: loop body
LE: loop exit
PB: predicated region body
PF: predicated region fallthrough
CT: control target
= control target key end

     0   :  { %14 = vsyncpa [#allocation3], 0  ;;  %s12914_s0 = inlined_call_operand.vmem [shape: bf16[512,256], index: 0, kind: input, shape index: {}]   ;;  %s12915_s1 = inlined_call_operand.vmem [shape: bf16[256,128], index: 1, kind: input, shape index: {}]   ;;  %s12916_s2 = inlined_call_operand.vmem [shape: bf16[576,256], index: 2, kind: input, shape index: {}]   ;;  %s12917_s3 = inlined_call_operand.vmem [shape: bf16[144,64], index: 3, kind: input, shape index: {}]   ;;  %s12918_s4 = inlined_call_operand.vmem [shape: bf16[144,128], index: 4, kind: input, shape index: {}]   ;;  %s12919_s5 = inlined_call_operand.vmem [shape: bf16[1152,128], index: 5, kind: input, shape index: {}]   ;;  %s12920_s6 = inlined_call_operand.vmem [shape: bf16[128,128], index: 6, kind: input, shape index: {}]   ;;  %s12921_s7 = inlined_call_operand.vmem [shape: bf16[5,1152,128], index: 7, kind: input, shape index: {}]   ;;  %s12922_s8 = inlined_call_operand.vmem [shape: f32[16,128], index: 8, kind: input, shape index: {}]   ;;  %s12923_s9 = inlined_call_operand.hbm [shape: f32[32,128], index: 9, kind: output, shape index: {}]  }
   0x1   :  { %16 = vsyncpa [#allocation3 + $0x1], 0  ;;  %s10645_s30 = smov 0   ;;  %s10647_s10 = smov 0  }
   0x2   :  { %s10649_s11 = smov 0   ;;  %s10651_s12 = smov 0  }
   0x3 LB: > { %s10666_s13 = sadd.s32 4294967295, %s10587_s12   ;;  %s7500_s14 = sadd.s32 4294967294, %s10587_s12   ;;  %s10587_s12 = sphi %s10651_s12, %s12929_s12   ;;  %s10583_s11 = sphi %s10649_s11, %s12928_s11   ;;  %s10579_s10 = sphi %s10647_s10, %s12927_s10   ;;  %s10575_s30 = sphi %s10645_s30, %s12926_s30  }
   0x4   : > { %s10670_s15 = sadd.s32 1, %s10587_s12   ;;  %s223_s16 = sadd.s32 1, %s10583_s11 }
   0x5   : > { %s220_s17 = ssub.s32 %s10587_s12, %s10670_s15  ;;  %p233_p0 = scmp.ne.s32.totalorder %s10583_s11, %s10579_s10 }
   0x6   : > { %p221_p1 = scmp.eq.s32.totalorder %s220_s17, 0  ;;  %p234_p2 = scmp.eq.s32.totalorder %s10666_s13, 1 }
   0x7   : > { %p239_p3 = scmp.ne.s32.totalorder %s10579_s10, %s10575_s30  ;;  %p240_p4 = scmp.eq.s32.totalorder %s7500_s14, 1 }
   0x8   : > { %s10681_s18 = scalar_select %p221_p1, %s10583_s11, %s223_s16  }
   0x9   : > { %p10683_p5 = por %p234_p2, %p233_p0  ;;  %p10687_p6 = por %p240_p4, %p239_p3 }
   0xa   : > { %p7503_p7 = scmp.ge.s32.totalorder %s10587_s12, 1  ;;  %p292_p8 = scmp.lt.s32.totalorder %s10587_s12, 3 }
   0xc   : > { %p293_p9 = pnand %p7503_p7, %p292_p8 }
   0xd   : > { %v9870_v0 = vld [vmem:[%s12915_s1 + $0x40] sm:$0xff] (!%p293_p9)   ;;  %s7505_s23 = sshll.u32 (!%p293_p9), %s10666_s13, 5  ;;  %v9872_v2 = vld [vmem:[%s12915_s1 + $0x48] sm:$0xff] (!%p293_p9)   ;;  %v9874_v4 = vld [vmem:[%s12915_s1 + $0x50] sm:$0xff] (!%p293_p9)   ;;  %v404_v39 = vlaneseq (!%p293_p9)  ;;  %v10589_v46 = vmov (!%p293_p9), 0   ;;  %vm10591_vm0 = vmmov (!%p293_p9), 0  }
   0xe   : > { %296 = sbr.rel (%p293_p9) target bundleno = 4371 (0x1113), region = 56  ;;  %v9871_v1 = vld [vmem:[%s12915_s1] sm:$0xff] (!%p293_p9)   ;;  %8678 = vmatprep.subr.bf16.mxu0 (!%p293_p9), %v9870_v0  ;;  %v9873_v3 = vld [vmem:[%s12915_s1 + $0x8] sm:$0xff] (!%p293_p9)   ;;  %p330_p10 = scmp.lt.s32.totalorder (!%p293_p9), %s7505_s23, 63  ;;  %v9875_v5 = vld [vmem:[%s12915_s1 + $0x10] sm:$0xff] (!%p293_p9)   ;;  %1305 = vmatprep.subr.bf16.mxu1 (!%p293_p9), %v10589_v46  ;;  %vm1757_vm1 = vcmask (!%p293_p9), 523264  }
   0xf   : > { %8679 = vmatpush3.bf16.msra.mxu0 (!%p293_p9), %v9871_v1  ;;  %v9876_v6 = vld [vmem:[%s12915_s1 + $0x58] sm:$0xff] (!%p293_p9)   ;;  %v9878_v8 = vld [vmem:[%s12915_s1 + $0x60] sm:$0xff] (!%p293_p9)   ;;  %v9880_v10 = vld [vmem:[%s12915_s1 + $0x68] sm:$0xff] (!%p293_p9)   ;;  %v10772_v42 = vshrl.u32 (!%p293_p9), %v404_v39, 7  ;;  %s326_s26 = sand.u32 (!%p293_p9), 1, %s10579_s10  }
  0x10   : > { %8680 = vmatprep.subr.bf16.mxu0 (!%p293_p9), %v9872_v2  ;;  %v9877_v7 = vld [vmem:[%s12915_s1 + $0x18] sm:$0xff] (!%p293_p9)   ;;  %v9879_v9 = vld [vmem:[%s12915_s1 + $0x20] sm:$0xff] (!%p293_p9)   ;;  %v9881_v12 = vld [vmem:[%s12915_s1 + $0x28] sm:$0xff] (!%p293_p9)   ;;  %s12873_s22 = scalar_lea.sflag (!%p293_p9), [#allocation3], %s326_s26 }
  0x11   : > { %v9882_v13 = vld [vmem:[%s12915_s1 + $0x70] sm:$0xff] (!%p293_p9)   ;;  %v9884_v15 = vld [vmem:[%s12915_s1 + $0x78] sm:$0xff] (!%p293_p9)   ;;  %v406_v45 = vsub.s32 (!%p293_p9), 0, %v10772_v42  ;;  %v338_v52 = vld [vmem:[%s12922_s8] sm:$0xff] (!%p293_p9) }
  0x12   : > { %v9883_v14 = vld [vmem:[%s12915_s1 + $0x30] sm:$0xff] (!%p293_p9)   ;;  %v9885_v16 = vld [vmem:[%s12915_s1 + $0x38] sm:$0xff] (!%p293_p9)   ;;  %v9936_v61 = vld [vmem:[%s12916_s2 + $0x4] ss:$8 sps:$4 sm:$0xff] (!%p293_p9)  }
  0x13   : > { %8681 = vmatpush3.bf16.msra.mxu0 (!%p293_p9), %v9873_v3  ;;  %v10788_v54 = vrot.slane (!%p293_p9), %v338_v52, %v406_v45  ;;  %1337 = vmatprep.mubr.bf16.mxu1 (!%p293_p9), %v9936_v61 }
  0x14   : > { %8682 = vmatprep.subr.bf16.mxu0 (!%p293_p9), %v9874_v4 }
  0x15   : > { %s12931_s23 = smov (!%p330_p10, %s7505_s23), 63 }
  0x16   : > { %s8676_s27 = sshll.u32 %s12931_s23, 3 }
  0x17   : > { %8683 = vmatpush3.bf16.msra.mxu0 %v9875_v5  ;;  %s10724_s17 = scalar_lea.vmem %s12914_s0, %s8676_s27  ;;  %s7504_s27 = sshll.u32 %s326_s26, 4 }
  0x18   : > { %8684 = vmatprep.subr.bf16.mxu0 %v9876_v6  ;;  %v9888_v11 = vld [vmem:[%s10724_s17 + $0x4] ss:$8 sps:$4 sm:$0xff]   ;;  %v9886_v17 = vld [vmem:[%s10724_s17] ss:$8 sps:$4 sm:$0xff]   ;;  %v9889_v18 = vld [vmem:[%s10724_s17 + $0x14] ss:$8 sps:$4 sm:$0xff]  }
  0x19   : > { %696 = vmatprep.mubr.bf16.mxu0 %v9888_v11  ;;  %v9891_v19 = vld [vmem:[%s10724_s17 + $0x10] ss:$8 sps:$4 sm:$0xff]   ;;  %v9892_v20 = vld [vmem:[%s10724_s17 + $0x24] ss:$8 sps:$4 sm:$0xff]   ;;  %v9894_v21 = vld [vmem:[%s10724_s17 + $0x20] ss:$8 sps:$4 sm:$0xff]  }
  0x1a   : > { %v9895_v22 = vld [vmem:[%s10724_s17 + $0x34] ss:$8 sps:$4 sm:$0xff]   ;;  %v9897_v23 = vld [vmem:[%s10724_s17 + $0x30] ss:$8 sps:$4 sm:$0xff]   ;;  %v9898_v24 = vld [vmem:[%s10724_s17 + $0x44] ss:$8 sps:$4 sm:$0xff]  }
  0x1b   : > { %8685 = vmatpush3.bf16.msra.mxu0 %v9877_v7  ;;  %v9900_v25 = vld [vmem:[%s10724_s17 + $0x40] ss:$8 sps:$4 sm:$0xff]   ;;  %v9901_v26 = vld [vmem:[%s10724_s17 + $0x54] ss:$8 sps:$4 sm:$0xff]   ;;  %v9903_v27 = vld [vmem:[%s10724_s17 + $0x50] ss:$8 sps:$4 sm:$0xff]  }
  0x1c   : > { %8686 = vmatprep.subr.bf16.mxu0 %v9878_v8  ;;  %v9904_v28 = vld [vmem:[%s10724_s17 + $0x64] ss:$8 sps:$4 sm:$0xff]   ;;  %v9906_v29 = vld [vmem:[%s10724_s17 + $0x60] ss:$8 sps:$4 sm:$0xff]   ;;  %v9907_v30 = vld [vmem:[%s10724_s17 + $0x74] ss:$8 sps:$4 sm:$0xff]  }
  0x1d   : > { %v9909_v31 = vld [vmem:[%s10724_s17 + $0x70] ss:$8 sps:$4 sm:$0xff]   ;;  %v9910_v32 = vld [vmem:[%s10724_s17 + $0x84] ss:$8 sps:$4 sm:$0xff]   ;;  %v9912_v33 = vld [vmem:[%s10724_s17 + $0x80] ss:$8 sps:$4 sm:$0xff]  }
  0x1e   : > { %v9913_v34 = vld [vmem:[%s10724_s17 + $0x94] ss:$8 sps:$4 sm:$0xff]   ;;  %v9915_v35 = vld [vmem:[%s10724_s17 + $0x90] ss:$8 sps:$4 sm:$0xff]   ;;  %v9916_v36 = vld [vmem:[%s10724_s17 + $0xa4] ss:$8 sps:$4 sm:$0xff]  }
  0x1f   : > { %8687 = vmatpush3.bf16.msra.mxu0 %v9879_v9  ;;  %v9918_v37 = vld [vmem:[%s10724_s17 + $0xa0] ss:$8 sps:$4 sm:$0xff]   ;;  %v9919_v38 = vld [vmem:[%s10724_s17 + $0xb4] ss:$8 sps:$4 sm:$0xff]   ;;  %v9921_v40 = vld [vmem:[%s10724_s17 + $0xb0] ss:$8 sps:$4 sm:$0xff]  }
  0x20   : > { %8688 = vmatprep.subr.bf16.mxu0 %v9880_v10  ;;  %v9922_v41 = vld [vmem:[%s10724_s17 + $0xc4] ss:$8 sps:$4 sm:$0xff]   ;;  %v9924_v43 = vld [vmem:[%s10724_s17 + $0xc0] ss:$8 sps:$4 sm:$0xff]   ;;  %v9925_v44 = vld [vmem:[%s10724_s17 + $0xd4] ss:$8 sps:$4 sm:$0xff]  }
  0x21   : > { %v9927_v47 = vld [vmem:[%s10724_s17 + $0xd0] ss:$8 sps:$4 sm:$0xff]   ;;  %v9928_v48 = vld [vmem:[%s10724_s17 + $0xe4] ss:$8 sps:$4 sm:$0xff]   ;;  %v9930_v49 = vld [vmem:[%s10724_s17 + $0xe0] ss:$8 sps:$4 sm:$0xff]  }
  0x22   : > { %v9931_v50 = vld [vmem:[%s10724_s17 + $0xf4] ss:$8 sps:$4 sm:$0xff]   ;;  %v9933_v51 = vld [vmem:[%s10724_s17 + $0xf0] ss:$8 sps:$4 sm:$0xff]   ;;  %s8677_s17 = sshll.u32 %s10666_s13, 8  ;;  %s328_s28 = scalar_lea.vmem [#allocation2], %s7504_s27 }
  0x23   : > { %8689 = vmatpush3.bf16.msra.mxu0 %v9881_v12  ;;  %s7438_s29 = sshll.u32 %s328_s28, 4  ;;  %s12869_s21 = scalar_lea.hbm %s12923_s9, %s8677_s17  ;;  %s12871_s29 = int_to_ptr.vmem [resolvable:$true] %s7438_s29 }
  0x24   : > { %8690 = vmatprep.subr.bf16.mxu0 %v9882_v13  ;;  %s10525_s24 = scalar_lea.vmem %s12871_s29, 256  ;;  %s10592_s13 = smov [#allocation2]  }
  0x25   : > { %p10526_p11 = scmp.ne.s32.totalorder %s12871_s29, %s10525_s24  ;;  %s10529_s23 = sshll.u32 %s10592_s13, 4  ;;  %s10530_s23 = int_to_ptr.vmem [resolvable:$false] %s10529_s23 }
  0x26   : > { %s10531_s25 = scalar_lea.vmem %s10530_s23, 512  ;;  %p10532_p0 = scmp.lt.s32.totalorder %s12871_s29, %s10530_s23 }
  0x27   : > { %8691 = vmatpush3.bf16.msra.mxu0 %v9883_v14  ;;  %p10527_p12 = pnand %p10526_p11, %p10683_p5  ;;  %p10533_p1 = scmp.lt.s32.totalorder %s10531_s25, %s10525_s24 }
  0x28   : > { %8692 = vmatprep.subr.bf16.mxu0 %v9884_v15 }
  0x29   : > { %p10528_p13 = pneg %p10527_p12  ;;  %p10534_p2 = por %p10533_p1, %p10532_p0 }
  0x2b   : > { %8693 = vmatpush3.bf16.msra.mxu0 %v9885_v16  ;;  %p10535_p3 = pnand %p10534_p2, %p10528_p13 }
  0x2e   : > { %697 = vmatmul.mubr.bf16.vlgmr.msra.gmra.mrb[0].mxu0 %v9886_v17 }
  0x2f   : > { %704 = vmatprep.mubr.bf16.mxu0 %v9889_v18 }
  0x36   : > { %705 = vmatmul.mubr.bf16.gmra.mrb[4].mxu0 %v9891_v19 }
  0x37   : > { %712 = vmatprep.mubr.bf16.mxu0 %v9892_v20 }
  0x3e   : > { %713 = vmatmul.mubr.bf16.gmra.mrb[8].mxu0 %v9894_v21 }
  0x3f   : > { %720 = vmatprep.mubr.bf16.mxu0 %v9895_v22 }
  0x46   : > { %721 = vmatmul.mubr.bf16.gmra.mrb[12].mxu0 %v9897_v23 }
  0x47   : > { %728 = vmatprep.mubr.bf16.mxu0 %v9898_v24 }
  0x4e   : > { %729 = vmatmul.mubr.bf16.gmra.mrb[16].mxu0 %v9900_v25 }
  0x4f   : > { %736 = vmatprep.mubr.bf16.mxu0 %v9901_v26 }
  0x56   : > { %737 = vmatmul.mubr.bf16.gmra.mrb[20].mxu0 %v9903_v27 }
  0x57   : > { %744 = vmatprep.mubr.bf16.mxu0 %v9904_v28 }
  0x5e   : > { %745 = vmatmul.mubr.bf16.gmra.mrb[24].mxu0 %v9906_v29 }
  0x5f   : > { %752 = vmatprep.mubr.bf16.mxu0 %v9907_v30 }
  0x66   : > { %753 = vmatmul.mubr.bf16.gmra.mrb[28].mxu0 %v9909_v31 }
  0x67   : > { %760 = vmatprep.mubr.bf16.mxu0 %v9910_v32 }
  0x6e   : > { %761 = vmatmul.mubr.bf16.gmra.mrb[32].mxu0 %v9912_v33 }
  0x6f   : > { %768 = vmatprep.mubr.bf16.mxu0 %v9913_v34 }
  0x76   : > { %769 = vmatmul.mubr.bf16.gmra.mrb[36].mxu0 %v9915_v35 }
  0x77   : > { %776 = vmatprep.mubr.bf16.mxu0 %v9916_v36 }
  0x7e   : > { %777 = vmatmul.mubr.bf16.gmra.mrb[40].mxu0 %v9918_v37 }
  0x7f   : > { %784 = vmatprep.mubr.bf16.mxu0 %v9919_v38 }
  0x86   : > { %785 = vmatmul.mubr.bf16.gmra.mrb[44].mxu0 %v9921_v40 }
  0x87   : > { %792 = vmatprep.mubr.bf16.mxu0 %v9922_v41 }
  0x8e   : > { %793 = vmatmul.mubr.bf16.gmra.mrb[48].mxu0 %v9924_v43 }
  0x8f   : > { %800 = vmatprep.mubr.bf16.mxu0 %v9925_v44 }
  0x96   : > { %801 = vmatmul.mubr.bf16.gmra.mrb[52].mxu0 %v9927_v47 }
  0x97   : > { %808 = vmatprep.mubr.bf16.mxu0 %v9928_v48 }
  0x9e   : > { %809 = vmatmul.mubr.bf16.gmra.mrb[56].mxu0 %v9930_v49 }
  0x9f   : > { %816 = vmatprep.mubr.bf16.mxu0 %v9931_v50 }
  0xa6   : > { %817 = vmatmul.mubr.bf16.gmra.mrb[60].mxu0 %v9933_v51 }
 0x101   : > { %v8694_v53 = vpop.f32.mrb[0].mxu0 }
 0x102   : > { %v8695_v55 = vpop.f32.mrb[1].mxu0 }
 0x103   : > { %v8696_v56 = vadd.f32 %v8695_v55, %v8694_v53  ;;  %v8697_v57 = vpop.f32.mrb[2].mxu0 }
 0x104   : > { %v8698_v58 = vpop.f32.mrb[3].mxu0 }
 0x105   : > { %v699_v59 = vadd.f32 %v8696_v56, %v10788_v54  ;;  %v8699_v60 = vadd.f32 %v8698_v58, %v8697_v57 }
 0x107   : > { %v702_v62 = vadd.f32 %v8699_v60, %v10788_v54  ;;  %v825_v63 = vmax.f32 %v699_v59, 0.0 }
 0x109   : > { %v826_v0 = vmax.f32 %v702_v62, 0.0  ;;  %v8700_v1 = vpop.f32.mrb[4].mxu0 }
 0x10a   : > { %v8701_v2 = vpop.f32.mrb[5].mxu0 }
 0x10b   : > { %v8702_v3 = vadd.f32 %v8701_v2, %v8700_v1  ;;  %v8703_v4 = vpop.f32.mrb[6].mxu0  ;;  %v857_v5 = vpack.c.bf16 %v826_v0, %v825_v63 }
 0x10c   : > { %v8704_v6 = vpop.f32.mrb[7].mxu0 }
 0x10d   : > { %v707_v7 = vadd.f32 %v8702_v3, %v10788_v54  ;;  %v8705_v8 = vadd.f32 %v8704_v6, %v8703_v4  ;;  %1306 = vmatpush1.bf16.msra.mxu1 %v857_v5 }
 0x10e   : > { %1307 = vmatprep.subr.bf16.mxu1 %v10589_v46 }
 0x10f   : > { %v710_v9 = vadd.f32 %v8705_v8, %v10788_v54  ;;  %v827_v10 = vmax.f32 %v707_v7, 0.0 }
 0x111   : > { %v828_v11 = vmax.f32 %v710_v9, 0.0  ;;  %v8706_v12 = vpop.f32.mrb[8].mxu0 }
 0x112   : > { %v8707_v13 = vpop.f32.mrb[9].mxu0 }
 0x113   : > { %v8708_v14 = vadd.f32 %v8707_v13, %v8706_v12  ;;  %v8709_v15 = vpop.f32.mrb[10].mxu0  ;;  %v858_v16 = vpack.c.bf16 %v828_v11, %v827_v10 }
 0x114   : > { %v8710_v17 = vpop.f32.mrb[11].mxu0 }
 0x115   : > { %v715_v18 = vadd.f32 %v8708_v14, %v10788_v54  ;;  %v8711_v19 = vadd.f32 %v8710_v17, %v8709_v15  ;;  %1308 = vmatpush1.bf16.msra.mxu1 %v858_v16 }
 0x116   : > { %1309 = vmatprep.subr.bf16.mxu1 %v10589_v46 }
 0x117   : > { %v718_v20 = vadd.f32 %v8711_v19, %v10788_v54  ;;  %v829_v21 = vmax.f32 %v715_v18, 0.0 }
 0x119   : > { %v830_v22 = vmax.f32 %v718_v20, 0.0  ;;  %v8712_v23 = vpop.f32.mrb[12].mxu0 }
 0x11a   : > { %v8713_v24 = vpop.f32.mrb[13].mxu0 }
 0x11b   : > { %v8714_v25 = vadd.f32 %v8713_v24, %v8712_v23  ;;  %v8715_v26 = vpop.f32.mrb[14].mxu0  ;;  %v859_v27 = vpack.c.bf16 %v830_v22, %v829_v21 }
 0x11c   : > { %v8716_v28 = vpop.f32.mrb[15].mxu0 }
 0x11d   : > { %v723_v29 = vadd.f32 %v8714_v25, %v10788_v54  ;;  %v8717_v30 = vadd.f32 %v8716_v28, %v8715_v26  ;;  %1310 = vmatpush1.bf16.msra.mxu1 %v859_v27 }
 0x11e   : > { %1311 = vmatprep.subr.bf16.mxu1 %v10589_v46 }
 0x11f   : > { %v726_v31 = vadd.f32 %v8717_v30, %v10788_v54  ;;  %v831_v32 = vmax.f32 %v723_v29, 0.0 }
 0x121   : > { %v832_v33 = vmax.f32 %v726_v31, 0.0  ;;  %v8718_v34 = vpop.f32.mrb[16].mxu0 }
 0x122   : > { %v8719_v35 = vpop.f32.mrb[17].mxu0 }
 0x123   : > { %v8720_v36 = vadd.f32 %v8719_v35, %v8718_v34  ;;  %v8721_v37 = vpop.f32.mrb[18].mxu0  ;;  %v860_v38 = vpack.c.bf16 %v832_v33, %v831_v32 }
 0x124   : > { %v8722_v39 = vpop.f32.mrb[19].mxu0 }
 0x125   : > { %v731_v40 = vadd.f32 %v8720_v36, %v10788_v54  ;;  %v8723_v41 = vadd.f32 %v8722_v39, %v8721_v37  ;;  %1312 = vmatpush1.bf16.msra.mxu1 %v860_v38 }
 0x126   : > { %1313 = vmatprep.subr.bf16.mxu1 %v10589_v46 }
 0x127   : > { %v734_v43 = vadd.f32 %v8723_v41, %v10788_v54  ;;  %v833_v44 = vmax.f32 %v731_v40, 0.0 }
 0x129   : > { %v834_v47 = vmax.f32 %v734_v43, 0.0  ;;  %v8724_v48 = vpop.f32.mrb[20].mxu0 }
 0x12a   : > { %v8725_v49 = vpop.f32.mrb[21].mxu0 }
 0x12b   : > { %v8726_v50 = vadd.f32 %v8725_v49, %v8724_v48  ;;  %v8727_v51 = vpop.f32.mrb[22].mxu0  ;;  %v861_v52 = vpack.c.bf16 %v834_v47, %v833_v44 }
 0x12c   : > { %v8728_v53 = vpop.f32.mrb[23].mxu0 }
 0x12d   : > { %v739_v55 = vadd.f32 %v8726_v50, %v10788_v54  ;;  %v8729_v56 = vadd.f32 %v8728_v53, %v8727_v51  ;;  %1314 = vmatpush1.bf16.msra.mxu1 %v861_v52 }
 0x12e   : > { %1315 = vmatprep.subr.bf16.mxu1 %v10589_v46 }
 0x12f   : > { %v742_v57 = vadd.f32 %v8729_v56, %v10788_v54  ;;  %v835_v58 = vmax.f32 %v739_v55, 0.0 }
 0x131   : > { %v836_v59 = vmax.f32 %v742_v57, 0.0  ;;  %v8730_v60 = vpop.f32.mrb[24].mxu0 }
 0x132   : > { %v8731_v61 = vpop.f32.mrb[25].mxu0 }
 0x133   : > { %v8732_v62 = vadd.f32 %v8731_v61, %v8730_v60  ;;  %v8733_v63 = vpop.f32.mrb[26].mxu0  ;;  %v862_v0 = vpack.c.bf16 %v836_v59, %v835_v58 }
 0x134   : > { %v8734_v1 = vpop.f32.mrb[27].mxu0 }
 0x135   : > { %v747_v2 = vadd.f32 %v8732_v62, %v10788_v54  ;;  %v8735_v3 = vadd.f32 %v8734_v1, %v8733_v63  ;;  %1316 = vmatpush1.bf16.msra.mxu1 %v862_v0 }
 0x136   : > { %1317 = vmatprep.subr.bf16.mxu1 %v10589_v46 }
 0x137   : > { %v750_v4 = vadd.f32 %v8735_v3, %v10788_v54  ;;  %v837_v5 = vmax.f32 %v747_v2, 0.0 }
 0x139   : > { %v838_v6 = vmax.f32 %v750_v4, 0.0  ;;  %v8736_v7 = vpop.f32.mrb[28].mxu0 }
 0x13a   : > { %v8737_v8 = vpop.f32.mrb[29].mxu0 }
 0x13b   : > { %v8738_v9 = vadd.f32 %v8737_v8, %v8736_v7  ;;  %v8739_v10 = vpop.f32.mrb[30].mxu0  ;;  %v863_v11 = vpack.c.bf16 %v838_v6, %v837_v5 }
 0x13c   : > { %v8740_v12 = vpop.f32.mrb[31].mxu0 }
 0x13d   : > { %v755_v13 = vadd.f32 %v8738_v9, %v10788_v54  ;;  %v8741_v14 = vadd.f32 %v8740_v12, %v8739_v10  ;;  %1318 = vmatpush1.bf16.msra.mxu1 %v863_v11 }
 0x13e   : > { %1319 = vmatprep.subr.bf16.mxu1 %v10589_v46 }
 0x13f   : > { %v758_v15 = vadd.f32 %v8741_v14, %v10788_v54  ;;  %v839_v16 = vmax.f32 %v755_v13, 0.0 }
 0x141   : > { %v840_v17 = vmax.f32 %v758_v15, 0.0  ;;  %v8742_v18 = vpop.f32.mrb[32].mxu0 }
 0x142   : > { %v8743_v19 = vpop.f32.mrb[33].mxu0 }
 0x143   : > { %v8744_v20 = vadd.f32 %v8743_v19, %v8742_v18  ;;  %v8745_v21 = vpop.f32.mrb[34].mxu0  ;;  %v864_v22 = vpack.c.bf16 %v840_v17, %v839_v16 }
 0x144   : > { %v8746_v23 = vpop.f32.mrb[35].mxu0 }
 0x145   : > { %v763_v24 = vadd.f32 %v8744_v20, %v10788_v54  ;;  %v8747_v25 = vadd.f32 %v8746_v23, %v8745_v21  ;;  %1320 = vmatpush1.bf16.msra.mxu1 %v864_v22 }
 0x146   : > { %1321 = vmatprep.subr.bf16.mxu1 %v10589_v46 }
 0x147   : > { %v766_v26 = vadd.f32 %v8747_v25, %v10788_v54  ;;  %v841_v27 = vmax.f32 %v763_v24, 0.0 }
 0x149   : > { %v842_v28 = vmax.f32 %v766_v26, 0.0  ;;  %v8748_v29 = vpop.f32.mrb[36].mxu0 }
 0x14a   : > { %v8749_v30 = vpop.f32.mrb[37].mxu0 }
 0x14b   : > { %v8750_v31 = vadd.f32 %v8749_v30, %v8748_v29  ;;  %v8751_v32 = vpop.f32.mrb[38].mxu0  ;;  %v865_v33 = vpack.c.bf16 %v842_v28, %v841_v27 }
 0x14c   : > { %v8752_v34 = vpop.f32.mrb[39].mxu0 }
 0x14d   : > { %v771_v35 = vadd.f32 %v8750_v31, %v10788_v54  ;;  %v8753_v36 = vadd.f32 %v8752_v34, %v8751_v32  ;;  %1322 = vmatpush1.bf16.msra.mxu1 %v865_v33 }
 0x14e   : > { %1323 = vmatprep.subr.bf16.mxu1 %v10589_v46 }
 0x14f   : > { %v774_v37 = vadd.f32 %v8753_v36, %v10788_v54  ;;  %v843_v38 = vmax.f32 %v771_v35, 0.0 }
 0x151   : > { %v844_v39 = vmax.f32 %v774_v37, 0.0  ;;  %v8754_v40 = vpop.f32.mrb[40].mxu0 }
 0x152   : > { %v8755_v41 = vpop.f32.mrb[41].mxu0 }
 0x153   : > { %v8756_v43 = vadd.f32 %v8755_v41, %v8754_v40  ;;  %v8757_v44 = vpop.f32.mrb[42].mxu0  ;;  %v866_v47 = vpack.c.bf16 %v844_v39, %v843_v38 }
 0x154   : > { %v8758_v48 = vpop.f32.mrb[43].mxu0 }
 0x155   : > { %v779_v49 = vadd.f32 %v8756_v43, %v10788_v54  ;;  %v8759_v50 = vadd.f32 %v8758_v48, %v8757_v44  ;;  %1324 = vmatpush1.bf16.msra.mxu1 %v866_v47 }
 0x156   : > { %1325 = vmatprep.subr.bf16.mxu1 %v10589_v46 }
 0x157   : > { %v782_v51 = vadd.f32 %v8759_v50, %v10788_v54  ;;  %v845_v52 = vmax.f32 %v779_v49, 0.0  ;;  %v9934_v49 = vld [vmem:[%s12916_s2] ss:$8 sps:$4 sm:$0xff]  }
 0x159   : > { %v846_v53 = vmax.f32 %v782_v51, 0.0  ;;  %v8760_v55 = vpop.f32.mrb[44].mxu0  ;;  %v9937_v51 = vld [vmem:[%s12916_s2 + $0x14] ss:$8 sps:$4 sm:$0xff]  }
 0x15a   : > { %v8761_v56 = vpop.f32.mrb[45].mxu0 }
 0x15b   : > { %v8762_v57 = vadd.f32 %v8761_v56, %v8760_v55  ;;  %v8763_v58 = vpop.f32.mrb[46].mxu0  ;;  %v867_v59 = vpack.c.bf16 %v846_v53, %v845_v52  ;;  %v9942_v52 = vld [vmem:[%s12916_s2 + $0x20] ss:$8 sps:$4 sm:$0xff]   ;;  %v9943_v53 = vld [vmem:[%s12916_s2 + $0x34] ss:$8 sps:$4 sm:$0xff]  }
 0x15c   : > { %v8764_v60 = vpop.f32.mrb[47].mxu0  ;;  %v9945_v55 = vld [vmem:[%s12916_s2 + $0x30] ss:$8 sps:$4 sm:$0xff]   ;;  %v9946_v56 = vld [vmem:[%s12916_s2 + $0x44] ss:$8 sps:$4 sm:$0xff]  }
 0x15d   : > { %v787_v61 = vadd.f32 %v8762_v57, %v10788_v54  ;;  %v8765_v62 = vadd.f32 %v8764_v60, %v8763_v58  ;;  %1326 = vmatpush1.bf16.msra.mxu1 %v867_v59  ;;  %v9948_v57 = vld [vmem:[%s12916_s2 + $0x40] ss:$8 sps:$4 sm:$0xff]   ;;  %v9949_v58 = vld [vmem:[%s12916_s2 + $0x54] ss:$8 sps:$4 sm:$0xff]   ;;  %v9951_v59 = vld [vmem:[%s12916_s2 + $0x50] ss:$8 sps:$4 sm:$0xff]  }
 0x15e   : > { %1327 = vmatprep.subr.bf16.mxu1 %v10589_v46  ;;  %v9952_v60 = vld [vmem:[%s12916_s2 + $0x64] ss:$8 sps:$4 sm:$0xff]  }
 0x15f   : > { %v790_v63 = vadd.f32 %v8765_v62, %v10788_v54  ;;  %v847_v0 = vmax.f32 %v787_v61, 0.0  ;;  %v9954_v61 = vld [vmem:[%s12916_s2 + $0x60] ss:$8 sps:$4 sm:$0xff]   ;;  %v9955_v62 = vld [vmem:[%s12916_s2 + $0x74] ss:$8 sps:$4 sm:$0xff]  }
 0x161   : > { %v848_v1 = vmax.f32 %v790_v63, 0.0  ;;  %v8766_v2 = vpop.f32.mrb[48].mxu0  ;;  %v9957_v63 = vld [vmem:[%s12916_s2 + $0x70] ss:$8 sps:$4 sm:$0xff]  }
 0x162   : > { %v8767_v3 = vpop.f32.mrb[49].mxu0 }
 0x163   : > { %v8768_v4 = vadd.f32 %v8767_v3, %v8766_v2  ;;  %v8769_v5 = vpop.f32.mrb[50].mxu0  ;;  %v868_v6 = vpack.c.bf16 %v848_v1, %v847_v0  ;;  %v9958_v0 = vld [vmem:[%s12916_s2 + $0x84] ss:$8 sps:$4 sm:$0xff]   ;;  %v9960_v1 = vld [vmem:[%s12916_s2 + $0x80] ss:$8 sps:$4 sm:$0xff]  }
 0x164   : > { %v8770_v7 = vpop.f32.mrb[51].mxu0  ;;  %v9961_v2 = vld [vmem:[%s12916_s2 + $0x94] ss:$8 sps:$4 sm:$0xff]   ;;  %v9963_v3 = vld [vmem:[%s12916_s2 + $0x90] ss:$8 sps:$4 sm:$0xff]  }
 0x165   : > { %v795_v8 = vadd.f32 %v8768_v4, %v10788_v54  ;;  %v8771_v9 = vadd.f32 %v8770_v7, %v8769_v5  ;;  %1328 = vmatpush1.bf16.msra.mxu1 %v868_v6  ;;  %v9964_v4 = vld [vmem:[%s12916_s2 + $0xa4] ss:$8 sps:$4 sm:$0xff]   ;;  %v9966_v5 = vld [vmem:[%s12916_s2 + $0xa0] ss:$8 sps:$4 sm:$0xff]   ;;  %v9967_v6 = vld [vmem:[%s12916_s2 + $0xb4] ss:$8 sps:$4 sm:$0xff]  }
 0x166   : > { %1329 = vmatprep.subr.bf16.mxu1 %v10589_v46  ;;  %v9969_v7 = vld [vmem:[%s12916_s2 + $0xb0] ss:$8 sps:$4 sm:$0xff]  }
 0x167   : > { %v798_v10 = vadd.f32 %v8771_v9, %v10788_v54  ;;  %v849_v11 = vmax.f32 %v795_v8, 0.0  ;;  %v9970_v8 = vld [vmem:[%s12916_s2 + $0xc4] ss:$8 sps:$4 sm:$0xff]   ;;  %v9972_v9 = vld [vmem:[%s12916_s2 + $0xc0] ss:$8 sps:$4 sm:$0xff]  }
 0x169   : > { %v850_v12 = vmax.f32 %v798_v10, 0.0  ;;  %v8772_v13 = vpop.f32.mrb[52].mxu0  ;;  %v9973_v10 = vld [vmem:[%s12916_s2 + $0xd4] ss:$8 sps:$4 sm:$0xff]  }
 0x16a   : > { %v8773_v14 = vpop.f32.mrb[53].mxu0 }
 0x16b   : > { %v8774_v15 = vadd.f32 %v8773_v14, %v8772_v13  ;;  %v8775_v16 = vpop.f32.mrb[54].mxu0  ;;  %v869_v17 = vpack.c.bf16 %v850_v12, %v849_v11  ;;  %v9975_v11 = vld [vmem:[%s12916_s2 + $0xd0] ss:$8 sps:$4 sm:$0xff]   ;;  %v9976_v12 = vld [vmem:[%s12916_s2 + $0xe4] ss:$8 sps:$4 sm:$0xff]  }
 0x16c   : > { %v8776_v18 = vpop.f32.mrb[55].mxu0  ;;  %v9978_v13 = vld [vmem:[%s12916_s2 + $0xe0] ss:$8 sps:$4 sm:$0xff]   ;;  %v9979_v14 = vld [vmem:[%s12916_s2 + $0xf4] ss:$8 sps:$4 sm:$0xff]  }
 0x16d   : > { %v803_v19 = vadd.f32 %v8774_v15, %v10788_v54  ;;  %v8777_v20 = vadd.f32 %v8776_v18, %v8775_v16  ;;  %1330 = vmatpush1.bf16.msra.mxu1 %v869_v17  ;;  %v9981_v15 = vld [vmem:[%s12916_s2 + $0xf0] ss:$8 sps:$4 sm:$0xff]   ;;  %v9982_v16 = vld [vmem:[%s12916_s2 + $0x104] ss:$8 sps:$4 sm:$0xff]   ;;  %v9984_v17 = vld [vmem:[%s12916_s2 + $0x100] ss:$8 sps:$4 sm:$0xff]  }
 0x16e   : > { %1331 = vmatprep.subr.bf16.mxu1 %v10589_v46  ;;  %v9985_v18 = vld [vmem:[%s12916_s2 + $0x114] ss:$8 sps:$4 sm:$0xff]  }
 0x16f   : > { %v806_v21 = vadd.f32 %v8777_v20, %v10788_v54  ;;  %v851_v22 = vmax.f32 %v803_v19, 0.0  ;;  %v9987_v19 = vld [vmem:[%s12916_s2 + $0x110] ss:$8 sps:$4 sm:$0xff]   ;;  %v9988_v20 = vld [vmem:[%s12916_s2 + $0x124] ss:$8 sps:$4 sm:$0xff]  }
 0x171   : > { %v852_v23 = vmax.f32 %v806_v21, 0.0  ;;  %v8778_v24 = vpop.f32.mrb[56].mxu0  ;;  %v9990_v21 = vld [vmem:[%s12916_s2 + $0x120] ss:$8 sps:$4 sm:$0xff]  }
 0x172   : > { %v8779_v25 = vpop.f32.mrb[57].mxu0 }
 0x173   : > { %v8780_v26 = vadd.f32 %v8779_v25, %v8778_v24  ;;  %v8781_v27 = vpop.f32.mrb[58].mxu0  ;;  %v870_v28 = vpack.c.bf16 %v852_v23, %v851_v22  ;;  %v9991_v22 = vld [vmem:[%s12916_s2 + $0x134] ss:$8 sps:$4 sm:$0xff]   ;;  %v9993_v23 = vld [vmem:[%s12916_s2 + $0x130] ss:$8 sps:$4 sm:$0xff]  }
 0x174   : > { %v8782_v29 = vpop.f32.mrb[59].mxu0  ;;  %v9994_v24 = vld [vmem:[%s12916_s2 + $0x144] ss:$8 sps:$4 sm:$0xff]   ;;  %v9996_v25 = vld [vmem:[%s12916_s2 + $0x140] ss:$8 sps:$4 sm:$0xff]  }
 0x175   : > { %v811_v30 = vadd.f32 %v8780_v26, %v10788_v54  ;;  %v8783_v31 = vadd.f32 %v8782_v29, %v8781_v27  ;;  %1332 = vmatpush1.bf16.msra.mxu1 %v870_v28  ;;  %v9997_v26 = vld [vmem:[%s12916_s2 + $0x154] ss:$8 sps:$4 sm:$0xff]   ;;  %v9999_v27 = vld [vmem:[%s12916_s2 + $0x150] ss:$8 sps:$4 sm:$0xff]   ;;  %v10000_v28 = vld [vmem:[%s12916_s2 + $0x164] ss:$8 sps:$4 sm:$0xff]  }
 0x176   : > { %1333 = vmatprep.subr.bf16.mxu1 %v10589_v46  ;;  %v10002_v29 = vld [vmem:[%s12916_s2 + $0x160] ss:$8 sps:$4 sm:$0xff]  }
 0x177   : > { %v814_v32 = vadd.f32 %v8783_v31, %v10788_v54  ;;  %v853_v33 = vmax.f32 %v811_v30, 0.0  ;;  %v10003_v30 = vld [vmem:[%s12916_s2 + $0x174] ss:$8 sps:$4 sm:$0xff]   ;;  %v10005_v31 = vld [vmem:[%s12916_s2 + $0x170] ss:$8 sps:$4 sm:$0xff]  }
 0x179   : > { %v854_v34 = vmax.f32 %v814_v32, 0.0  ;;  %v8784_v35 = vpop.f32.mrb[60].mxu0  ;;  %v10006_v32 = vld [vmem:[%s12916_s2 + $0x184] ss:$8 sps:$4 sm:$0xff]  }
 0x17a   : > { %v8785_v36 = vpop.f32.mrb[61].mxu0 }
 0x17b   : > { %v8786_v37 = vadd.f32 %v8785_v36, %v8784_v35  ;;  %v8787_v38 = vpop.f32.mrb[62].mxu0  ;;  %v871_v39 = vpack.c.bf16 %v854_v34, %v853_v33  ;;  %v10008_v33 = vld [vmem:[%s12916_s2 + $0x180] ss:$8 sps:$4 sm:$0xff]   ;;  %v10009_v34 = vld [vmem:[%s12916_s2 + $0x194] ss:$8 sps:$4 sm:$0xff]  }
 0x17c   : > { %v8788_v40 = vpop.f32.mrb[63].mxu0  ;;  %v10011_v35 = vld [vmem:[%s12916_s2 + $0x190] ss:$8 sps:$4 sm:$0xff]   ;;  %v10012_v36 = vld [vmem:[%s12916_s2 + $0x1a4] ss:$8 sps:$4 sm:$0xff]  }
 0x17d   : > { %v819_v41 = vadd.f32 %v8786_v37, %v10788_v54  ;;  %v8789_v43 = vadd.f32 %v8788_v40, %v8787_v38  ;;  %1334 = vmatpush1.bf16.msra.mxu1 %v871_v39  ;;  %v10014_v37 = vld [vmem:[%s12916_s2 + $0x1a0] ss:$8 sps:$4 sm:$0xff]   ;;  %v10015_v38 = vld [vmem:[%s12916_s2 + $0x1b4] ss:$8 sps:$4 sm:$0xff]  }
 0x17e   : > { %1335 = vmatprep.subr.bf16.mxu1 %v10589_v46  ;;  %v9939_v46 = vld [vmem:[%s12916_s2 + $0x10] ss:$8 sps:$4 sm:$0xff]  }
 0x17f   : > { %v822_v44 = vadd.f32 %v8789_v43, %v10788_v54  ;;  %v855_v47 = vmax.f32 %v819_v41, 0.0  ;;  %v9940_v54 = vld [vmem:[%s12916_s2 + $0x24] ss:$8 sps:$4 sm:$0xff]   ;;  %v10017_v41 = vld [vmem:[%s12916_s2 + $0x1b0] ss:$8 sps:$4 sm:$0xff]  }
 0x181   : > { %v856_v48 = vmax.f32 %v822_v44, 0.0  ;;  %v10018_v44 = vld [vmem:[%s12916_s2 + $0x1c4] ss:$8 sps:$4 sm:$0xff]  }
 0x183   : > { %v872_v50 = vpack.c.bf16 %v856_v48, %v855_v47 }
 0x185   : > { %1336 = vmatpush1.bf16.msra.mxu1 %v872_v50  ;;  %v10020_v50 = vld [vmem:[%s12916_s2 + $0x1c0] ss:$8 sps:$4 sm:$0xff]  }
 0x188   : > { %1338 = vmatmul.mubr.bf16.vlgmr.msra.gmra.mrb[0].mxu1 %v9934_v49 }
 0x189   : > { %1345 = vmatprep.mubr.bf16.mxu1 %v9937_v51 }
 0x190   : > { %1346 = vmatmul.mubr.bf16.gmra.mrb[4].mxu1 %v9939_v46  ;;  %v10021_v46 = vld [vmem:[%s12916_s2 + $0x1d4] ss:$8 sps:$4 sm:$0xff]  }
 0x191   : > { %1353 = vmatprep.mubr.bf16.mxu1 %v9940_v54 }
 0x198   : > { %1354 = vmatmul.mubr.bf16.gmra.mrb[8].mxu1 %v9942_v52 }
 0x199   : > { %1361 = vmatprep.mubr.bf16.mxu1 %v9943_v53 }
 0x1a0   : > { %1362 = vmatmul.mubr.bf16.gmra.mrb[12].mxu1 %v9945_v55  ;;  %v10023_v55 = vld [vmem:[%s12916_s2 + $0x1d0] ss:$8 sps:$4 sm:$0xff]  }
 0x1a1   : > { %1369 = vmatprep.mubr.bf16.mxu1 %v9946_v56 }
 0x1a8   : > { %1370 = vmatmul.mubr.bf16.gmra.mrb[16].mxu1 %v9948_v57  ;;  %v10024_v57 = vld [vmem:[%s12916_s2 + $0x1e4] ss:$8 sps:$4 sm:$0xff]  }
 0x1a9   : > { %1377 = vmatprep.mubr.bf16.mxu1 %v9949_v58 }
 0x1b0   : > { %1378 = vmatmul.mubr.bf16.gmra.mrb[20].mxu1 %v9951_v59 }
 0x1b1   : > { %1385 = vmatprep.mubr.bf16.mxu1 %v9952_v60 }
 0x1b8   : > { %1386 = vmatmul.mubr.bf16.gmra.mrb[24].mxu1 %v9954_v61  ;;  %v10026_v61 = vld [vmem:[%s12916_s2 + $0x1e0] ss:$8 sps:$4 sm:$0xff]  }
 0x1b9   : > { %1393 = vmatprep.mubr.bf16.mxu1 %v9955_v62 }
 0x1c0   : > { %1394 = vmatmul.mubr.bf16.gmra.mrb[28].mxu1 %v9957_v63  ;;  %v10027_v63 = vld [vmem:[%s12916_s2 + $0x1f4] ss:$8 sps:$4 sm:$0xff]  }
 0x1c1   : > { %1401 = vmatprep.mubr.bf16.mxu1 %v9958_v0 }
 0x1c8   : > { %1402 = vmatmul.mubr.bf16.gmra.mrb[32].mxu1 %v9960_v1 }
 0x1c9   : > { %1409 = vmatprep.mubr.bf16.mxu1 %v9961_v2 }
 0x1d0   : > { %1410 = vmatmul.mubr.bf16.gmra.mrb[36].mxu1 %v9963_v3 }
 0x1d1   : > { %1417 = vmatprep.mubr.bf16.mxu1 %v9964_v4  ;;  %v10029_v4 = vld [vmem:[%s12916_s2 + $0x1f0] ss:$8 sps:$4 sm:$0xff]  }
 0x1d8   : > { %1418 = vmatmul.mubr.bf16.gmra.mrb[40].mxu1 %v9966_v5 }
 0x1d9   : > { %1425 = vmatprep.mubr.bf16.mxu1 %v9967_v6  ;;  %v10030_v6 = vld [vmem:[%s12916_s2 + $0x204] ss:$8 sps:$4 sm:$0xff]  }
 0x1e0   : > { %1426 = vmatmul.mubr.bf16.gmra.mrb[44].mxu1 %v9969_v7 }
 0x1e1   : > { %1433 = vmatprep.mubr.bf16.mxu1 %v9970_v8 }
 0x1e8   : > { %1434 = vmatmul.mubr.bf16.gmra.mrb[48].mxu1 %v9972_v9 }
 0x1e9   : > { %1441 = vmatprep.mubr.bf16.mxu1 %v9973_v10 }
 0x1f0   : > { %1442 = vmatmul.mubr.bf16.gmra.mrb[52].mxu1 %v9975_v11 }
 0x1f1   : > { %1449 = vmatprep.mubr.bf16.mxu1 %v9976_v12  ;;  %v10032_v12 = vld [vmem:[%s12916_s2 + $0x200] ss:$8 sps:$4 sm:$0xff]  }
 0x1f8   : > { %1450 = vmatmul.mubr.bf16.gmra.mrb[56].mxu1 %v9978_v13 }
 0x1f9   : > { %1457 = vmatprep.mubr.bf16.mxu1 %v9979_v14  ;;  %v10033_v14 = vld [vmem:[%s12916_s2 + $0x214] ss:$8 sps:$4 sm:$0xff]  }
 0x200   : > { %1458 = vmatmul.mubr.bf16.gmra.mrb[60].mxu1 %v9981_v15 }
 0x201   : > { %1465 = vmatprep.mubr.bf16.mxu1 %v9982_v16 }
 0x208   : > { %1466 = vmatmul.mubr.bf16.gmra.mrb[64].mxu1 %v9984_v17 }
 0x209   : > { %1473 = vmatprep.mubr.bf16.mxu1 %v9985_v18 }
 0x210   : > { %1474 = vmatmul.mubr.bf16.gmra.mrb[68].mxu1 %v9987_v19 }
 0x211   : > { %1481 = vmatprep.mubr.bf16.mxu1 %v9988_v20  ;;  %v10035_v20 = vld [vmem:[%s12916_s2 + $0x210] ss:$8 sps:$4 sm:$0xff]  }
 0x218   : > { %1482 = vmatmul.mubr.bf16.gmra.mrb[72].mxu1 %v9990_v21 }
 0x219   : > { %1489 = vmatprep.mubr.bf16.mxu1 %v9991_v22  ;;  %v10036_v22 = vld [vmem:[%s12916_s2 + $0x224] ss:$8 sps:$4 sm:$0xff]  }
 0x220   : > { %1490 = vmatmul.mubr.bf16.gmra.mrb[76].mxu1 %v9993_v23 }
 0x221   : > { %1497 = vmatprep.mubr.bf16.mxu1 %v9994_v24 }
 0x228   : > { %1498 = vmatmul.mubr.bf16.gmra.mrb[80].mxu1 %v9996_v25 }
 0x229   : > { %1505 = vmatprep.mubr.bf16.mxu1 %v9997_v26 }
 0x230   : > { %1506 = vmatmul.mubr.bf16.gmra.mrb[84].mxu1 %v9999_v27 }
 0x231   : > { %1513 = vmatprep.mubr.bf16.mxu1 %v10000_v28  ;;  %v10038_v28 = vld [vmem:[%s12916_s2 + $0x220] ss:$8 sps:$4 sm:$0xff]  }
 0x238   : > { %1514 = vmatmul.mubr.bf16.gmra.mrb[88].mxu1 %v10002_v29 }
 0x239   : > { %1521 = vmatprep.mubr.bf16.mxu1 %v10003_v30  ;;  %v10039_v30 = vld [vmem:[%s12916_s2 + $0x234] ss:$8 sps:$4 sm:$0xff]  }
 0x240   : > { %1522 = vmatmul.mubr.bf16.gmra.mrb[92].mxu1 %v10005_v31 }
 0x241   : > { %1529 = vmatprep.mubr.bf16.mxu1 %v10006_v32 }
 0x248   : > { %1530 = vmatmul.mubr.bf16.gmra.mrb[96].mxu1 %v10008_v33 }
 0x249   : > { %1537 = vmatprep.mubr.bf16.mxu1 %v10009_v34 }
 0x250   : > { %1538 = vmatmul.mubr.bf16.gmra.mrb[100].mxu1 %v10011_v35  ;;  %v10041_v35 = vld [vmem:[%s12916_s2 + $0x230] ss:$8 sps:$4 sm:$0xff]  }
 0x251   : > { %1545 = vmatprep.mubr.bf16.mxu1 %v10012_v36 }
 0x258   : > { %1546 = vmatmul.mubr.bf16.gmra.mrb[104].mxu1 %v10014_v37 }
 0x259   : > { %1553 = vmatprep.mubr.bf16.mxu1 %v10015_v38 }
 0x25b   : > { %v11002_v39 = vpop.f32.mrb[0].mxu1 }
 0x25c   : > { %v1341_v40 = vpop.f32.mrb[1].mxu1 }
 0x25d   : > { %v11007_v43 = vpop.f32.mrb[2].mxu1 }
 0x25e   : > { %v1344_v47 = vpop.f32.mrb[3].mxu1 }
 0x260   : > { %1554 = vmatmul.mubr.bf16.gmra.mrb[108].mxu1 %v10017_v41 }
 0x261   : > { %1561 = vmatprep.mubr.bf16.mxu1 %v10018_v44 }
 0x263   : > { %v11012_v48 = vpop.f32.mrb[4].mxu1 }
 0x264   : > { %v1349_v49 = vpop.f32.mrb[5].mxu1 }
 0x265   : > { %v11017_v51 = vpop.f32.mrb[6].mxu1 }
 0x266   : > { %v1352_v54 = vpop.f32.mrb[7].mxu1 }
 0x268   : > { %1562 = vmatmul.mubr.bf16.gmra.mrb[112].mxu1 %v10020_v50 }
 0x269   : > { %1569 = vmatprep.mubr.bf16.mxu1 %v10021_v46 }
 0x26b   : > { %v11022_v52 = vpop.f32.mrb[8].mxu1 }
 0x26c   : > { %v1357_v53 = vpop.f32.mrb[9].mxu1 }
 0x26d   : > { %v11027_v56 = vpop.f32.mrb[10].mxu1 }
 0x26e   : > { %v1360_v58 = vpop.f32.mrb[11].mxu1 }
 0x270   : > { %1570 = vmatmul.mubr.bf16.gmra.mrb[116].mxu1 %v10023_v55 }
 0x271   : > { %1577 = vmatprep.mubr.bf16.mxu1 %v10024_v57 }
 0x273   : > { %v11032_v59 = vpop.f32.mrb[12].mxu1 }
 0x274   : > { %v1365_v60 = vpop.f32.mrb[13].mxu1 }
 0x275   : > { %v11037_v62 = vpop.f32.mrb[14].mxu1 }
 0x276   : > { %v1368_v0 = vpop.f32.mrb[15].mxu1 }
 0x278   : > { %1578 = vmatmul.mubr.bf16.gmra.mrb[120].mxu1 %v10026_v61 }
 0x279   : > { %1585 = vmatprep.mubr.bf16.mxu1 %v10027_v63 }
 0x27b   : > { %v1371_v1 = vpop.f32.mrb[16].mxu1 }
 0x27c   : > { %v1626_v2 = vmax.f32 %v11002_v39, %v1371_v1  ;;  %v1373_v3 = vpop.f32.mrb[17].mxu1 }
 0x27d   : > { %v1374_v5 = vpop.f32.mrb[18].mxu1 }
 0x27e   : > { %v1627_v7 = vmax.f32 %v11007_v43, %v1374_v5  ;;  %v1376_v8 = vpop.f32.mrb[19].mxu1 }
 0x280   : > { %1586 = vmatmul.mubr.bf16.gmra.mrb[124].mxu1 %v10029_v4 }
 0x281   : > { %1593 = vmatprep.mubr.bf16.mxu1 %v10030_v6 }
 0x283   : > { %v1379_v9 = vpop.f32.mrb[20].mxu1 }
 0x284   : > { %v1628_v10 = vmax.f32 %v11012_v48, %v1379_v9  ;;  %v1381_v11 = vpop.f32.mrb[21].mxu1 }
 0x285   : > { %v1382_v13 = vpop.f32.mrb[22].mxu1 }
 0x286   : > { %v1629_v15 = vmax.f32 %v11017_v51, %v1382_v13  ;;  %v1384_v16 = vpop.f32.mrb[23].mxu1 }
 0x288   : > { %1594 = vmatmul.mubr.bf16.gmra.mrb[128].mxu1 %v10032_v12 }
 0x289   : > { %1601 = vmatprep.mubr.bf16.mxu1 %v10033_v14 }
 0x28b   : > { %v1387_v17 = vpop.f32.mrb[24].mxu1 }
 0x28c   : > { %v1630_v18 = vmax.f32 %v11022_v52, %v1387_v17  ;;  %v1389_v19 = vpop.f32.mrb[25].mxu1 }
 0x28d   : > { %v1390_v21 = vpop.f32.mrb[26].mxu1 }
 0x28e   : > { %v1631_v23 = vmax.f32 %v11027_v56, %v1390_v21  ;;  %v1392_v24 = vpop.f32.mrb[27].mxu1 }
 0x290   : > { %1602 = vmatmul.mubr.bf16.gmra.mrb[132].mxu1 %v10035_v20 }
 0x291   : > { %1609 = vmatprep.mubr.bf16.mxu1 %v10036_v22 }
 0x293   : > { %v1395_v25 = vpop.f32.mrb[28].mxu1 }
 0x294   : > { %v1632_v26 = vmax.f32 %v11032_v59, %v1395_v25  ;;  %v1397_v27 = vpop.f32.mrb[29].mxu1 }
 0x295   : > { %v1398_v29 = vpop.f32.mrb[30].mxu1 }
 0x296   : > { %v1633_v31 = vmax.f32 %v11037_v62, %v1398_v29  ;;  %v1400_v32 = vpop.f32.mrb[31].mxu1 }
 0x298   : > { %1610 = vmatmul.mubr.bf16.gmra.mrb[136].mxu1 %v10038_v28 }
 0x299   : > { %1617 = vmatprep.mubr.bf16.mxu1 %v10039_v30 }
 0x29b   : > { %v1403_v33 = vpop.f32.mrb[32].mxu1 }
 0x29c   : > { %v1405_v34 = vpop.f32.mrb[33].mxu1  ;;  %v1634_v36 = vmax.f32 %v1626_v2, %v1403_v33 }
 0x29d   : > { %v1406_v37 = vpop.f32.mrb[34].mxu1 }
 0x29e   : > { %v1408_v38 = vpop.f32.mrb[35].mxu1  ;;  %v1635_v39 = vmax.f32 %v1627_v7, %v1406_v37 }
 0x2a0   : > { %1618 = vmatmul.mubr.bf16.gmra.mrb[140].mxu1 %v10041_v35 }
 0x2a3   : > { %v1411_v40 = vpop.f32.mrb[36].mxu1 }
 0x2a4   : > { %v1413_v41 = vpop.f32.mrb[37].mxu1  ;;  %v1636_v43 = vmax.f32 %v1628_v10, %v1411_v40 }
 0x2a5   : > { %v1414_v44 = vpop.f32.mrb[38].mxu1 }
 0x2a6   : > { %v1416_v47 = vpop.f32.mrb[39].mxu1  ;;  %v1637_v48 = vmax.f32 %v1629_v15, %v1414_v44 }
 0x2ab   : > { %v1419_v49 = vpop.f32.mrb[40].mxu1 }
 0x2ac   : > { %v1421_v50 = vpop.f32.mrb[41].mxu1  ;;  %v1638_v51 = vmax.f32 %v1630_v18, %v1419_v49 }
 0x2ad   : > { %v1422_v46 = vpop.f32.mrb[42].mxu1 }
 0x2ae   : > { %v1424_v54 = vpop.f32.mrb[43].mxu1  ;;  %v1639_v52 = vmax.f32 %v1631_v23, %v1422_v46 }
 0x2b3   : > { %v1427_v53 = vpop.f32.mrb[44].mxu1 }
 0x2b4   : > { %v1429_v55 = vpop.f32.mrb[45].mxu1  ;;  %v1640_v56 = vmax.f32 %v1632_v26, %v1427_v53  ;;  %v10590_v26 = vmov 0.0  }
 0x2b5   : > { %v1430_v57 = vpop.f32.mrb[46].mxu1  ;;  %9444 = vmatprep.subr.bf16.mxu0 %v10590_v26  ;;  %9488 = vmatprep.subr.bf16.mxu1 %v10590_v26 }
 0x2b6   : > { %v1432_v58 = vpop.f32.mrb[47].mxu1  ;;  %v1641_v59 = vmax.f32 %v1633_v31, %v1430_v57  ;;  %9452 = vmatprep.mubr.msk.bf16.mxu0 %vm10591_vm0, %v10590_v26  ;;  %9504 = vmatprep.mubr.msk.bf16.mxu1 %vm10591_vm0, %v10590_v26 }
 0x2bb   : > { %v1435_v60 = vpop.f32.mrb[48].mxu1 }
 0x2bc   : > { %v1642_v61 = vmax.f32 %v1634_v36, %v1435_v60  ;;  %v1437_v62 = vpop.f32.mrb[49].mxu1 }
 0x2bd   : > { %v1438_v63 = vpop.f32.mrb[50].mxu1 }
 0x2be   : > { %v1643_v0 = vmax.f32 %v1635_v39, %v1438_v63  ;;  %v1440_v1 = vpop.f32.mrb[51].mxu1 }
 0x2c3   : > { %v1443_v2 = vpop.f32.mrb[52].mxu1 }
 0x2c4   : > { %v1644_v3 = vmax.f32 %v1636_v43, %v1443_v2  ;;  %v1445_v4 = vpop.f32.mrb[53].mxu1 }
 0x2c5   : > { %v1446_v5 = vpop.f32.mrb[54].mxu1 }
 0x2c6   : > { %v1645_v6 = vmax.f32 %v1637_v48, %v1446_v5  ;;  %v1448_v7 = vpop.f32.mrb[55].mxu1 }
 0x2cb   : > { %v1451_v8 = vpop.f32.mrb[56].mxu1 }
 0x2cc   : > { %v1646_v9 = vmax.f32 %v1638_v51, %v1451_v8  ;;  %v1453_v10 = vpop.f32.mrb[57].mxu1 }
 0x2cd   : > { %v1454_v11 = vpop.f32.mrb[58].mxu1 }
 0x2ce   : > { %v1647_v12 = vmax.f32 %v1639_v52, %v1454_v11  ;;  %v1456_v13 = vpop.f32.mrb[59].mxu1 }
 0x2d3   : > { %v1459_v14 = vpop.f32.mrb[60].mxu1 }
 0x2d4   : > { %v1648_v15 = vmax.f32 %v1640_v56, %v1459_v14  ;;  %v1461_v16 = vpop.f32.mrb[61].mxu1 }
 0x2d5   : > { %v1462_v17 = vpop.f32.mrb[62].mxu1 }
 0x2d6   : > { %v1649_v18 = vmax.f32 %v1641_v59, %v1462_v17  ;;  %v1464_v19 = vpop.f32.mrb[63].mxu1 }
 0x2db   : > { %v1467_v20 = vpop.f32.mrb[64].mxu1 }
 0x2dc   : > { %v1650_v21 = vmax.f32 %v1642_v61, %v1467_v20  ;;  %v1469_v22 = vpop.f32.mrb[65].mxu1 }
 0x2dd   : > { %v1470_v23 = vpop.f32.mrb[66].mxu1 }
 0x2de   : > { %v1651_v24 = vmax.f32 %v1643_v0, %v1470_v23  ;;  %v1472_v25 = vpop.f32.mrb[67].mxu1 }
 0x2e3   : > { %v1475_v27 = vpop.f32.mrb[68].mxu1 }
 0x2e4   : > { %v1652_v28 = vmax.f32 %v1644_v3, %v1475_v27  ;;  %v1477_v29 = vpop.f32.mrb[69].mxu1 }
 0x2e5   : > { %v1478_v30 = vpop.f32.mrb[70].mxu1 }
 0x2e6   : > { %v1653_v31 = vmax.f32 %v1645_v6, %v1478_v30  ;;  %v1480_v32 = vpop.f32.mrb[71].mxu1 }
 0x2eb   : > { %v1483_v33 = vpop.f32.mrb[72].mxu1 }
 0x2ec   : > { %v1654_v34 = vmax.f32 %v1646_v9, %v1483_v33  ;;  %v1485_v35 = vpop.f32.mrb[73].mxu1 }
 0x2ed   : > { %v1486_v36 = vpop.f32.mrb[74].mxu1 }
 0x2ee   : > { %v1655_v37 = vmax.f32 %v1647_v12, %v1486_v36  ;;  %v1488_v38 = vpop.f32.mrb[75].mxu1  ;;  %v10051_v36 = vld [vmem:[%s12919_s5 + $0x200] sm:$0xff]  }
 0x2ef   : > { %9489 = vmatpush3.bf16.msra.mxu1 %v10051_v36  ;;  %v10061_v36 = vld [vmem:[%s12919_s5 + $0x60] sm:$0xff]  }
 0x2f0   : > { %9490 = vmatprep.subr.bf16.mxu1 %v10590_v26 }
 0x2f3   : > { %v1491_v39 = vpop.f32.mrb[76].mxu1 }
 0x2f4   : > { %v1656_v40 = vmax.f32 %v1648_v15, %v1491_v39  ;;  %v1493_v41 = vpop.f32.mrb[77].mxu1  ;;  %v10052_v39 = vld [vmem:[%s12919_s5 + $0x208] sm:$0xff]  }
 0x2f5   : > { %v1494_v43 = vpop.f32.mrb[78].mxu1  ;;  %9491 = vmatpush3.bf16.msra.mxu1 %v10052_v39  ;;  %v10063_v41 = vld [vmem:[%s12919_s5 + $0x210] sm:$0xff]   ;;  %v10064_v39 = vld [vmem:[%s12919_s5 + $0x68] sm:$0xff]  }
 0x2f6   : > { %v1657_v44 = vmax.f32 %v1649_v18, %v1494_v43  ;;  %v1496_v47 = vpop.f32.mrb[79].mxu1  ;;  %9492 = vmatprep.subr.bf16.mxu1 %v10590_v26 }
 0x2f9   : > { %9493 = vmatpush3.bf16.msra.mxu1 %v10063_v41  ;;  %v10045_v41 = vld [vmem:[%s12917_s3 + $0x18] sm:$0xff]  }
 0x2fa   : > { %9494 = vmatprep.subr.bf16.mxu1 %v10590_v26 }
 0x2fb   : > { %v1499_v48 = vpop.f32.mrb[80].mxu1 }
 0x2fc   : > { %v1658_v49 = vmax.f32 %v1650_v21, %v1499_v48  ;;  %v1501_v50 = vpop.f32.mrb[81].mxu1 }
 0x2fd   : > { %v1502_v51 = vpop.f32.mrb[82].mxu1 }
 0x2fe   : > { %v1659_v46 = vmax.f32 %v1651_v24, %v1502_v51  ;;  %v1504_v54 = vpop.f32.mrb[83].mxu1 }
 0x303   : > { %v1507_v52 = vpop.f32.mrb[84].mxu1 }
 0x304   : > { %v1660_v53 = vmax.f32 %v1652_v28, %v1507_v52  ;;  %v1509_v55 = vpop.f32.mrb[85].mxu1 }
 0x305   : > { %v1510_v56 = vpop.f32.mrb[86].mxu1 }
 0x306   : > { %v1661_v57 = vmax.f32 %v1653_v31, %v1510_v56  ;;  %v1512_v58 = vpop.f32.mrb[87].mxu1 }
 0x30b   : > { %v1515_v59 = vpop.f32.mrb[88].mxu1 }
 0x30c   : > { %v1662_v60 = vmax.f32 %v1654_v34, %v1515_v59  ;;  %v1517_v61 = vpop.f32.mrb[89].mxu1 }
 0x30d   : > { %v1518_v62 = vpop.f32.mrb[90].mxu1 }
 0x30e   : > { %v1663_v63 = vmax.f32 %v1655_v37, %v1518_v62  ;;  %v1520_v0 = vpop.f32.mrb[91].mxu1 }
 0x313   : > { %v1523_v1 = vpop.f32.mrb[92].mxu1 }
 0x314   : > { %v1664_v2 = vmax.f32 %v1656_v40, %v1523_v1  ;;  %v1525_v3 = vpop.f32.mrb[93].mxu1 }
 0x315   : > { %v1526_v4 = vpop.f32.mrb[94].mxu1 }
 0x316   : > { %v1665_v5 = vmax.f32 %v1657_v44, %v1526_v4  ;;  %v1528_v6 = vpop.f32.mrb[95].mxu1 }
 0x31b   : > { %v1531_v7 = vpop.f32.mrb[96].mxu1 }
 0x31c   : > { %v1666_v8 = vmax.f32 %v1658_v49, %v1531_v7  ;;  %v1533_v9 = vpop.f32.mrb[97].mxu1 }
 0x31d   : > { %v1534_v10 = vpop.f32.mrb[98].mxu1 }
 0x31e   : > { %v1667_v11 = vmax.f32 %v1659_v46, %v1534_v10  ;;  %v1536_v12 = vpop.f32.mrb[99].mxu1 }
 0x323   : > { %v1539_v13 = vpop.f32.mrb[100].mxu1 }
 0x324   : > { %v1668_v14 = vmax.f32 %v1660_v53, %v1539_v13  ;;  %v1541_v15 = vpop.f32.mrb[101].mxu1 }
 0x325   : > { %v1542_v16 = vpop.f32.mrb[102].mxu1 }
 0x326   : > { %v1669_v17 = vmax.f32 %v1661_v57, %v1542_v16  ;;  %v1544_v18 = vpop.f32.mrb[103].mxu1 }
 0x32b   : > { %v1547_v19 = vpop.f32.mrb[104].mxu1 }
 0x32c   : > { %v11083_v20 = vmax.f32 %v1662_v60, %v1547_v19  ;;  %v1549_v21 = vpop.f32.mrb[105].mxu1 }
 0x32d   : > { %v1550_v22 = vpop.f32.mrb[106].mxu1 }
 0x32e   : > { %v11085_v23 = vmax.f32 %v1663_v63, %v1550_v22  ;;  %v1552_v24 = vpop.f32.mrb[107].mxu1 }
 0x32f   : > { %v10053_v24 = vld [vmem:[%s12919_s5 + $0x40] sm:$0xff]  }
 0x333   : > { %v1555_v25 = vpop.f32.mrb[108].mxu1 }
 0x334   : > { %v11087_v27 = vmax.f32 %v1664_v2, %v1555_v25  ;;  %v1557_v28 = vpop.f32.mrb[109].mxu1 }
 0x335   : > { %v1558_v29 = vpop.f32.mrb[110].mxu1  ;;  %v10054_v28 = vld [vmem:[%s12919_s5] sm:$0xff]  }
 0x336   : > { %v11089_v30 = vmax.f32 %v1665_v5, %v1558_v29  ;;  %v1560_v31 = vpop.f32.mrb[111].mxu1  ;;  %v10055_v29 = vld [vmem:[%s12919_s5 + $0x48] sm:$0xff]  }
 0x337   : > { %v10057_v31 = vld [vmem:[%s12919_s5 + $0x50] sm:$0xff]  }
 0x33b   : > { %v1563_v32 = vpop.f32.mrb[112].mxu1 }
 0x33c   : > { %v1674_v33 = vmax.f32 %v1666_v8, %v1563_v32  ;;  %v1565_v34 = vpop.f32.mrb[113].mxu1  ;;  %v10043_v32 = vld [vmem:[%s12917_s3 + $0x8] sm:$0xff]  }
 0x33d   : > { %v1566_v35 = vpop.f32.mrb[114].mxu1  ;;  %v10059_v34 = vld [vmem:[%s12919_s5 + $0x58] sm:$0xff]  }
 0x33e   : > { %v1675_v37 = vmax.f32 %v1667_v11, %v1566_v35  ;;  %v1568_v38 = vpop.f32.mrb[115].mxu1  ;;  %v10060_v35 = vld [vmem:[%s12919_s5 + $0x18] sm:$0xff]  }
 0x33f   : > { %v10062_v38 = vld [vmem:[%s12919_s5 + $0x20] sm:$0xff]  }
 0x343   : > { %v1571_v40 = vpop.f32.mrb[116].mxu1 }
 0x344   : > { %v1676_v43 = vmax.f32 %v1668_v14, %v1571_v40  ;;  %v1573_v44 = vpop.f32.mrb[117].mxu1  ;;  %v10065_v40 = vld [vmem:[%s12919_s5 + $0x28] sm:$0xff]  }
 0x345   : > { %v1574_v47 = vpop.f32.mrb[118].mxu1  ;;  %v10047_v44 = vld [vmem:[%s12917_s3 + $0x28] sm:$0xff]  }
 0x346   : > { %v1677_v48 = vmax.f32 %v1669_v17, %v1574_v47  ;;  %v1576_v49 = vpop.f32.mrb[119].mxu1  ;;  %v10048_v47 = vld [vmem:[%s12917_s3 + $0x30] sm:$0xff]  }
 0x347   : > { %v10050_v49 = vld [vmem:[%s12917_s3 + $0x40] sm:$0xff]  }
 0x34b   : > { %v1579_v50 = vpop.f32.mrb[120].mxu1 }
 0x34c   : > { %v1678_v51 = vmax.f32 %v11083_v20, %v1579_v50  ;;  %v1581_v46 = vpop.f32.mrb[121].mxu1  ;;  %v10066_v50 = vld [vmem:[%s12919_s5 + $0x70] sm:$0xff]  }
 0x34d   : > { %v1582_v54 = vpop.f32.mrb[122].mxu1  ;;  %v10068_v46 = vld [vmem:[%s12919_s5 + $0x78] sm:$0xff]  }
 0x34e   : > { %v1679_v52 = vmax.f32 %v11085_v23, %v1582_v54  ;;  %v1584_v53 = vpop.f32.mrb[123].mxu1  ;;  %v10069_v54 = vld [vmem:[%s12919_s5 + $0x38] sm:$0xff]  }
 0x34f   : > { %v10082_v53 = vld [vmem:[%s12919_s5 + $0x218] sm:$0xff]  }
 0x350   : > { %9495 = vmatpush3.bf16.msra.mxu1 %v10082_v53  ;;  %v10093_v53 = vld [vmem:[%s12919_s5 + $0x158] sm:$0xff]  }
 0x351   : > { %9496 = vmatprep.subr.bf16.mxu1 %v10590_v26 }
 0x353   : > { %v1587_v55 = vpop.f32.mrb[124].mxu1 }
 0x354   : > { %v1680_v56 = vmax.f32 %v11087_v27, %v1587_v55  ;;  %v1589_v57 = vpop.f32.mrb[125].mxu1  ;;  %v10042_v27 = vld [vmem:[%s12917_s3] sm:$0xff]  }
 0x355   : > { %v1590_v58 = vpop.f32.mrb[126].mxu1  ;;  %v10101_v55 = vld [vmem:[%s12919_s5 + $0x220] sm:$0xff]   ;;  %v10121_v57 = vld [vmem:[%s12919_s5 + $0x230] sm:$0xff]  }
 0x356   : > { %v1681_v59 = vmax.f32 %v11089_v30, %v1590_v58  ;;  %v1592_v60 = vpop.f32.mrb[127].mxu1  ;;  %v10056_v30 = vld [vmem:[%s12919_s5 + $0x8] sm:$0xff]   ;;  %9497 = vmatpush3.bf16.msra.mxu1 %v10101_v55  ;;  %v10122_v58 = vld [vmem:[%s12919_s5 + $0x238] sm:$0xff]  }
 0x357   : > { %9498 = vmatprep.subr.bf16.mxu1 %v10590_v26  ;;  %v10094_v55 = vld [vmem:[%s12919_s5 + $0x118] sm:$0xff]  }
 0x35b   : > { %v1595_v61 = vpop.f32.mrb[128].mxu1 }
 0x35c   : > { %v1682_v62 = vmax.f32 %v1674_v33, %v1595_v61  ;;  %v1597_v63 = vpop.f32.mrb[129].mxu1  ;;  %v10058_v33 = vld [vmem:[%s12919_s5 + $0x10] sm:$0xff]  }
 0x35d   : > { %v1598_v0 = vpop.f32.mrb[130].mxu1 }
 0x35e   : > { %v1683_v1 = vmax.f32 %v1675_v37, %v1598_v0  ;;  %v1600_v2 = vpop.f32.mrb[131].mxu1  ;;  %v10044_v37 = vld [vmem:[%s12917_s3 + $0x10] sm:$0xff]  }
 0x360   : > { %v1690_v3 = vpack.c.bf16 %v1683_v1, %v1682_v62 }
 0x362   : > { %9445 = vmatpush3.bf16.msra.mxu0 %v1690_v3 }
 0x363   : > { %v1603_v4 = vpop.f32.mrb[132].mxu1  ;;  %9446 = vmatprep.subr.bf16.mxu0 %v10590_v26 }
 0x364   : > { %v1684_v5 = vmax.f32 %v1676_v43, %v1603_v4  ;;  %v1605_v6 = vpop.f32.mrb[133].mxu1  ;;  %v10046_v43 = vld [vmem:[%s12917_s3 + $0x20] sm:$0xff]  }
 0x365   : > { %v1606_v7 = vpop.f32.mrb[134].mxu1  ;;  %v10071_v4 = vld [vmem:[%s12919_s5 + $0x80] sm:$0xff]   ;;  %v10072_v6 = vld [vmem:[%s12919_s5 + $0xc8] sm:$0xff]  }
 0x366   : > { %v1685_v8 = vmax.f32 %v1677_v48, %v1606_v7  ;;  %v1608_v9 = vpop.f32.mrb[135].mxu1  ;;  %v10049_v48 = vld [vmem:[%s12917_s3 + $0x38] sm:$0xff]   ;;  %v10073_v7 = vld [vmem:[%s12919_s5 + $0x88] sm:$0xff]  }
 0x368   : > { %v1691_v10 = vpack.c.bf16 %v1685_v8, %v1684_v5  ;;  %v10074_v8 = vld [vmem:[%s12919_s5 + $0xd0] sm:$0xff]  }
 0x36a   : > { %9447 = vmatpush3.bf16.msra.mxu0 %v1691_v10 }
 0x36b   : > { %v1611_v11 = vpop.f32.mrb[136].mxu1  ;;  %9448 = vmatprep.subr.bf16.mxu0 %v10590_v26 }
 0x36c   : > { %v1686_v12 = vmax.f32 %v1678_v51, %v1611_v11  ;;  %v1613_v13 = vpop.f32.mrb[137].mxu1  ;;  %v10067_v51 = vld [vmem:[%s12919_s5 + $0x30] sm:$0xff]  }
 0x36d   : > { %v1614_v14 = vpop.f32.mrb[138].mxu1 }
 0x36e   : > { %v1687_v15 = vmax.f32 %v1679_v52, %v1614_v14  ;;  %v1616_v16 = vpop.f32.mrb[139].mxu1  ;;  %v10070_v52 = vld [vmem:[%s12919_s5 + $0xc0] sm:$0xff]  }
 0x36f   : > { %v10077_v16 = vld [vmem:[%s12919_s5 + $0x98] sm:$0xff]  }
 0x370   : > { %v1692_v17 = vpack.c.bf16 %v1687_v15, %v1686_v12  ;;  %v10075_v12 = vld [vmem:[%s12919_s5 + $0x90] sm:$0xff]   ;;  %v10076_v15 = vld [vmem:[%s12919_s5 + $0xd8] sm:$0xff]  }
 0x372   : > { %9449 = vmatpush3.bf16.msra.mxu0 %v1692_v17  ;;  %v10078_v17 = vld [vmem:[%s12919_s5 + $0xe0] sm:$0xff]  }
 0x373   : > { %v1619_v18 = vpop.f32.mrb[140].mxu1  ;;  %9450 = vmatprep.subr.bf16.mxu0 %v10590_v26 }
 0x374   : > { %v1688_v19 = vmax.f32 %v1680_v56, %v1619_v18  ;;  %v1621_v20 = vpop.f32.mrb[141].mxu1  ;;  %v10118_v56 = vld [vmem:[%s12919_s5 + $0x228] sm:$0xff]  }
 0x375   : > { %v1622_v21 = vpop.f32.mrb[142].mxu1  ;;  %9499 = vmatpush3.bf16.msra.mxu1 %v10118_v56  ;;  %v10095_v56 = vld [vmem:[%s12919_s5 + $0x160] sm:$0xff]  }
 0x376   : > { %v1689_v22 = vmax.f32 %v1681_v59, %v1622_v21  ;;  %v1624_v23 = vpop.f32.mrb[143].mxu1  ;;  %9500 = vmatprep.subr.bf16.mxu1 %v10590_v26  ;;  %v10079_v21 = vld [vmem:[%s12919_s5 + $0xa0] sm:$0xff]  }
 0x378   : > { %v1693_v25 = vpack.c.bf16 %v1689_v22, %v1688_v19 }
 0x379   : > { %9501 = vmatpush3.bf16.msra.mxu1 %v10121_v57 }
 0x37a   : > { %9451 = vmatpush3.bf16.msra.mxu0 %v1693_v25  ;;  %9502 = vmatprep.subr.bf16.mxu1 %v10590_v26  ;;  %v10081_v25 = vld [vmem:[%s12919_s5 + $0xa8] sm:$0xff]  }
 0x37b   : > { %8803 = vmatprep.subr.bf16.mxu0 %v10053_v24  ;;  %v10080_v24 = vld [vmem:[%s12919_s5 + $0xe8] sm:$0xff]  }
 0x37d   : > { %9453 = vmatmul.mubr.msk.bf16.vlgmr.msra.gmra.mrb[64].mxu0 %vm1757_vm1, %v10042_v27  ;;  %9503 = vmatpush3.bf16.msra.mxu1 %v10122_v58  ;;  %v10083_v27 = vld [vmem:[%s12919_s5 + $0xf0] sm:$0xff]  }
 0x37e   : > { %9456 = vmatprep.mubr.msk.bf16.mxu0 %vm10591_vm0, %v10590_v26  ;;  %8804 = vmatpush3.bf16.msra.mxu0 %v10054_v28 }
 0x37f   : > { %8805 = vmatprep.subr.bf16.mxu0 %v10055_v29  ;;  %9528 = vmatprep.subr.bf16.mxu1 %v10590_v26 }
 0x382   : > { %8806 = vmatpush3.bf16.msra.mxu0 %v10056_v30 }
 0x383   : > { %8807 = vmatprep.subr.bf16.mxu0 %v10057_v31  ;;  %v10084_v31 = vld [vmem:[%s12919_s5 + $0xb0] sm:$0xff]  }
 0x385   : > { %9457 = vmatmul.mubr.msk.bf16.gmra.mrb[68].mxu0 %vm1757_vm1, %v10043_v32 }
 0x386   : > { %9460 = vmatprep.mubr.msk.bf16.mxu0 %vm10591_vm0, %v10590_v26  ;;  %8808 = vmatpush3.bf16.msra.mxu0 %v10058_v33 }
 0x387   : > { %8809 = vmatprep.subr.bf16.mxu0 %v10059_v34  ;;  %v10085_v34 = vld [vmem:[%s12919_s5 + $0xf8] sm:$0xff]  }
 0x38a   : > { %8810 = vmatpush3.bf16.msra.mxu0 %v10060_v35  ;;  %v10086_v35 = vld [vmem:[%s12919_s5 + $0xb8] sm:$0xff]  }
 0x38b   : > { %8811 = vmatprep.subr.bf16.mxu0 %v10061_v36  ;;  %v10087_v36 = vld [vmem:[%s12919_s5 + $0x140] sm:$0xff]  }
 0x38d   : > { %9461 = vmatmul.mubr.msk.bf16.gmra.mrb[72].mxu0 %vm1757_vm1, %v10044_v37 }
 0x38e   : > { %9464 = vmatprep.mubr.msk.bf16.mxu0 %vm10591_vm0, %v10590_v26  ;;  %8812 = vmatpush3.bf16.msra.mxu0 %v10062_v38 }
 0x38f   : > { %8813 = vmatprep.subr.bf16.mxu0 %v10064_v39 }
 0x392   : > { %8814 = vmatpush3.bf16.msra.mxu0 %v10065_v40  ;;  %v10088_v40 = vld [vmem:[%s12919_s5 + $0x100] sm:$0xff]  }
 0x393   : > { %8815 = vmatprep.subr.bf16.mxu0 %v10066_v50 }
 0x395   : > { %9465 = vmatmul.mubr.msk.bf16.gmra.mrb[76].mxu0 %vm1757_vm1, %v10045_v41 }
 0x396   : > { %9468 = vmatprep.mubr.msk.bf16.mxu0 %vm10591_vm0, %v10590_v26  ;;  %8816 = vmatpush3.bf16.msra.mxu0 %v10067_v51 }
 0x397   : > { %8817 = vmatprep.subr.bf16.mxu0 %v10068_v46  ;;  %v10092_v46 = vld [vmem:[%s12919_s5 + $0x110] sm:$0xff]  }
 0x39a   : > { %8818 = vmatpush3.bf16.msra.mxu0 %v10069_v54 }
 0x39b   : > { %8825 = vmatprep.subr.bf16.mxu0 %v10070_v52 }
 0x39d   : > { %9469 = vmatmul.mubr.msk.bf16.gmra.mrb[80].mxu0 %vm1757_vm1, %v10046_v43 }
 0x39e   : > { %9472 = vmatprep.mubr.msk.bf16.mxu0 %vm10591_vm0, %v10590_v26 }
 0x3a5   : > { %9473 = vmatmul.mubr.msk.bf16.gmra.mrb[84].mxu0 %vm1757_vm1, %v10047_v44  ;;  %v10089_v44 = vld [vmem:[%s12919_s5 + $0x148] sm:$0xff]  }
 0x3a6   : > { %9476 = vmatprep.mubr.msk.bf16.mxu0 %vm10591_vm0, %v10590_v26 }
 0x3ad   : > { %9477 = vmatmul.mubr.msk.bf16.gmra.mrb[88].mxu0 %vm1757_vm1, %v10048_v47  ;;  %v10090_v47 = vld [vmem:[%s12919_s5 + $0x108] sm:$0xff]  }
 0x3ae   : > { %9480 = vmatprep.mubr.msk.bf16.mxu0 %vm10591_vm0, %v10590_v26 }
 0x3b5   : > { %9481 = vmatmul.mubr.msk.bf16.gmra.mrb[92].mxu0 %vm1757_vm1, %v10049_v48  ;;  %v10091_v48 = vld [vmem:[%s12919_s5 + $0x150] sm:$0xff]  }
 0x3b6   : > { %9484 = vmatprep.mubr.msk.bf16.mxu0 %vm10591_vm0, %v10590_v26 }
 0x3bd   : > { %9485 = vmatmul.mubr.msk.bf16.gmra.mrb[96].mxu0 %vm1757_vm1, %v10050_v49 }
 0x450   : > { %v1819_v59 = vpop.f32.mrb[64].mxu0 }
 0x451   : > { %v9454_v60 = vpop.f32.mrb[65].mxu0 }
 0x452   : > { %v1822_v61 = vpop.f32.mrb[66].mxu0  ;;  %v10096_v60 = vld [vmem:[%s12919_s5 + $0x120] sm:$0xff]  }
 0x453   : > { %v1890_v62 = vpack.c.bf16 %v1822_v61, %v1819_v59  ;;  %v9455_v63 = vpop.f32.mrb[67].mxu0 }
 0x454   : > { %v10097_v63 = vld [vmem:[%s12919_s5 + $0x168] sm:$0xff]  }
 0x458   : > { %v1827_v0 = vpop.f32.mrb[68].mxu0 }
 0x459   : > { %v9458_v1 = vpop.f32.mrb[69].mxu0 }
 0x45a   : > { %v1830_v2 = vpop.f32.mrb[70].mxu0  ;;  %v10099_v1 = vld [vmem:[%s12919_s5 + $0x170] sm:$0xff]  }
 0x45b   : > { %v1891_v3 = vpack.c.bf16 %v1830_v2, %v1827_v0  ;;  %v9459_v5 = vpop.f32.mrb[71].mxu0  ;;  %v10098_v0 = vld [vmem:[%s12919_s5 + $0x128] sm:$0xff]  }
 0x45c   : > { %v10100_v5 = vld [vmem:[%s12919_s5 + $0x130] sm:$0xff]  }
 0x45d   : > { %2511 = vmatprep.mubr.bf16.mxu0 %v1891_v3 }
 0x45e   : > { %2512 = vmatmul.mubr.bf16.vlgmr.msra.gmra.mrb[100].mxu0 %v1890_v62 }
 0x45f   : > { %8826 = vmatpush3.bf16.msra.mxu0 %v10071_v4 }
 0x460   : > { %8827 = vmatprep.subr.bf16.mxu0 %v10072_v6  ;;  %v1835_v9 = vpop.f32.mrb[72].mxu0 }
 0x461   : > { %v9462_v10 = vpop.f32.mrb[73].mxu0 }
 0x462   : > { %v1838_v11 = vpop.f32.mrb[74].mxu0  ;;  %v10104_v10 = vld [vmem:[%s12919_s5 + $0x1c0] sm:$0xff]  }
 0x463   : > { %8828 = vmatpush3.bf16.msra.mxu0 %v10073_v7  ;;  %v1892_v13 = vpack.c.bf16 %v1838_v11, %v1835_v9  ;;  %v9463_v14 = vpop.f32.mrb[75].mxu0  ;;  %v10103_v9 = vld [vmem:[%s12919_s5 + $0x138] sm:$0xff]   ;;  %v10105_v11 = vld [vmem:[%s12919_s5 + $0x180] sm:$0xff]  }
 0x464   : > { %8829 = vmatprep.subr.bf16.mxu0 %v10074_v8  ;;  %v10102_v8 = vld [vmem:[%s12919_s5 + $0x178] sm:$0xff]   ;;  %v10108_v14 = vld [vmem:[%s12919_s5 + $0x1d0] sm:$0xff]  }
 0x467   : > { %8830 = vmatpush3.bf16.msra.mxu0 %v10075_v12  ;;  %v10106_v12 = vld [vmem:[%s12919_s5 + $0x1c8] sm:$0xff]  }
 0x468   : > { %8831 = vmatprep.subr.bf16.mxu0 %v10076_v15  ;;  %v1843_v18 = vpop.f32.mrb[76].mxu0  ;;  %v10109_v15 = vld [vmem:[%s12919_s5 + $0x190] sm:$0xff]  }
 0x469   : > { %v9466_v19 = vpop.f32.mrb[77].mxu0 }
 0x46a   : > { %v1846_v20 = vpop.f32.mrb[78].mxu0  ;;  %v10113_v19 = vld [vmem:[%s12919_s5 + $0x1a0] sm:$0xff]  }
 0x46b   : > { %8832 = vmatpush3.bf16.msra.mxu0 %v10077_v16  ;;  %v1893_v22 = vpack.c.bf16 %v1846_v20, %v1843_v18  ;;  %v9467_v23 = vpop.f32.mrb[79].mxu0  ;;  %v10110_v16 = vld [vmem:[%s12919_s5 + $0x1d8] sm:$0xff]   ;;  %v10112_v18 = vld [vmem:[%s12919_s5 + $0x1e0] sm:$0xff]   ;;  %v10114_v20 = vld [vmem:[%s12919_s5 + $0x1e8] sm:$0xff]  }
 0x46c   : > { %8833 = vmatprep.subr.bf16.mxu0 %v10078_v17  ;;  %v10111_v17 = vld [vmem:[%s12919_s5 + $0x198] sm:$0xff]   ;;  %v10117_v23 = vld [vmem:[%s12919_s5 + $0x1b0] sm:$0xff]  }
 0x46d   : > { %2552 = vmatprep.mubr.bf16.mxu0 %v1893_v22  ;;  %v10116_v22 = vld [vmem:[%s12919_s5 + $0x1f0] sm:$0xff]  }
 0x46f   : > { %8834 = vmatpush3.bf16.msra.mxu0 %v10079_v21  ;;  %v10115_v21 = vld [vmem:[%s12919_s5 + $0x1a8] sm:$0xff]  }
 0x470   : > { %8835 = vmatprep.subr.bf16.mxu0 %v10080_v24  ;;  %v1851_v28 = vpop.f32.mrb[80].mxu0  ;;  %v10119_v24 = vld [vmem:[%s12919_s5 + $0x1f8] sm:$0xff]  }
 0x471   : > { %v9470_v29 = vpop.f32.mrb[81].mxu0 }
 0x472   : > { %v1854_v30 = vpop.f32.mrb[82].mxu0  ;;  %v10125_v29 = vld [vmem:[%s12920_s6 + $0x10] sm:$0xff]  }
 0x473   : > { %8836 = vmatpush3.bf16.msra.mxu0 %v10081_v25  ;;  %v11272_v32 = vpack.c.bf16 %v1854_v30, %v1851_v28  ;;  %v9471_v33 = vpop.f32.mrb[83].mxu0  ;;  %v10120_v25 = vld [vmem:[%s12919_s5 + $0x1b8] sm:$0xff]   ;;  %v10124_v28 = vld [vmem:[%s12920_s6 + $0x8] sm:$0xff]  }
 0x474   : > { %8837 = vmatprep.subr.bf16.mxu0 %v10083_v27  ;;  %v10123_v27 = vld [vmem:[%s12920_s6] sm:$0xff]   ;;  %v10126_v30 = vld [vmem:[%s12920_s6 + $0x18] sm:$0xff]   ;;  %v10128_v33 = vld [vmem:[%s12920_s6 + $0x28] sm:$0xff]  }
 0x477   : > { %8838 = vmatpush3.bf16.msra.mxu0 %v10084_v31  ;;  %v10127_v31 = vld [vmem:[%s12920_s6 + $0x20] sm:$0xff]  }
 0x478   : > { %8839 = vmatprep.subr.bf16.mxu0 %v10085_v34  ;;  %v1859_v37 = vpop.f32.mrb[84].mxu0  ;;  %v10129_v34 = vld [vmem:[%s12920_s6 + $0x30] sm:$0xff]  }
 0x479   : > { %v9474_v38 = vpop.f32.mrb[85].mxu0 }
 0x47a   : > { %v1862_v39 = vpop.f32.mrb[86].mxu0 }
 0x47b   : > { %8840 = vmatpush3.bf16.msra.mxu0 %v10086_v35  ;;  %v1895_v41 = vpack.c.bf16 %v1862_v39, %v1859_v37  ;;  %v9475_v43 = vpop.f32.mrb[87].mxu0  ;;  %v10130_v35 = vld [vmem:[%s12920_s6 + $0x38] sm:$0xff]  }
 0x47c   : > { %8847 = vmatprep.subr.bf16.mxu0 %v10087_v36  ;;  %v2045_v43 = vsub.s32 1, %v10772_v42 }
 0x47e   : > { %2553 = vmatmul.mubr.bf16.vlgmr.msra.gmra.mrb[104].mxu0 %v1892_v13  ;;  %v10107_v13 = vld [vmem:[%s12919_s5 + $0x188] sm:$0xff]  }
 0x47f   : > { %8848 = vmatpush3.bf16.msra.mxu0 %v10088_v40  ;;  %2593 = vmatprep.mubr.bf16.mxu0 %v1895_v41 }
 0x480   : > { %8849 = vmatprep.subr.bf16.mxu0 %v10089_v44  ;;  %v11295_v49 = vpop.f32.mrb[88].mxu0  ;;  %v11427_v44 = vld [vmem:[%s12922_s8] sm:$0xff] }
 0x481   : > { %v9478_v50 = vpop.f32.mrb[89].mxu0 }
 0x482   : > { %v11297_v51 = vpop.f32.mrb[90].mxu0 }
 0x483   : > { %8850 = vmatpush3.bf16.msra.mxu0 %v10090_v47  ;;  %v1896_v54 = vpack.c.bf16 %v11297_v51, %v11295_v49  ;;  %v9479_v52 = vpop.f32.mrb[91].mxu0  ;;  %v2046_v47 = vrot.slane %v11427_v44, %v2045_v43 }
 0x484   : > { %8851 = vmatprep.subr.bf16.mxu0 %v10091_v48 }
 0x487   : > { %8852 = vmatpush3.bf16.msra.mxu0 %v10092_v46 }
 0x488   : > { %8853 = vmatprep.subr.bf16.mxu0 %v10093_v53  ;;  %v1875_v57 = vpop.f32.mrb[92].mxu0 }
 0x489   : > { %v9482_v58 = vpop.f32.mrb[93].mxu0 }
 0x48a   : > { %v1878_v59 = vpop.f32.mrb[94].mxu0  ;;  %v10142_v58 = vld [vmem:[%s12921_s7 + $0x48] sm:$0xff]  }
 0x48b   : > { %8854 = vmatpush3.bf16.msra.mxu0 %v10094_v55  ;;  %v1897_v61 = vpack.c.bf16 %v1878_v59, %v1875_v57  ;;  %v9483_v62 = vpop.f32.mrb[95].mxu0  ;;  %v10141_v57 = vld [vmem:[%s12921_s7] sm:$0xff]   ;;  %v10143_v59 = vld [vmem:[%s12921_s7 + $0x8] sm:$0xff]  }
 0x48c   : > { %8855 = vmatprep.subr.bf16.mxu0 %v10095_v56  ;;  %v10140_v56 = vld [vmem:[%s12921_s7 + $0x40] sm:$0xff]  }
 0x48f   : > { %8856 = vmatpush3.bf16.msra.mxu0 %v10096_v60  ;;  %v10144_v60 = vld [vmem:[%s12921_s7 + $0x50] sm:$0xff]  }
 0x490   : > { %8857 = vmatprep.subr.bf16.mxu0 %v10097_v63  ;;  %v1883_v2 = vpop.f32.mrb[96].mxu0  ;;  %v10145_v63 = vld [vmem:[%s12921_s7 + $0x10] sm:$0xff]  }
 0x491   : > { %v9486_v3 = vpop.f32.mrb[97].mxu0 }
 0x492   : > { %v1886_v4 = vpop.f32.mrb[98].mxu0  ;;  %v10147_v3 = vld [vmem:[%s12921_s7 + $0x18] sm:$0xff]  }
 0x493   : > { %8858 = vmatpush3.bf16.msra.mxu0 %v10098_v0  ;;  %v1898_v6 = vpack.c.bf16 %v1886_v4, %v1883_v2  ;;  %v9487_v7 = vpop.f32.mrb[99].mxu0  ;;  %v10148_v4 = vld [vmem:[%s12921_s7 + $0x60] sm:$0xff]  }
 0x494   : > { %8859 = vmatprep.subr.bf16.mxu0 %v10099_v1  ;;  %v10146_v1 = vld [vmem:[%s12921_s7 + $0x58] sm:$0xff]  }
 0x495   : > { %9505 = vmatmul.mubr.bf16.vlgmr.msra.gmra.mrb[144].mxu1 %v1898_v6  ;;  %v10149_v6 = vld [vmem:[%s12921_s7 + $0x20] sm:$0xff]  }
 0x496   : > { %9530 = vmatprep.mubr.msk.bf16.mxu1 %vm10591_vm0, %v10590_v26 }
 0x497   : > { %8860 = vmatpush3.bf16.msra.mxu0 %v10100_v5 }
 0x498   : > { %8861 = vmatprep.subr.bf16.mxu0 %v10102_v8  ;;  %v10150_v8 = vld [vmem:[%s12921_s7 + $0x68] sm:$0xff]  }
 0x49b   : > { %8862 = vmatpush3.bf16.msra.mxu0 %v10103_v9 }
 0x49c   : > { %8869 = vmatprep.subr.bf16.mxu0 %v10104_v10 }
 0x49e   : > { %2594 = vmatmul.mubr.bf16.vlgmr.msra.gmra.mrb[108].mxu0 %v11272_v32 }
 0x49f   : > { %8870 = vmatpush3.bf16.msra.mxu0 %v10105_v11  ;;  %2634 = vmatprep.mubr.bf16.mxu0 %v1897_v61 }
 0x4a0   : > { %8871 = vmatprep.subr.bf16.mxu0 %v10106_v12 }
 0x4a3   : > { %8872 = vmatpush3.bf16.msra.mxu0 %v10107_v13 }
 0x4a4   : > { %8873 = vmatprep.subr.bf16.mxu0 %v10108_v14  ;;  %v10151_v14 = vld [vmem:[%s12921_s7 + $0x28] sm:$0xff]  }
 0x4a7   : > { %8874 = vmatpush3.bf16.msra.mxu0 %v10109_v15 }
 0x4a8   : > { %8875 = vmatprep.subr.bf16.mxu0 %v10110_v16 }
 0x4ab   : > { %8876 = vmatpush3.bf16.msra.mxu0 %v10111_v17 }
 0x4ac   : > { %8877 = vmatprep.subr.bf16.mxu0 %v10112_v18 }
 0x4af   : > { %8878 = vmatpush3.bf16.msra.mxu0 %v10113_v19 }
 0x4b0   : > { %8879 = vmatprep.subr.bf16.mxu0 %v10114_v20 }
 0x4b3   : > { %8880 = vmatpush3.bf16.msra.mxu0 %v10115_v21 }
 0x4b4   : > { %8881 = vmatprep.subr.bf16.mxu0 %v10116_v22 }
 0x4b7   : > { %8882 = vmatpush3.bf16.msra.mxu0 %v10117_v23 }
 0x4b8   : > { %8883 = vmatprep.subr.bf16.mxu0 %v10119_v24 }
 0x4bb   : > { %8884 = vmatpush3.bf16.msra.mxu0 %v10120_v25 }
 0x4bc   : > { %9508 = vmatprep.subr.bf16.mxu0 %v10590_v26 }
 0x4be   : > { %2635 = vmatmul.mubr.bf16.vlgmr.msra.gmra.mrb[112].mxu0 %v1896_v54 }
 0x4bf   : > { %9509 = vmatpush3.bf16.msra.mxu0 %v10123_v27  ;;  %9524 = vmatprep.mubr.msk.bf16.mxu0 %vm10591_vm0, %v10590_v26 }
 0x4c0   : > { %9510 = vmatprep.subr.bf16.mxu0 %v10590_v26 }
 0x4c3   : > { %9511 = vmatpush3.bf16.msra.mxu0 %v10124_v28 }
 0x4c4   : > { %9512 = vmatprep.subr.bf16.mxu0 %v10590_v26 }
 0x4c7   : > { %9513 = vmatpush3.bf16.msra.mxu0 %v10125_v29 }
 0x4c8   : > { %9514 = vmatprep.subr.bf16.mxu0 %v10590_v26 }
 0x4cb   : > { %9515 = vmatpush3.bf16.msra.mxu0 %v10126_v30  ;;  %v11471_v30 = vld [vmem:[%s12918_s4] sm:$0xff]  }
 0x4cc   : > { %9516 = vmatprep.subr.bf16.mxu0 %v10590_v26 }
 0x4cf   : > { %9517 = vmatpush3.bf16.msra.mxu0 %v10127_v31  ;;  %v11479_v31 = vld [vmem:[%s12918_s4 + $0x8] sm:$0xff]  }
 0x4d0   : > { %9518 = vmatprep.subr.bf16.mxu0 %v10590_v26 }
 0x4d3   : > { %9519 = vmatpush3.bf16.msra.mxu0 %v10128_v33  ;;  %v11487_v33 = vld [vmem:[%s12918_s4 + $0x10] sm:$0xff]  }
 0x4d4   : > { %9520 = vmatprep.subr.bf16.mxu0 %v10590_v26 }
 0x4d7   : > { %9521 = vmatpush3.bf16.msra.mxu0 %v10129_v34  ;;  %v11495_v34 = vld [vmem:[%s12918_s4 + $0x18] sm:$0xff]  }
 0x4d8   : > { %9522 = vmatprep.subr.bf16.mxu0 %v10590_v26 }
 0x4db   : > { %9523 = vmatpush3.bf16.msra.mxu0 %v10130_v35  ;;  %v11503_v35 = vld [vmem:[%s12918_s4 + $0x20] sm:$0xff]  }
 0x4dc   : > { %8919 = vmatprep.subr.bf16.mxu0 %v10140_v56  ;;  %v10198_v56 = vld [vmem:[%s12921_s7 + $0x160] sm:$0xff]  }
 0x4de   : > { %9525 = vmatmul.mubr.bf16.vlgmr.msra.gmra.mrb[116].mxu0 %v11272_v32 }
 0x4df   : > { %8920 = vmatpush3.bf16.msra.mxu0 %v10141_v57  ;;  %v10199_v57 = vld [vmem:[%s12921_s7 + $0x120] sm:$0xff]  }
 0x4e0   : > { %8921 = vmatprep.subr.bf16.mxu0 %v10142_v58  ;;  %v10201_v58 = vld [vmem:[%s12921_s7 + $0x168] sm:$0xff]  }
 0x4e3   : > { %8922 = vmatpush3.bf16.msra.mxu0 %v10143_v59  ;;  %v10202_v59 = vld [vmem:[%s12921_s7 + $0x128] sm:$0xff]  }
 0x4e4   : > { %8923 = vmatprep.subr.bf16.mxu0 %v10144_v60  ;;  %v10204_v60 = vld [vmem:[%s12921_s7 + $0x170] sm:$0xff]  }
 0x4e7   : > { %8924 = vmatpush3.bf16.msra.mxu0 %v10145_v63  ;;  %v10208_v63 = vld [vmem:[%s12921_s7 + $0x138] sm:$0xff]  }
 0x4e8   : > { %8925 = vmatprep.subr.bf16.mxu0 %v10146_v1 }
 0x4eb   : > { %8926 = vmatpush3.bf16.msra.mxu0 %v10147_v3 }
 0x4ec   : > { %8927 = vmatprep.subr.bf16.mxu0 %v10148_v4 }
 0x4ef   : > { %8928 = vmatpush3.bf16.msra.mxu0 %v10149_v6 }
 0x4f0   : > { %8929 = vmatprep.subr.bf16.mxu0 %v10150_v8 }
 0x4f3   : > { %8930 = vmatpush3.bf16.msra.mxu0 %v10151_v14 }
 0x531   : > { %v8819_v36 = vpop.f32.mrb[100].mxu0 }
 0x532   : > { %v8820_v37 = vpop.f32.mrb[101].mxu0 }
 0x533   : > { %v8821_v38 = vadd.f32 %v8820_v37, %v8819_v36  ;;  %v8822_v39 = vpop.f32.mrb[102].mxu0  ;;  %v11511_v36 = vld [vmem:[%s12918_s4 + $0x28] sm:$0xff]   ;;  %v11519_v37 = vld [vmem:[%s12918_s4 + $0x30] sm:$0xff]  }
 0x534   : > { %v8823_v40 = vpop.f32.mrb[103].mxu0 }
 0x535   : > { %v8824_v41 = vadd.f32 %v8823_v40, %v8822_v39  ;;  %v2514_v32 = vadd.f32 %v8821_v38, %v2046_v47  ;;  %v11527_v38 = vld [vmem:[%s12918_s4 + $0x38] sm:$0xff]   ;;  %v11535_v39 = vld [vmem:[%s12918_s4 + $0x40] sm:$0xff]   ;;  %v10152_v40 = vld [vmem:[%s12921_s7 + $0x70] sm:$0xff]  }
 0x536   : > { %8931 = vmatprep.subr.bf16.mxu0 %v10152_v40  ;;  %v10166_v40 = vld [vmem:[%s12921_s7 + $0xe8] sm:$0xff]  }
 0x537   : > { %v2517_v54 = vadd.f32 %v8824_v41, %v2046_v47  ;;  %v10153_v41 = vld [vmem:[%s12921_s7 + $0x30] sm:$0xff]   ;;  %v10154_v47 = vld [vmem:[%s12921_s7 + $0x78] sm:$0xff]  }
 0x538   : > { %8932 = vmatpush3.bf16.msra.mxu0 %v10153_v41  ;;  %v10167_v41 = vld [vmem:[%s12921_s7 + $0xa8] sm:$0xff]  }
 0x539   : > { %8933 = vmatprep.subr.bf16.mxu0 %v10154_v47  ;;  %v10168_v47 = vld [vmem:[%s12921_s7 + $0xf0] sm:$0xff]  }
 0x551   : > { %v8841_v48 = vpop.f32.mrb[104].mxu0 }
 0x552   : > { %v8842_v49 = vpop.f32.mrb[105].mxu0 }
 0x553   : > { %v8843_v50 = vadd.f32 %v8842_v49, %v8841_v48  ;;  %v8844_v51 = vpop.f32.mrb[106].mxu0  ;;  %v10155_v48 = vld [vmem:[%s12921_s7 + $0x38] sm:$0xff]   ;;  %v10156_v49 = vld [vmem:[%s12921_s7 + $0xc0] sm:$0xff]  }
 0x554   : > { %v8845_v46 = vpop.f32.mrb[107].mxu0  ;;  %8934 = vmatpush3.bf16.msra.mxu0 %v10155_v48 }
 0x555   : > { %v2555_v52 = vadd.f32 %v8843_v50, %v2514_v32  ;;  %v8846_v53 = vadd.f32 %v8845_v46, %v8844_v51  ;;  %8941 = vmatprep.subr.bf16.mxu0 %v10156_v49  ;;  %v10184_v32 = vld [vmem:[%s12921_s7 + $0x140] sm:$0xff]   ;;  %v10188_v51 = vld [vmem:[%s12921_s7 + $0x148] sm:$0xff]  }
 0x556   : > { %v10185_v50 = vld [vmem:[%s12921_s7 + $0x100] sm:$0xff]   ;;  %v10189_v46 = vld [vmem:[%s12921_s7 + $0x108] sm:$0xff]  }
 0x557   : > { %v2558_v55 = vadd.f32 %v8846_v53, %v2517_v54  ;;  %v10192_v54 = vld [vmem:[%s12921_s7 + $0x150] sm:$0xff]   ;;  %v10195_v53 = vld [vmem:[%s12921_s7 + $0x158] sm:$0xff]  }
 0x568   : > { %v2677_v61 = vpop.f32.mrb[144].mxu1 }
 0x569   : > { %v9506_v62 = vpop.f32.mrb[145].mxu1 }
 0x56a   : > { %v2680_v0 = vpop.f32.mrb[146].mxu1  ;;  %v10207_v62 = vld [vmem:[%s12921_s7 + $0x178] sm:$0xff]  }
 0x56b   : > { %v9507_v2 = vpop.f32.mrb[147].mxu1 }
 0x571   : > { %v8863_v5 = vpop.f32.mrb[108].mxu0 }
 0x572   : > { %v8864_v7 = vpop.f32.mrb[109].mxu0 }
 0x573   : > { %v8865_v9 = vadd.f32 %v8864_v7, %v8863_v5  ;;  %v8866_v10 = vpop.f32.mrb[110].mxu0 }
 0x574   : > { %v8867_v11 = vpop.f32.mrb[111].mxu0 }
 0x575   : > { %v2596_v12 = vadd.f32 %v8865_v9, %v2555_v52  ;;  %v8868_v13 = vadd.f32 %v8867_v11, %v8866_v10  ;;  %v10193_v52 = vld [vmem:[%s12921_s7 + $0x110] sm:$0xff]   ;;  %v10157_v9 = vld [vmem:[%s12921_s7 + $0x80] sm:$0xff]   ;;  %v10158_v11 = vld [vmem:[%s12921_s7 + $0xc8] sm:$0xff]  }
 0x577   : > { %v2599_v15 = vadd.f32 %v8868_v13, %v2558_v55  ;;  %v10196_v55 = vld [vmem:[%s12921_s7 + $0x118] sm:$0xff]   ;;  %v10160_v13 = vld [vmem:[%s12921_s7 + $0xd0] sm:$0xff]  }
 0x591   : > { %v8885_v16 = vpop.f32.mrb[112].mxu0 }
 0x592   : > { %v8886_v17 = vpop.f32.mrb[113].mxu0 }
 0x593   : > { %v8887_v18 = vadd.f32 %v8886_v17, %v8885_v16  ;;  %v8888_v19 = vpop.f32.mrb[114].mxu0  ;;  %v10161_v17 = vld [vmem:[%s12921_s7 + $0x90] sm:$0xff]  }
 0x594   : > { %v8889_v20 = vpop.f32.mrb[115].mxu0 }
 0x595   : > { %v8890_v21 = vadd.f32 %v8889_v20, %v8888_v19  ;;  %v2637_v22 = vadd.f32 %v8887_v18, %v2596_v12  ;;  %v10159_v12 = vld [vmem:[%s12921_s7 + $0x88] sm:$0xff]   ;;  %v10162_v20 = vld [vmem:[%s12921_s7 + $0xd8] sm:$0xff]  }
 0x597   : > { %v2678_v23 = vadd.f32 %v2677_v61, %v2637_v22  ;;  %v2640_v24 = vadd.f32 %v8890_v21, %v2599_v15  ;;  %v10205_v61 = vld [vmem:[%s12921_s7 + $0x130] sm:$0xff]   ;;  %v10163_v21 = vld [vmem:[%s12921_s7 + $0x98] sm:$0xff]   ;;  %v10164_v22 = vld [vmem:[%s12921_s7 + $0xe0] sm:$0xff]  }
 0x599   : > { %v2681_v25 = vadd.f32 %v2680_v0, %v2640_v24  ;;  %v2684_v27 = vmax.f32 %v2678_v23, 0.0 }
 0x59b   : > { %v2685_v28 = vmax.f32 %v2681_v25, 0.0 }
 0x59d   : > { %v2813_v29 = vpack.c.bf16 %v2685_v28, %v2684_v27  ;;  %v10165_v27 = vld [vmem:[%s12921_s7 + $0xa0] sm:$0xff]  }
 0x59f   : > { %9529 = vmatpush3.bf16.msra.mxu1 %v2813_v29 }
 0x5a0   : > { %8963 = vmatprep.subr.bf16.mxu1 %v10184_v32 }
 0x5a2   : > { %9531 = vmatmul.mubr.bf16.vlgmr.msra.gmra.mrb[148].mxu1 %v11471_v30 }
 0x5a3   : > { %9534 = vmatprep.mubr.msk.bf16.mxu1 %vm10591_vm0, %v10590_v26  ;;  %8964 = vmatpush3.bf16.msra.mxu1 %v10185_v50  ;;  %v10169_v50 = vld [vmem:[%s12921_s7 + $0xb0] sm:$0xff]  }
 0x5a4   : > { %8965 = vmatprep.subr.bf16.mxu1 %v10188_v51 }
 0x5a7   : > { %8966 = vmatpush3.bf16.msra.mxu1 %v10189_v46 }
 0x5a8   : > { %8967 = vmatprep.subr.bf16.mxu1 %v10192_v54  ;;  %v10170_v54 = vld [vmem:[%s12921_s7 + $0xf8] sm:$0xff]  }
 0x5aa   : > { %9535 = vmatmul.mubr.bf16.gmra.mrb[152].mxu1 %v11479_v31 }
 0x5ab   : > { %9538 = vmatprep.mubr.msk.bf16.mxu1 %vm10591_vm0, %v10590_v26  ;;  %8968 = vmatpush3.bf16.msra.mxu1 %v10193_v52  ;;  %v10171_v52 = vld [vmem:[%s12921_s7 + $0xb8] sm:$0xff]  }
 0x5ac   : > { %8969 = vmatprep.subr.bf16.mxu1 %v10195_v53  ;;  %v10172_v53 = vld [vmem:[%s12921_s7 + $0x1c0] sm:$0xff]  }
 0x5af   : > { %8970 = vmatpush3.bf16.msra.mxu1 %v10196_v55 }
 0x5b0   : > { %8971 = vmatprep.subr.bf16.mxu1 %v10198_v56 }
 0x5b2   : > { %9539 = vmatmul.mubr.bf16.gmra.mrb[156].mxu1 %v11487_v33 }
 0x5b3   : > { %9542 = vmatprep.mubr.msk.bf16.mxu1 %vm10591_vm0, %v10590_v26  ;;  %8972 = vmatpush3.bf16.msra.mxu1 %v10199_v57 }
 0x5b4   : > { %8973 = vmatprep.subr.bf16.mxu1 %v10201_v58  ;;  %v10173_v58 = vld [vmem:[%s12921_s7 + $0x180] sm:$0xff]  }
 0x5b7   : > { %8974 = vmatpush3.bf16.msra.mxu1 %v10202_v59 }
 0x5b8   : > { %8975 = vmatprep.subr.bf16.mxu1 %v10204_v60 }
 0x5ba   : > { %9543 = vmatmul.mubr.bf16.gmra.mrb[160].mxu1 %v11495_v34 }
 0x5bb   : > { %9546 = vmatprep.mubr.msk.bf16.mxu1 %vm10591_vm0, %v10590_v26  ;;  %8976 = vmatpush3.bf16.msra.mxu1 %v10205_v61  ;;  %v10174_v61 = vld [vmem:[%s12921_s7 + $0x1c8] sm:$0xff]  }
 0x5bc   : > { %8977 = vmatprep.subr.bf16.mxu1 %v10207_v62  ;;  %v10175_v62 = vld [vmem:[%s12921_s7 + $0x188] sm:$0xff]  }
 0x5bf   : > { %8978 = vmatpush3.bf16.msra.mxu1 %v10208_v63  ;;  %v10176_v63 = vld [vmem:[%s12921_s7 + $0x1d0] sm:$0xff]  }
 0x5c0   : > { %9586 = vmatprep.subr.bf16.mxu1 %v10590_v26 }
 0x5c2   : > { %9547 = vmatmul.mubr.bf16.gmra.mrb[164].mxu1 %v11503_v35 }
 0x5c3   : > { %9550 = vmatprep.mubr.msk.bf16.mxu1 %vm10591_vm0, %v10590_v26 }
 0x5ca   : > { %9551 = vmatmul.mubr.bf16.gmra.mrb[168].mxu1 %v11511_v36 }
 0x5cb   : > { %9554 = vmatprep.mubr.msk.bf16.mxu1 %vm10591_vm0, %v10590_v26 }
 0x5d2   : > { %9555 = vmatmul.mubr.bf16.gmra.mrb[172].mxu1 %v11519_v37 }
 0x5d3   : > { %9558 = vmatprep.mubr.msk.bf16.mxu1 %vm10591_vm0, %v10590_v26 }
 0x5da   : > { %9559 = vmatmul.mubr.bf16.gmra.mrb[176].mxu1 %v11527_v38 }
 0x5db   : > { %9562 = vmatprep.mubr.msk.bf16.mxu1 %vm10591_vm0, %v10590_v26 }
 0x5e2   : > { %9563 = vmatmul.mubr.bf16.gmra.mrb[180].mxu1 %v11535_v39 }
 0x675   : > { %v2902_v0 = vpop.f32.mrb[148].mxu1 }
 0x676   : > { %v9532_v1 = vpop.f32.mrb[149].mxu1 }
 0x677   : > { %v2905_v2 = vpop.f32.mrb[150].mxu1 }
 0x678   : > { %v2973_v3 = vpack.c.bf16 %v2905_v2, %v2902_v0  ;;  %v9533_v4 = vpop.f32.mrb[151].mxu1 }
 0x67d   : > { %v2910_v5 = vpop.f32.mrb[152].mxu1 }
 0x67e   : > { %v9536_v6 = vpop.f32.mrb[153].mxu1 }
 0x67f   : > { %v2913_v7 = vpop.f32.mrb[154].mxu1  ;;  %v10178_v6 = vld [vmem:[%s12921_s7 + $0x1d8] sm:$0xff]  }
 0x680   : > { %v2974_v8 = vpack.c.bf16 %v2913_v7, %v2910_v5  ;;  %v9537_v10 = vpop.f32.mrb[155].mxu1  ;;  %v10179_v7 = vld [vmem:[%s12921_s7 + $0x198] sm:$0xff]  }
 0x682   : > { %3594 = vmatprep.mubr.bf16.mxu0 %v2974_v8  ;;  %v10180_v8 = vld [vmem:[%s12921_s7 + $0x1e0] sm:$0xff]  }
 0x683   : > { %3595 = vmatmul.mubr.bf16.vlgmr.msra.gmra.mrb[120].mxu0 %v2973_v3  ;;  %v10177_v3 = vld [vmem:[%s12921_s7 + $0x190] sm:$0xff]  }
 0x684   : > { %8942 = vmatpush3.bf16.msra.mxu0 %v10157_v9 }
 0x685   : > { %8943 = vmatprep.subr.bf16.mxu0 %v10158_v11  ;;  %v2918_v14 = vpop.f32.mrb[156].mxu1 }
 0x686   : > { %v9540_v15 = vpop.f32.mrb[157].mxu1 }
 0x687   : > { %v2921_v16 = vpop.f32.mrb[158].mxu1  ;;  %v10182_v15 = vld [vmem:[%s12921_s7 + $0x1e8] sm:$0xff]  }
 0x688   : > { %8944 = vmatpush3.bf16.msra.mxu0 %v10159_v12  ;;  %v2975_v18 = vpack.c.bf16 %v2921_v16, %v2918_v14  ;;  %v9541_v19 = vpop.f32.mrb[159].mxu1  ;;  %v10181_v12 = vld [vmem:[%s12921_s7 + $0x1a0] sm:$0xff]   ;;  %v10183_v16 = vld [vmem:[%s12921_s7 + $0x1a8] sm:$0xff]  }
 0x689   : > { %8945 = vmatprep.subr.bf16.mxu0 %v10160_v13 }
 0x68c   : > { %8946 = vmatpush3.bf16.msra.mxu0 %v10161_v17  ;;  %v10186_v17 = vld [vmem:[%s12921_s7 + $0x1f0] sm:$0xff]  }
 0x68d   : > { %8947 = vmatprep.subr.bf16.mxu0 %v10162_v20  ;;  %v2926_v23 = vpop.f32.mrb[160].mxu1 }
 0x68e   : > { %v9544_v24 = vpop.f32.mrb[161].mxu1 }
 0x68f   : > { %v2929_v25 = vpop.f32.mrb[162].mxu1  ;;  %v10190_v24 = vld [vmem:[%s12921_s7 + $0x1f8] sm:$0xff]  }
 0x690   : > { %8948 = vmatpush3.bf16.msra.mxu0 %v10163_v21  ;;  %v2976_v28 = vpack.c.bf16 %v2929_v25, %v2926_v23  ;;  %v9545_v29 = vpop.f32.mrb[163].mxu1  ;;  %v10187_v21 = vld [vmem:[%s12921_s7 + $0x1b0] sm:$0xff]   ;;  %v10191_v25 = vld [vmem:[%s12921_s7 + $0x1b8] sm:$0xff]  }
 0x691   : > { %8949 = vmatprep.subr.bf16.mxu0 %v10164_v22  ;;  %v10200_v29 = vld [vmem:[%s12921_s7 + $0x210] sm:$0xff]  }
 0x692   : > { %3635 = vmatprep.mubr.bf16.mxu0 %v2976_v28  ;;  %v10197_v28 = vld [vmem:[%s12921_s7 + $0x208] sm:$0xff]  }
 0x694   : > { %8950 = vmatpush3.bf16.msra.mxu0 %v10165_v27  ;;  %v10194_v27 = vld [vmem:[%s12921_s7 + $0x200] sm:$0xff]  }
 0x695   : > { %8951 = vmatprep.subr.bf16.mxu0 %v10166_v40  ;;  %v2934_v48 = vpop.f32.mrb[164].mxu1  ;;  %v10203_v40 = vld [vmem:[%s12921_s7 + $0x218] sm:$0xff]  }
 0x696   : > { %v9548_v49 = vpop.f32.mrb[165].mxu1 }
 0x697   : > { %v2937_v32 = vpop.f32.mrb[166].mxu1  ;;  %v10211_v49 = vld [vmem:[%s12921_s7 + $0x238] sm:$0xff]  }
 0x698   : > { %8952 = vmatpush3.bf16.msra.mxu0 %v10167_v41  ;;  %v2977_v51 = vpack.c.bf16 %v2937_v32, %v2934_v48  ;;  %v9549_v46 = vpop.f32.mrb[167].mxu1  ;;  %v10206_v41 = vld [vmem:[%s12921_s7 + $0x220] sm:$0xff]   ;;  %v10210_v48 = vld [vmem:[%s12921_s7 + $0x230] sm:$0xff]  }
 0x699   : > { %8953 = vmatprep.subr.bf16.mxu0 %v10168_v47  ;;  %v10209_v47 = vld [vmem:[%s12921_s7 + $0x228] sm:$0xff]  }
 0x69c   : > { %8954 = vmatpush3.bf16.msra.mxu0 %v10169_v50 }
 0x69d   : > { %8955 = vmatprep.subr.bf16.mxu0 %v10170_v54  ;;  %v2942_v55 = vpop.f32.mrb[168].mxu1 }
 0x69e   : > { %v9552_v56 = vpop.f32.mrb[169].mxu1 }
 0x69f   : > { %v2945_v57 = vpop.f32.mrb[170].mxu1 }
 0x6a0   : > { %8956 = vmatpush3.bf16.msra.mxu0 %v10171_v52  ;;  %v2978_v59 = vpack.c.bf16 %v2945_v57, %v2942_v55  ;;  %v9553_v60 = vpop.f32.mrb[171].mxu1 }
 0x6a1   : > { %8985 = vmatprep.subr.bf16.mxu0 %v10172_v53  ;;  %v3128_v53 = vsub.s32 3, %v10772_v42 }
 0x6a2   : > { %3676 = vmatprep.mubr.bf16.mxu1 %v2978_v59 }
 0x6a3   : > { %3636 = vmatmul.mubr.bf16.vlgmr.msra.gmra.mrb[124].mxu0 %v2975_v18  ;;  %3677 = vmatmul.mubr.bf16.vlgmr.msra.gmra.mrb[184].mxu1 %v2977_v51  ;;  %v3129_v55 = vrot.slane %v11427_v44, %v3128_v53  ;;  %v10235_v53 = vld [vmem:[%s12921_s7 + $0x2d0] sm:$0xff]  }
 0x6a4   : > { %8986 = vmatpush3.bf16.msra.mxu0 %v10173_v58  ;;  %9588 = vmatprep.mubr.msk.bf16.mxu1 %vm10591_vm0, %v10590_v26 }
 0x6a5   : > { %8987 = vmatprep.subr.bf16.mxu0 %v10174_v61  ;;  %v2950_v0 = vpop.f32.mrb[172].mxu1 }
 0x6a6   : > { %v9556_v1 = vpop.f32.mrb[173].mxu1 }
 0x6a7   : > { %v2953_v2 = vpop.f32.mrb[174].mxu1 }
 0x6a8   : > { %8988 = vmatpush3.bf16.msra.mxu0 %v10175_v62  ;;  %v2979_v4 = vpack.c.bf16 %v2953_v2, %v2950_v0  ;;  %v9557_v5 = vpop.f32.mrb[175].mxu1 }
 0x6a9   : > { %8989 = vmatprep.subr.bf16.mxu0 %v10176_v63 }
 0x6ac   : > { %8990 = vmatpush3.bf16.msra.mxu0 %v10177_v3 }
 0x6ad   : > { %8991 = vmatprep.subr.bf16.mxu0 %v10178_v6  ;;  %v2958_v9 = vpop.f32.mrb[176].mxu1 }
 0x6ae   : > { %v9560_v10 = vpop.f32.mrb[177].mxu1 }
 0x6af   : > { %v2961_v11 = vpop.f32.mrb[178].mxu1 }
 0x6b0   : > { %8992 = vmatpush3.bf16.msra.mxu0 %v10179_v7  ;;  %v2980_v13 = vpack.c.bf16 %v2961_v11, %v2958_v9  ;;  %v9561_v14 = vpop.f32.mrb[179].mxu1 }
 0x6b1   : > { %8993 = vmatprep.subr.bf16.mxu0 %v10180_v8 }
 0x6b2   : > { %3717 = vmatprep.mubr.bf16.mxu0 %v2980_v13 }
 0x6b4   : > { %8994 = vmatpush3.bf16.msra.mxu0 %v10181_v12 }
 0x6b5   : > { %8995 = vmatprep.subr.bf16.mxu0 %v10182_v15  ;;  %v2966_v18 = vpop.f32.mrb[180].mxu1 }
 0x6b6   : > { %v9564_v19 = vpop.f32.mrb[181].mxu1 }
 0x6b7   : > { %v2969_v20 = vpop.f32.mrb[182].mxu1 }
 0x6b8   : > { %8996 = vmatpush3.bf16.msra.mxu0 %v10183_v16  ;;  %v2981_v22 = vpack.c.bf16 %v2969_v20, %v2966_v18  ;;  %v9565_v23 = vpop.f32.mrb[183].mxu1  ;;  %v2704_v18 = vsub.s32 2, %v10772_v42 }
 0x6b9   : > { %8997 = vmatprep.subr.bf16.mxu0 %v10186_v17 }
 0x6ba   : > { %v2705_v19 = vrot.slane %v11427_v44, %v2704_v18  ;;  %v10240_v18 = vld [vmem:[%s12921_s7 + $0x390] sm:$0xff]  }
 0x6bc   : > { %8998 = vmatpush3.bf16.msra.mxu0 %v10187_v21 }
 0x6bd   : > { %8999 = vmatprep.subr.bf16.mxu0 %v10190_v24 }
 0x6c0   : > { %9000 = vmatpush3.bf16.msra.mxu0 %v10191_v25 }
 0x6c1   : > { %9566 = vmatprep.subr.bf16.mxu0 %v10590_v26 }
 0x6c3   : > { %3718 = vmatmul.mubr.bf16.vlgmr.msra.gmra.mrb[128].mxu0 %v2979_v4 }
 0x6c4   : > { %9567 = vmatpush3.bf16.msra.mxu0 %v10194_v27  ;;  %9582 = vmatprep.mubr.msk.bf16.mxu0 %vm10591_vm0, %v10590_v26 }
 0x6c5   : > { %9568 = vmatprep.subr.bf16.mxu0 %v10590_v26 }
 0x6c8   : > { %9569 = vmatpush3.bf16.msra.mxu0 %v10197_v28 }
 0x6c9   : > { %9570 = vmatprep.subr.bf16.mxu0 %v10590_v26 }
 0x6cc   : > { %9571 = vmatpush3.bf16.msra.mxu0 %v10200_v29 }
 0x6cd   : > { %9572 = vmatprep.subr.bf16.mxu0 %v10590_v26 }
 0x6d0   : > { %9573 = vmatpush3.bf16.msra.mxu0 %v10203_v40 }
 0x6d1   : > { %9574 = vmatprep.subr.bf16.mxu0 %v10590_v26 }
 0x6d4   : > { %9575 = vmatpush3.bf16.msra.mxu0 %v10206_v41  ;;  %v10212_v41 = vld [vmem:[%s12921_s7 + $0x280] sm:$0xff]  }
 0x6d5   : > { %9576 = vmatprep.subr.bf16.mxu0 %v10590_v26 }
 0x6d8   : > { %9577 = vmatpush3.bf16.msra.mxu0 %v10209_v47  ;;  %v10213_v47 = vld [vmem:[%s12921_s7 + $0x240] sm:$0xff]  }
 0x6d9   : > { %9578 = vmatprep.subr.bf16.mxu0 %v10590_v26 }
 0x6dc   : > { %9579 = vmatpush3.bf16.msra.mxu0 %v10210_v48  ;;  %v10214_v48 = vld [vmem:[%s12921_s7 + $0x288] sm:$0xff]  }
 0x6dd   : > { %9580 = vmatprep.subr.bf16.mxu0 %v10590_v26 }
 0x6e0   : > { %9581 = vmatpush3.bf16.msra.mxu0 %v10211_v49  ;;  %v10215_v49 = vld [vmem:[%s12921_s7 + $0x248] sm:$0xff]  }
 0x6e3   : > { %9583 = vmatmul.mubr.bf16.vlgmr.msra.gmra.mrb[116].mxu0 %v2981_v22 }
 0x756   : > { %v8935_v32 = vpop.f32.mrb[120].mxu0 }
 0x757   : > { %v8936_v50 = vpop.f32.mrb[121].mxu0 }
 0x758   : > { %v8937_v51 = vadd.f32 %v8936_v50, %v8935_v32  ;;  %v8938_v46 = vpop.f32.mrb[122].mxu0  ;;  %v10216_v32 = vld [vmem:[%s12921_s7 + $0x290] sm:$0xff]  }
 0x759   : > { %v8939_v54 = vpop.f32.mrb[123].mxu0  ;;  %v10217_v50 = vld [vmem:[%s12921_s7 + $0x250] sm:$0xff]  }
 0x75a   : > { %v8940_v52 = vadd.f32 %v8939_v54, %v8938_v46  ;;  %v3597_v60 = vadd.f32 %v8937_v51, %v3129_v55  ;;  %v10219_v51 = vld [vmem:[%s12921_s7 + $0x258] sm:$0xff]   ;;  %v10220_v46 = vld [vmem:[%s12921_s7 + $0x2a0] sm:$0xff]  }
 0x75b   : > { %v10221_v54 = vld [vmem:[%s12921_s7 + $0x260] sm:$0xff]  }
 0x75c   : > { %v3600_v3 = vadd.f32 %v8940_v52, %v3129_v55  ;;  %v10223_v52 = vld [vmem:[%s12921_s7 + $0x268] sm:$0xff]   ;;  %v10227_v55 = vld [vmem:[%s12921_s7 + $0x2b8] sm:$0xff]  }
 0x776   : > { %v8957_v56 = vpop.f32.mrb[124].mxu0  ;;  %v8979_v57 = vpop.f32.mrb[184].mxu1 }
 0x777   : > { %v8958_v58 = vpop.f32.mrb[125].mxu0  ;;  %v8980_v59 = vpop.f32.mrb[185].mxu1 }
 0x778   : > { %v8959_v61 = vadd.f32 %v8958_v58, %v8957_v56  ;;  %v8960_v62 = vpop.f32.mrb[126].mxu0  ;;  %v8981_v63 = vadd.f32 %v8980_v59, %v8979_v57  ;;  %v8982_v0 = vpop.f32.mrb[186].mxu1  ;;  %v10229_v56 = vld [vmem:[%s12921_s7 + $0x278] sm:$0xff]   ;;  %v10232_v59 = vld [vmem:[%s12921_s7 + $0x380] sm:$0xff]  }
 0x779   : > { %v8961_v1 = vpop.f32.mrb[127].mxu0  ;;  %v8983_v2 = vpop.f32.mrb[187].mxu1  ;;  %v10238_v57 = vld [vmem:[%s12921_s7 + $0x318] sm:$0xff]  }
 0x77a   : > { %v3638_v4 = vadd.f32 %v8959_v61, %v3597_v60  ;;  %v8962_v5 = vadd.f32 %v8961_v1, %v8960_v62  ;;  %v8984_v6 = vadd.f32 %v8983_v2, %v8982_v0  ;;  %v10239_v58 = vld [vmem:[%s12921_s7 + $0x2d8] sm:$0xff]   ;;  %v10242_v60 = vld [vmem:[%s12921_s7 + $0x320] sm:$0xff]   ;;  %v10246_v62 = vld [vmem:[%s12921_s7 + $0x328] sm:$0xff]  }
 0x77b   : > { %v10243_v61 = vld [vmem:[%s12921_s7 + $0x2e0] sm:$0xff]   ;;  %v10250_v0 = vld [vmem:[%s12921_s7 + $0x330] sm:$0xff]   ;;  %v10254_v2 = vld [vmem:[%s12921_s7 + $0x338] sm:$0xff]  }
 0x77c   : > { %v3641_v7 = vadd.f32 %v8962_v5, %v3600_v3  ;;  %v3679_v8 = vadd.f32 %v8981_v63, %v3638_v4  ;;  %v10247_v63 = vld [vmem:[%s12921_s7 + $0x2e8] sm:$0xff]   ;;  %v10251_v1 = vld [vmem:[%s12921_s7 + $0x2f0] sm:$0xff]   ;;  %v10255_v3 = vld [vmem:[%s12921_s7 + $0x2f8] sm:$0xff]  }
 0x77d   : > { %v10258_v4 = vld [vmem:[%s12921_s7 + $0x400] sm:$0xff]  }
 0x77e   : > { %v3682_v9 = vadd.f32 %v8984_v6, %v3641_v7 }
 0x796   : > { %v9001_v10 = vpop.f32.mrb[128].mxu0 }
 0x797   : > { %v9002_v11 = vpop.f32.mrb[129].mxu0 }
 0x798   : > { %v9003_v12 = vadd.f32 %v9002_v11, %v9001_v10  ;;  %v9004_v13 = vpop.f32.mrb[130].mxu0 }
 0x799   : > { %v9005_v14 = vpop.f32.mrb[131].mxu0 }
 0x79a   : > { %v3720_v15 = vadd.f32 %v9003_v12, %v3679_v8  ;;  %v9006_v16 = vadd.f32 %v9005_v14, %v9004_v13  ;;  %v10233_v14 = vld [vmem:[%s12921_s7 + $0x340] sm:$0xff]  }
 0x79c   : > { %v3723_v17 = vadd.f32 %v9006_v16, %v3682_v9  ;;  %v9818_v20 = vadd.f32 %v3720_v15, %v2705_v19  ;;  %v10236_v16 = vld [vmem:[%s12921_s7 + $0x388] sm:$0xff]  }
 0x79e   : > { %v9820_v24 = vadd.f32 %v3723_v17, %v2705_v19  ;;  %v10237_v17 = vld [vmem:[%s12921_s7 + $0x348] sm:$0xff]  }
 0x7b6   : > { %v3760_v21 = vpop.f32.mrb[116].mxu0 }
 0x7b7   : > { %v11735_v22 = vadd.f32 %v9818_v20, %v3760_v21  ;;  %v9584_v23 = vpop.f32.mrb[117].mxu0 }
 0x7b8   : > { %v3763_v25 = vpop.f32.mrb[118].mxu0  ;;  %v10241_v23 = vld [vmem:[%s12921_s7 + $0x350] sm:$0xff]  }
 0x7b9   : > { %v11737_v27 = vadd.f32 %v9820_v24, %v3763_v25  ;;  %v9585_v28 = vpop.f32.mrb[119].mxu0  ;;  %v3769_v29 = vmax.f32 %v11735_v22, 0.0  ;;  %v10368_v22 = vld [vmem:[%s12921_s7 + $0x730] sm:$0xff]  }
 0x7ba   : > { %v10244_v28 = vld [vmem:[%s12921_s7 + $0x398] sm:$0xff]  }
 0x7bb   : > { %v3770_v40 = vmax.f32 %v11737_v27, 0.0  ;;  %v10369_v27 = vld [vmem:[%s12921_s7 + $0x6f0] sm:$0xff]  }
 0x7bd   : > { %v3771_v44 = vpack.c.bf16 %v3770_v40, %v3769_v29 }
 0x7bf   : > { %9587 = vmatpush3.bf16.msra.mxu1 %v3771_v44  ;;  %v10248_v44 = vld [vmem:[%s12921_s7 + $0x3a0] sm:$0xff]  }
 0x7c0   : > { %9026 = vmatprep.subr.bf16.mxu1 %v10212_v41  ;;  %v10245_v41 = vld [vmem:[%s12921_s7 + $0x358] sm:$0xff]  }
 0x7c2   : > { %9589 = vmatmul.mubr.bf16.vlgmr.msra.gmra.mrb[188].mxu1 %v11471_v30  ;;  %v10218_v30 = vld [vmem:[%s12921_s7 + $0x298] sm:$0xff]  }
 0x7c3   : > { %9592 = vmatprep.mubr.msk.bf16.mxu1 %vm10591_vm0, %v10590_v26  ;;  %9027 = vmatpush3.bf16.msra.mxu1 %v10213_v47 }
 0x7c4   : > { %9028 = vmatprep.subr.bf16.mxu1 %v10214_v48 }
 0x7c7   : > { %9029 = vmatpush3.bf16.msra.mxu1 %v10215_v49 }
 0x7c8   : > { %9030 = vmatprep.subr.bf16.mxu1 %v10216_v32  ;;  %v10249_v32 = vld [vmem:[%s12921_s7 + $0x360] sm:$0xff]  }
 0x7ca   : > { %9593 = vmatmul.mubr.bf16.gmra.mrb[192].mxu1 %v11479_v31  ;;  %v10222_v31 = vld [vmem:[%s12921_s7 + $0x2a8] sm:$0xff]  }
 0x7cb   : > { %9596 = vmatprep.mubr.msk.bf16.mxu1 %vm10591_vm0, %v10590_v26  ;;  %9031 = vmatpush3.bf16.msra.mxu1 %v10217_v50 }
 0x7cc   : > { %9032 = vmatprep.subr.bf16.mxu1 %v10218_v30 }
 0x7cf   : > { %9033 = vmatpush3.bf16.msra.mxu1 %v10219_v51  ;;  %v10260_v51 = vld [vmem:[%s12921_s7 + $0x3c0] sm:$0xff]  }
 0x7d0   : > { %9034 = vmatprep.subr.bf16.mxu1 %v10220_v46  ;;  %v10252_v46 = vld [vmem:[%s12921_s7 + $0x3a8] sm:$0xff]  }
 0x7d2   : > { %9597 = vmatmul.mubr.bf16.gmra.mrb[196].mxu1 %v11487_v33  ;;  %v10226_v33 = vld [vmem:[%s12921_s7 + $0x300] sm:$0xff]  }
 0x7d3   : > { %9600 = vmatprep.mubr.msk.bf16.mxu1 %vm10591_vm0, %v10590_v26  ;;  %9035 = vmatpush3.bf16.msra.mxu1 %v10221_v54  ;;  %v10262_v54 = vld [vmem:[%s12921_s7 + $0x408] sm:$0xff]  }
 0x7d4   : > { %9036 = vmatprep.subr.bf16.mxu1 %v10222_v31  ;;  %9048 = vmatprep.subr.bf16.mxu0 %v10226_v33  ;;  %v10253_v31 = vld [vmem:[%s12921_s7 + $0x368] sm:$0xff]  }
 0x7d7   : > { %9037 = vmatpush3.bf16.msra.mxu1 %v10223_v52  ;;  %v10263_v52 = vld [vmem:[%s12921_s7 + $0x3c8] sm:$0xff]  }
 0x7da   : > { %9601 = vmatmul.mubr.bf16.gmra.mrb[200].mxu1 %v11495_v34  ;;  %v10228_v34 = vld [vmem:[%s12921_s7 + $0x2c0] sm:$0xff]  }
 0x7db   : > { %9604 = vmatprep.mubr.msk.bf16.mxu1 %vm10591_vm0, %v10590_v26  ;;  %9049 = vmatpush3.bf16.msra.mxu0 %v10228_v34  ;;  %v10256_v34 = vld [vmem:[%s12921_s7 + $0x3b0] sm:$0xff]  }
 0x7e2   : > { %9605 = vmatmul.mubr.bf16.gmra.mrb[204].mxu1 %v11503_v35  ;;  %v10230_v35 = vld [vmem:[%s12921_s7 + $0x308] sm:$0xff]  }
 0x7e3   : > { %9608 = vmatprep.mubr.msk.bf16.mxu1 %vm10591_vm0, %v10590_v26  ;;  %9050 = vmatprep.subr.bf16.mxu0 %v10230_v35  ;;  %v10265_v35 = vld [vmem:[%s12921_s7 + $0x410] sm:$0xff]  }
 0x7ea   : > { %9609 = vmatmul.mubr.bf16.gmra.mrb[208].mxu1 %v11511_v36  ;;  %v10224_v36 = vld [vmem:[%s12921_s7 + $0x2b0] sm:$0xff]  }
 0x7eb   : > { %9612 = vmatprep.mubr.msk.bf16.mxu1 %vm10591_vm0, %v10590_v26  ;;  %9038 = vmatprep.subr.bf16.mxu1 %v10224_v36 }
 0x7f2   : > { %9613 = vmatmul.mubr.bf16.gmra.mrb[212].mxu1 %v11519_v37  ;;  %v10231_v37 = vld [vmem:[%s12921_s7 + $0x2c8] sm:$0xff]  }
 0x7f3   : > { %9616 = vmatprep.mubr.msk.bf16.mxu1 %vm10591_vm0, %v10590_v26  ;;  %9051 = vmatpush3.bf16.msra.mxu0 %v10231_v37 }
 0x7fa   : > { %9617 = vmatmul.mubr.bf16.gmra.mrb[216].mxu1 %v11527_v38  ;;  %v10225_v38 = vld [vmem:[%s12921_s7 + $0x270] sm:$0xff]  }
 0x7fb   : > { %9620 = vmatprep.mubr.msk.bf16.mxu1 %vm10591_vm0, %v10590_v26  ;;  %9039 = vmatpush3.bf16.msra.mxu1 %v10225_v38 }
 0x7fc   : > { %9040 = vmatprep.subr.bf16.mxu1 %v10227_v55  ;;  %v10266_v55 = vld [vmem:[%s12921_s7 + $0x3d0] sm:$0xff]  }
 0x7ff   : > { %9041 = vmatpush3.bf16.msra.mxu1 %v10229_v56  ;;  %v10259_v56 = vld [vmem:[%s12921_s7 + $0x3b8] sm:$0xff]  }
 0x800   : > { %9070 = vmatprep.subr.bf16.mxu1 %v10232_v59  ;;  %v10269_v59 = vld [vmem:[%s12921_s7 + $0x3d8] sm:$0xff]  }
 0x802   : > { %9621 = vmatmul.mubr.bf16.gmra.mrb[220].mxu1 %v11535_v39  ;;  %v10234_v39 = vld [vmem:[%s12921_s7 + $0x310] sm:$0xff]  }
 0x803   : > { %9052 = vmatprep.subr.bf16.mxu0 %v10234_v39  ;;  %v10257_v39 = vld [vmem:[%s12921_s7 + $0x370] sm:$0xff]  }
 0x804   : > { %9053 = vmatpush3.bf16.msra.mxu0 %v10235_v53 }
 0x805   : > { %9054 = vmatprep.subr.bf16.mxu0 %v10238_v57  ;;  %v10268_v57 = vld [vmem:[%s12921_s7 + $0x418] sm:$0xff]  }
 0x808   : > { %9055 = vmatpush3.bf16.msra.mxu0 %v10239_v58  ;;  %v10261_v58 = vld [vmem:[%s12921_s7 + $0x378] sm:$0xff]  }
 0x809   : > { %9056 = vmatprep.subr.bf16.mxu0 %v10242_v60 }
 0x80c   : > { %9057 = vmatpush3.bf16.msra.mxu0 %v10243_v61  ;;  %v10271_v61 = vld [vmem:[%s12921_s7 + $0x420] sm:$0xff]  }
 0x80d   : > { %9058 = vmatprep.subr.bf16.mxu0 %v10246_v62 }
 0x810   : > { %9059 = vmatpush3.bf16.msra.mxu0 %v10247_v63 }
 0x811   : > { %9060 = vmatprep.subr.bf16.mxu0 %v10250_v0 }
 0x814   : > { %9061 = vmatpush3.bf16.msra.mxu0 %v10251_v1  ;;  %v10264_v1 = vld [vmem:[%s12921_s7 + $0x440] sm:$0xff]  }
 0x815   : > { %9062 = vmatprep.subr.bf16.mxu0 %v10254_v2  ;;  %v10272_v2 = vld [vmem:[%s12921_s7 + $0x3e0] sm:$0xff]  }
 0x818   : > { %9063 = vmatpush3.bf16.msra.mxu0 %v10255_v3 }
 0x819   : > { %9092 = vmatprep.subr.bf16.mxu0 %v10258_v4  ;;  %v10274_v4 = vld [vmem:[%s12921_s7 + $0x428] sm:$0xff]  }
 0x895   : > { %v3806_v5 = vpop.f32.mrb[188].mxu1 }
 0x896   : > { %v9590_v6 = vpop.f32.mrb[189].mxu1 }
 0x897   : > { %v3809_v7 = vpop.f32.mrb[190].mxu1  ;;  %v10275_v6 = vld [vmem:[%s12921_s7 + $0x3e8] sm:$0xff]  }
 0x898   : > { %v3877_v8 = vpack.c.bf16 %v3809_v7, %v3806_v5  ;;  %v9591_v9 = vpop.f32.mrb[191].mxu1  ;;  %v10267_v5 = vld [vmem:[%s12921_s7 + $0x448] sm:$0xff]  }
 0x89d   : > { %v3814_v10 = vpop.f32.mrb[192].mxu1 }
 0x89e   : > { %v9594_v11 = vpop.f32.mrb[193].mxu1 }
 0x89f   : > { %v3817_v12 = vpop.f32.mrb[194].mxu1  ;;  %v10270_v11 = vld [vmem:[%s12921_s7 + $0x450] sm:$0xff]  }
 0x8a0   : > { %v3878_v13 = vpack.c.bf16 %v3817_v12, %v3814_v10  ;;  %v9595_v15 = vpop.f32.mrb[195].mxu1 }
 0x8a1   : > { %v10280_v15 = vld [vmem:[%s12921_s7 + $0x438] sm:$0xff]  }
 0x8a2   : > { %4499 = vmatprep.mubr.bf16.mxu1 %v3878_v13 }
 0x8a3   : > { %4500 = vmatmul.mubr.bf16.vlgmr.msra.gmra.mrb[224].mxu1 %v3877_v8  ;;  %v10277_v8 = vld [vmem:[%s12921_s7 + $0x430] sm:$0xff]  }
 0x8a4   : > { %9071 = vmatpush3.bf16.msra.mxu1 %v10233_v14  ;;  %v10278_v14 = vld [vmem:[%s12921_s7 + $0x3f0] sm:$0xff]  }
 0x8a5   : > { %9072 = vmatprep.subr.bf16.mxu1 %v10236_v16  ;;  %v3822_v19 = vpop.f32.mrb[196].mxu1  ;;  %v10273_v16 = vld [vmem:[%s12921_s7 + $0x458] sm:$0xff]  }
 0x8a6   : > { %v9598_v20 = vpop.f32.mrb[197].mxu1 }
 0x8a7   : > { %v3825_v21 = vpop.f32.mrb[198].mxu1 }
 0x8a8   : > { %9073 = vmatpush3.bf16.msra.mxu1 %v10237_v17  ;;  %v3879_v24 = vpack.c.bf16 %v3825_v21, %v3822_v19  ;;  %v9599_v25 = vpop.f32.mrb[199].mxu1  ;;  %v10281_v17 = vld [vmem:[%s12921_s7 + $0x3f8] sm:$0xff]   ;;  %v10276_v21 = vld [vmem:[%s12921_s7 + $0x460] sm:$0xff]  }
 0x8a9   : > { %9074 = vmatprep.subr.bf16.mxu1 %v10240_v18  ;;  %v10279_v25 = vld [vmem:[%s12921_s7 + $0x468] sm:$0xff]  }
 0x8ac   : > { %9075 = vmatpush3.bf16.msra.mxu1 %v10241_v23 }
 0x8ad   : > { %9076 = vmatprep.subr.bf16.mxu1 %v10244_v28  ;;  %v3830_v47 = vpop.f32.mrb[200].mxu1 }
 0x8ae   : > { %v9602_v48 = vpop.f32.mrb[201].mxu1 }
 0x8af   : > { %v3833_v49 = vpop.f32.mrb[202].mxu1 }
 0x8b0   : > { %9077 = vmatpush3.bf16.msra.mxu1 %v10245_v41  ;;  %v3880_v50 = vpack.c.bf16 %v3833_v49, %v3830_v47  ;;  %v9603_v30 = vpop.f32.mrb[203].mxu1  ;;  %v10282_v47 = vld [vmem:[%s12921_s7 + $0x470] sm:$0xff]  }
 0x8b1   : > { %9078 = vmatprep.subr.bf16.mxu1 %v10248_v44 }
 0x8b2   : > { %4540 = vmatprep.mubr.bf16.mxu0 %v3880_v50 }
 0x8b3   : > { %4541 = vmatmul.mubr.bf16.vlgmr.msra.gmra.mrb[132].mxu0 %v3879_v24 }
 0x8b4   : > { %9079 = vmatpush3.bf16.msra.mxu1 %v10249_v32  ;;  %9093 = vmatpush3.bf16.msra.mxu0 %v10260_v51  ;;  %v10283_v32 = vld [vmem:[%s12921_s7 + $0x478] sm:$0xff]  }
 0x8b5   : > { %9080 = vmatprep.subr.bf16.mxu1 %v10252_v46  ;;  %v3838_v33 = vpop.f32.mrb[204].mxu1  ;;  %9094 = vmatprep.subr.bf16.mxu0 %v10262_v54 }
 0x8b6   : > { %v9606_v36 = vpop.f32.mrb[205].mxu1 }
 0x8b7   : > { %v3841_v37 = vpop.f32.mrb[206].mxu1  ;;  %v12012_v36 = vld [vmem:[%s12922_s8] sm:$0xff] }
 0x8b8   : > { %9081 = vmatpush3.bf16.msra.mxu1 %v10253_v31  ;;  %v3881_v38 = vpack.c.bf16 %v3841_v37, %v3838_v33  ;;  %v9607_v53 = vpop.f32.mrb[207].mxu1  ;;  %9095 = vmatpush3.bf16.msra.mxu0 %v10263_v52  ;;  %v4033_v52 = vsub.s32 4, %v10772_v42  ;;  %v10284_v33 = vld [vmem:[%s12921_s7 + $0x4c0] sm:$0xff]  }
 0x8b9   : > { %9082 = vmatprep.subr.bf16.mxu1 %v10256_v34  ;;  %9096 = vmatprep.subr.bf16.mxu0 %v10265_v35  ;;  %v10285_v34 = vld [vmem:[%s12921_s7 + $0x480] sm:$0xff]   ;;  %v10286_v35 = vld [vmem:[%s12921_s7 + $0x4c8] sm:$0xff]   ;;  %v10288_v53 = vld [vmem:[%s12921_s7 + $0x4d0] sm:$0xff]  }
 0x8ba   : > { %v4034_v37 = vrot.slane %v12012_v36, %v4033_v52  ;;  %v12093_v52 = vld [vmem:[%s12918_s4 + $0x30] sm:$0xff]  }
 0x8bc   : > { %9083 = vmatpush3.bf16.msra.mxu1 %v10257_v39  ;;  %9097 = vmatpush3.bf16.msra.mxu0 %v10266_v55 }
 0x8bd   : > { %v3846_v60 = vpop.f32.mrb[208].mxu1  ;;  %9084 = vmatprep.subr.bf16.mxu1 %v10259_v56  ;;  %9098 = vmatprep.subr.bf16.mxu0 %v10268_v57 }
 0x8be   : > { %v9610_v62 = vpop.f32.mrb[209].mxu1 }
 0x8bf   : > { %v3849_v63 = vpop.f32.mrb[210].mxu1 }
 0x8c0   : > { %v3882_v0 = vpack.c.bf16 %v3849_v63, %v3846_v60  ;;  %9085 = vmatpush3.bf16.msra.mxu1 %v10261_v58  ;;  %9099 = vmatpush3.bf16.msra.mxu0 %v10269_v59  ;;  %v9611_v3 = vpop.f32.mrb[211].mxu1  ;;  %v10289_v60 = vld [vmem:[%s12921_s7 + $0x490] sm:$0xff]  }
 0x8c1   : > { %9624 = vmatprep.subr.bf16.mxu1 %v10590_v26  ;;  %9100 = vmatprep.subr.bf16.mxu0 %v10271_v61  ;;  %v10292_v3 = vld [vmem:[%s12921_s7 + $0x4e0] sm:$0xff]  }
 0x8c2   : > { %4581 = vmatprep.mubr.bf16.mxu1 %v3882_v0  ;;  %v10290_v0 = vld [vmem:[%s12921_s7 + $0x4d8] sm:$0xff]  }
 0x8c3   : > { %4582 = vmatmul.mubr.bf16.vlgmr.msra.gmra.mrb[228].mxu1 %v3881_v38  ;;  %v10287_v38 = vld [vmem:[%s12921_s7 + $0x488] sm:$0xff]  }
 0x8c4   : > { %9625 = vmatpush3.bf16.msra.mxu1 %v10264_v1  ;;  %9101 = vmatpush3.bf16.msra.mxu0 %v10272_v2  ;;  %v10291_v2 = vld [vmem:[%s12921_s7 + $0x498] sm:$0xff]  }
 0x8c5   : > { %9626 = vmatprep.subr.bf16.mxu1 %v10590_v26  ;;  %9102 = vmatprep.subr.bf16.mxu0 %v10274_v4  ;;  %v3854_v7 = vpop.f32.mrb[212].mxu1  ;;  %v10293_v4 = vld [vmem:[%s12921_s7 + $0x4a0] sm:$0xff]  }
 0x8c6   : > { %v9614_v9 = vpop.f32.mrb[213].mxu1  ;;  %9640 = vmatprep.mubr.msk.bf16.mxu1 %vm10591_vm0, %v10590_v26 }
 0x8c7   : > { %v3857_v10 = vpop.f32.mrb[214].mxu1 }
 0x8c8   : > { %9627 = vmatpush3.bf16.msra.mxu1 %v10267_v5  ;;  %9103 = vmatpush3.bf16.msra.mxu0 %v10275_v6  ;;  %v3883_v12 = vpack.c.bf16 %v3857_v10, %v3854_v7  ;;  %v9615_v13 = vpop.f32.mrb[215].mxu1  ;;  %v10294_v5 = vld [vmem:[%s12921_s7 + $0x4e8] sm:$0xff]  }
 0x8c9   : > { %9628 = vmatprep.subr.bf16.mxu1 %v10590_v26  ;;  %9104 = vmatprep.subr.bf16.mxu0 %v10277_v8  ;;  %v10295_v6 = vld [vmem:[%s12921_s7 + $0x4a8] sm:$0xff]  }
 0x8cc   : > { %9629 = vmatpush3.bf16.msra.mxu1 %v10270_v11  ;;  %9105 = vmatpush3.bf16.msra.mxu0 %v10278_v14 }
 0x8cd   : > { %9630 = vmatprep.subr.bf16.mxu1 %v10590_v26  ;;  %v3862_v18 = vpop.f32.mrb[216].mxu1  ;;  %9106 = vmatprep.subr.bf16.mxu0 %v10280_v15 }
 0x8ce   : > { %v9618_v19 = vpop.f32.mrb[217].mxu1 }
 0x8cf   : > { %v3865_v20 = vpop.f32.mrb[218].mxu1 }
 0x8d0   : > { %9631 = vmatpush3.bf16.msra.mxu1 %v10273_v16  ;;  %v3884_v23 = vpack.c.bf16 %v3865_v20, %v3862_v18  ;;  %9107 = vmatpush3.bf16.msra.mxu0 %v10281_v17  ;;  %v9619_v24 = vpop.f32.mrb[219].mxu1 }
 0x8d1   : > { %9632 = vmatprep.subr.bf16.mxu1 %v10590_v26  ;;  %9644 = vmatprep.subr.bf16.mxu0 %v10590_v26 }
 0x8d2   : > { %4622 = vmatprep.mubr.bf16.mxu0 %v3884_v23 }
 0x8d3   : > { %4623 = vmatmul.mubr.bf16.vlgmr.msra.gmra.mrb[136].mxu0 %v3883_v12 }
 0x8d4   : > { %9633 = vmatpush3.bf16.msra.mxu1 %v10276_v21  ;;  %9646 = vmatprep.mubr.msk.bf16.mxu0 %vm10591_vm0, %v10590_v26 }
 0x8d5   : > { %9634 = vmatprep.subr.bf16.mxu1 %v10590_v26  ;;  %v3870_v28 = vpop.f32.mrb[220].mxu1 }
 0x8d6   : > { %v9622_v41 = vpop.f32.mrb[221].mxu1 }
 0x8d7   : > { %v3873_v44 = vpop.f32.mrb[222].mxu1 }
 0x8d8   : > { %9635 = vmatpush3.bf16.msra.mxu1 %v10279_v25  ;;  %v3885_v48 = vpack.c.bf16 %v3873_v44, %v3870_v28  ;;  %v9623_v49 = vpop.f32.mrb[223].mxu1 }
 0x8d9   : > { %9636 = vmatprep.subr.bf16.mxu1 %v10590_v26 }
 0x8dc   : > { %9637 = vmatpush3.bf16.msra.mxu1 %v10282_v47 }
 0x8dd   : > { %9638 = vmatprep.subr.bf16.mxu1 %v10590_v26 }
 0x8e0   : > { %9639 = vmatpush3.bf16.msra.mxu1 %v10283_v32 }
 0x8e1   : > { %9133 = vmatprep.subr.bf16.mxu1 %v10284_v33  ;;  %v12101_v33 = vld [vmem:[%s12918_s4 + $0x38] sm:$0xff]  }
 0x8e3   : > { %9641 = vmatmul.mubr.bf16.vlgmr.msra.gmra.mrb[232].mxu1 %v3885_v48 }
 0x8e4   : > { %9134 = vmatpush3.bf16.msra.mxu1 %v10285_v34  ;;  %v12109_v34 = vld [vmem:[%s12918_s4 + $0x40] sm:$0xff]  }
 0x8e5   : > { %9135 = vmatprep.subr.bf16.mxu1 %v10286_v35  ;;  %v10298_v35 = vld [vmem:[%s12921_s7 + $0x540] sm:$0xff]  }
 0x8e8   : > { %9136 = vmatpush3.bf16.msra.mxu1 %v10287_v38  ;;  %v10302_v38 = vld [vmem:[%s12921_s7 + $0x548] sm:$0xff]  }
 0x8e9   : > { %9137 = vmatprep.subr.bf16.mxu1 %v10288_v53  ;;  %v10303_v53 = vld [vmem:[%s12921_s7 + $0x508] sm:$0xff]  }
 0x8ec   : > { %9138 = vmatpush3.bf16.msra.mxu1 %v10289_v60  ;;  %v10310_v60 = vld [vmem:[%s12921_s7 + $0x558] sm:$0xff]  }
 0x8ed   : > { %9139 = vmatprep.subr.bf16.mxu1 %v10290_v0  ;;  %v10315_v0 = vld [vmem:[%s12921_s7 + $0x520] sm:$0xff]  }
 0x8f0   : > { %9140 = vmatpush3.bf16.msra.mxu1 %v10291_v2  ;;  %v10319_v2 = vld [vmem:[%s12921_s7 + $0x528] sm:$0xff]  }
 0x8f1   : > { %9141 = vmatprep.subr.bf16.mxu1 %v10292_v3  ;;  %v10322_v3 = vld [vmem:[%s12921_s7 + $0x570] sm:$0xff]  }
 0x8f4   : > { %9142 = vmatpush3.bf16.msra.mxu1 %v10293_v4  ;;  %v10323_v4 = vld [vmem:[%s12921_s7 + $0x530] sm:$0xff]  }
 0x8f5   : > { %9143 = vmatprep.subr.bf16.mxu1 %v10294_v5  ;;  %v10326_v5 = vld [vmem:[%s12921_s7 + $0x578] sm:$0xff]  }
 0x8f8   : > { %9144 = vmatpush3.bf16.msra.mxu1 %v10295_v6  ;;  %v10327_v6 = vld [vmem:[%s12921_s7 + $0x538] sm:$0xff]  }
 0x976   : > { %v9042_v50 = vpop.f32.mrb[224].mxu1 }
 0x977   : > { %v9043_v30 = vpop.f32.mrb[225].mxu1 }
 0x978   : > { %v9044_v51 = vadd.f32 %v9043_v30, %v9042_v50  ;;  %v9045_v46 = vpop.f32.mrb[226].mxu1  ;;  %v12045_v50 = vld [vmem:[%s12918_s4] sm:$0xff]   ;;  %v12053_v30 = vld [vmem:[%s12918_s4 + $0x8] sm:$0xff]  }
 0x979   : > { %v9046_v54 = vpop.f32.mrb[227].mxu1 }
 0x97a   : > { %v9047_v31 = vadd.f32 %v9046_v54, %v9045_v46  ;;  %v4502_v56 = vadd.f32 %v9044_v51, %v4034_v37  ;;  %v12061_v51 = vld [vmem:[%s12918_s4 + $0x10] sm:$0xff]   ;;  %v12069_v46 = vld [vmem:[%s12918_s4 + $0x18] sm:$0xff]   ;;  %v12077_v54 = vld [vmem:[%s12918_s4 + $0x20] sm:$0xff]  }
 0x97c   : > { %v4505_v61 = vadd.f32 %v9047_v31, %v4034_v37  ;;  %v12085_v31 = vld [vmem:[%s12918_s4 + $0x28] sm:$0xff]   ;;  %v10300_v37 = vld [vmem:[%s12921_s7 + $0x500] sm:$0xff]  }
 0x986   : > { %v9064_v39 = vpop.f32.mrb[132].mxu0 }
 0x987   : > { %v9065_v55 = vpop.f32.mrb[133].mxu0 }
 0x988   : > { %v9066_v57 = vadd.f32 %v9065_v55, %v9064_v39  ;;  %v9067_v58 = vpop.f32.mrb[134].mxu0  ;;  %v10296_v39 = vld [vmem:[%s12921_s7 + $0x4f0] sm:$0xff]  }
 0x989   : > { %v9068_v59 = vpop.f32.mrb[135].mxu0  ;;  %9145 = vmatprep.subr.bf16.mxu1 %v10296_v39  ;;  %v10297_v55 = vld [vmem:[%s12921_s7 + $0x4b0] sm:$0xff]  }
 0x98a   : > { %v4543_v62 = vadd.f32 %v9066_v57, %v4502_v56  ;;  %v9069_v63 = vadd.f32 %v9068_v59, %v9067_v58  ;;  %9146 = vmatpush3.bf16.msra.mxu1 %v10297_v55  ;;  %v10306_v56 = vld [vmem:[%s12921_s7 + $0x550] sm:$0xff]   ;;  %v10299_v58 = vld [vmem:[%s12921_s7 + $0x4f8] sm:$0xff]   ;;  %v10332_v55 = vld [vmem:[%s12921_s7 + $0x600] sm:$0xff]  }
 0x98b   : > { %v10307_v57 = vld [vmem:[%s12921_s7 + $0x510] sm:$0xff]   ;;  %v10301_v59 = vld [vmem:[%s12921_s7 + $0x4b8] sm:$0xff]   ;;  %9147 = vmatprep.subr.bf16.mxu1 %v10299_v58  ;;  %v10325_v58 = vld [vmem:[%s12921_s7 + $0x5a8] sm:$0xff]  }
 0x98c   : > { %v4546_v1 = vadd.f32 %v9069_v63, %v4505_v61  ;;  %v10311_v61 = vld [vmem:[%s12921_s7 + $0x518] sm:$0xff]   ;;  %v10314_v63 = vld [vmem:[%s12921_s7 + $0x560] sm:$0xff]  }
 0x98e   : > { %9148 = vmatpush3.bf16.msra.mxu1 %v10301_v59  ;;  %v10335_v59 = vld [vmem:[%s12921_s7 + $0x608] sm:$0xff]  }
 0x996   : > { %v9086_v7 = vpop.f32.mrb[228].mxu1 }
 0x997   : > { %v9087_v8 = vpop.f32.mrb[229].mxu1 }
 0x998   : > { %v9088_v9 = vadd.f32 %v9087_v8, %v9086_v7  ;;  %v9089_v10 = vpop.f32.mrb[230].mxu1  ;;  %v10330_v7 = vld [vmem:[%s12921_s7 + $0x640] sm:$0xff]  }
 0x999   : > { %v9090_v11 = vpop.f32.mrb[231].mxu1 }
 0x99a   : > { %v4584_v12 = vadd.f32 %v9088_v9, %v4543_v62  ;;  %v9091_v13 = vadd.f32 %v9090_v11, %v9089_v10  ;;  %v10304_v62 = vld [vmem:[%s12921_s7 + $0x5c0] sm:$0xff]  }
 0x99b   : > { %9177 = vmatprep.subr.bf16.mxu1 %v10304_v62  ;;  %v10337_v62 = vld [vmem:[%s12921_s7 + $0x650] sm:$0xff]  }
 0x99c   : > { %v4587_v14 = vadd.f32 %v9091_v13, %v4546_v1  ;;  %v10318_v1 = vld [vmem:[%s12921_s7 + $0x568] sm:$0xff]  }
 0x9a6   : > { %v9108_v15 = vpop.f32.mrb[136].mxu0 }
 0x9a7   : > { %v9109_v16 = vpop.f32.mrb[137].mxu0 }
 0x9a8   : > { %v9110_v17 = vadd.f32 %v9109_v16, %v9108_v15  ;;  %v9111_v18 = vpop.f32.mrb[138].mxu0 }
 0x9a9   : > { %v9112_v19 = vpop.f32.mrb[139].mxu0 }
 0x9aa   : > { %v9113_v20 = vadd.f32 %v9112_v19, %v9111_v18  ;;  %v4625_v21 = vadd.f32 %v9110_v17, %v4584_v12  ;;  %v10305_v17 = vld [vmem:[%s12921_s7 + $0x580] sm:$0xff]   ;;  %v10308_v19 = vld [vmem:[%s12921_s7 + $0x5c8] sm:$0xff]  }
 0x9ac   : > { %v4628_v23 = vadd.f32 %v9113_v20, %v4587_v14  ;;  %v10309_v20 = vld [vmem:[%s12921_s7 + $0x588] sm:$0xff]  }
 0x9b6   : > { %v4665_v24 = vpop.f32.mrb[232].mxu1 }
 0x9b7   : > { %v4666_v25 = vadd.f32 %v4665_v24, %v4625_v21  ;;  %v9642_v28 = vpop.f32.mrb[233].mxu1  ;;  %v10312_v21 = vld [vmem:[%s12921_s7 + $0x5d0] sm:$0xff]  }
 0x9b8   : > { %v4668_v41 = vpop.f32.mrb[234].mxu1  ;;  %v10313_v28 = vld [vmem:[%s12921_s7 + $0x590] sm:$0xff]  }
 0x9b9   : > { %v4669_v44 = vadd.f32 %v4668_v41, %v4628_v23  ;;  %v9643_v47 = vpop.f32.mrb[235].mxu1  ;;  %v4672_v48 = vmax.f32 %v4666_v25, 0.0 }
 0x9ba   : > { %v10316_v47 = vld [vmem:[%s12921_s7 + $0x5d8] sm:$0xff]  }
 0x9bb   : > { %v4673_v49 = vmax.f32 %v4669_v44, 0.0 }
 0x9bd   : > { %v4674_v32 = vpack.c.bf16 %v4673_v49, %v4672_v48  ;;  %v10317_v48 = vld [vmem:[%s12921_s7 + $0x598] sm:$0xff]   ;;  %v10320_v49 = vld [vmem:[%s12921_s7 + $0x5e0] sm:$0xff]  }
 0x9bf   : > { %9645 = vmatpush3.bf16.msra.mxu0 %v4674_v32 }
 0x9c0   : > { %9155 = vmatprep.subr.bf16.mxu0 %v10298_v35 }
 0x9c2   : > { %9647 = vmatmul.mubr.bf16.vlgmr.msra.gmra.mrb[140].mxu0 %v12045_v50 }
 0x9c3   : > { %9650 = vmatprep.mubr.msk.bf16.mxu0 %vm10591_vm0, %v10590_v26  ;;  %9156 = vmatpush3.bf16.msra.mxu0 %v10300_v37 }
 0x9c4   : > { %9157 = vmatprep.subr.bf16.mxu0 %v10302_v38  ;;  %v10321_v38 = vld [vmem:[%s12921_s7 + $0x5a0] sm:$0xff]  }
 0x9c7   : > { %9158 = vmatpush3.bf16.msra.mxu0 %v10303_v53 }
 0x9c8   : > { %9159 = vmatprep.subr.bf16.mxu0 %v10306_v56  ;;  %v10324_v56 = vld [vmem:[%s12921_s7 + $0x5e8] sm:$0xff]  }
 0x9ca   : > { %9651 = vmatmul.mubr.bf16.gmra.mrb[144].mxu0 %v12053_v30 }
 0x9cb   : > { %9654 = vmatprep.mubr.msk.bf16.mxu0 %vm10591_vm0, %v10590_v26  ;;  %9160 = vmatpush3.bf16.msra.mxu0 %v10307_v57  ;;  %v10334_v57 = vld [vmem:[%s12921_s7 + $0x648] sm:$0xff]  }
 0x9cc   : > { %9161 = vmatprep.subr.bf16.mxu0 %v10310_v60 }
 0x9cf   : > { %9162 = vmatpush3.bf16.msra.mxu0 %v10311_v61  ;;  %v10328_v61 = vld [vmem:[%s12921_s7 + $0x5f0] sm:$0xff]  }
 0x9d0   : > { %9163 = vmatprep.subr.bf16.mxu0 %v10314_v63 }
 0x9d2   : > { %9655 = vmatmul.mubr.bf16.gmra.mrb[148].mxu0 %v12061_v51 }
 0x9d3   : > { %9658 = vmatprep.mubr.msk.bf16.mxu0 %vm10591_vm0, %v10590_v26  ;;  %9164 = vmatpush3.bf16.msra.mxu0 %v10315_v0 }
 0x9d4   : > { %9165 = vmatprep.subr.bf16.mxu0 %v10318_v1 }
 0x9d7   : > { %9166 = vmatpush3.bf16.msra.mxu0 %v10319_v2  ;;  %v10329_v2 = vld [vmem:[%s12921_s7 + $0x5b0] sm:$0xff]  }
 0x9d8   : > { %9167 = vmatprep.subr.bf16.mxu0 %v10322_v3 }
 0x9da   : > { %9659 = vmatmul.mubr.bf16.gmra.mrb[152].mxu0 %v12069_v46 }
 0x9db   : > { %9662 = vmatprep.mubr.msk.bf16.mxu0 %vm10591_vm0, %v10590_v26  ;;  %9168 = vmatpush3.bf16.msra.mxu0 %v10323_v4  ;;  %v10338_v4 = vld [vmem:[%s12921_s7 + $0x610] sm:$0xff]  }
 0x9dc   : > { %9169 = vmatprep.subr.bf16.mxu0 %v10326_v5  ;;  %v10331_v5 = vld [vmem:[%s12921_s7 + $0x5f8] sm:$0xff]  }
 0x9df   : > { %9170 = vmatpush3.bf16.msra.mxu0 %v10327_v6  ;;  %v10340_v6 = vld [vmem:[%s12921_s7 + $0x658] sm:$0xff]  }
 0x9e0   : > { %9199 = vmatprep.subr.bf16.mxu0 %v10330_v7  ;;  %v10333_v7 = vld [vmem:[%s12921_s7 + $0x5b8] sm:$0xff]  }
 0x9e2   : > { %9663 = vmatmul.mubr.bf16.gmra.mrb[156].mxu0 %v12077_v54 }
 0x9e3   : > { %9666 = vmatprep.mubr.msk.bf16.mxu0 %vm10591_vm0, %v10590_v26 }
 0x9ea   : > { %9667 = vmatmul.mubr.bf16.gmra.mrb[160].mxu0 %v12085_v31 }
 0x9eb   : > { %9670 = vmatprep.mubr.msk.bf16.mxu0 %vm10591_vm0, %v10590_v26 }
 0x9f2   : > { %9671 = vmatmul.mubr.bf16.gmra.mrb[164].mxu0 %v12093_v52 }
 0x9f3   : > { %9674 = vmatprep.mubr.msk.bf16.mxu0 %vm10591_vm0, %v10590_v26 }
 0x9fa   : > { %9675 = vmatmul.mubr.bf16.gmra.mrb[168].mxu0 %v12101_v33 }
 0x9fb   : > { %9678 = vmatprep.mubr.msk.bf16.mxu0 %vm10591_vm0, %v10590_v26 }
 0xa02   : > { %9679 = vmatmul.mubr.bf16.gmra.mrb[172].mxu0 %v12109_v34 }
 0xa95   : > { %v4709_v8 = vpop.f32.mrb[140].mxu0 }
 0xa96   : > { %v9648_v9 = vpop.f32.mrb[141].mxu0 }
 0xa97   : > { %v4712_v10 = vpop.f32.mrb[142].mxu0 }
 0xa98   : > { %v4780_v11 = vpack.c.bf16 %v4712_v10, %v4709_v8  ;;  %v9649_v12 = vpop.f32.mrb[143].mxu0  ;;  %v10341_v8 = vld [vmem:[%s12921_s7 + $0x618] sm:$0xff]   ;;  %v10343_v10 = vld [vmem:[%s12921_s7 + $0x660] sm:$0xff]  }
 0xa9d   : > { %v4717_v13 = vpop.f32.mrb[144].mxu0 }
 0xa9e   : > { %v9652_v14 = vpop.f32.mrb[145].mxu0 }
 0xa9f   : > { %v4720_v15 = vpop.f32.mrb[146].mxu0  ;;  %v10336_v14 = vld [vmem:[%s12921_s7 + $0x680] sm:$0xff]  }
 0xaa0   : > { %v4781_v16 = vpack.c.bf16 %v4720_v15, %v4717_v13  ;;  %v9653_v18 = vpop.f32.mrb[147].mxu0  ;;  %v10344_v15 = vld [vmem:[%s12921_s7 + $0x620] sm:$0xff]  }
 0xaa1   : > { %v10339_v18 = vld [vmem:[%s12921_s7 + $0x688] sm:$0xff]  }
 0xaa2   : > { %5402 = vmatprep.mubr.bf16.mxu1 %v4781_v16 }
 0xaa3   : > { %5403 = vmatmul.mubr.bf16.vlgmr.msra.gmra.mrb[236].mxu1 %v4780_v11 }
 0xaa4   : > { %9178 = vmatpush3.bf16.msra.mxu1 %v10305_v17  ;;  %v10346_v17 = vld [vmem:[%s12921_s7 + $0x668] sm:$0xff]  }
 0xaa5   : > { %9179 = vmatprep.subr.bf16.mxu1 %v10308_v19  ;;  %v4725_v23 = vpop.f32.mrb[148].mxu0  ;;  %v10347_v19 = vld [vmem:[%s12921_s7 + $0x628] sm:$0xff]  }
 0xaa6   : > { %v9656_v24 = vpop.f32.mrb[149].mxu0 }
 0xaa7   : > { %v4728_v25 = vpop.f32.mrb[150].mxu0 }
 0xaa8   : > { %9180 = vmatpush3.bf16.msra.mxu1 %v10309_v20  ;;  %v4782_v41 = vpack.c.bf16 %v4728_v25, %v4725_v23  ;;  %v9657_v44 = vpop.f32.mrb[151].mxu0  ;;  %v10342_v25 = vld [vmem:[%s12921_s7 + $0x690] sm:$0xff]  }
 0xaa9   : > { %9181 = vmatprep.subr.bf16.mxu1 %v10312_v21  ;;  %v10349_v21 = vld [vmem:[%s12921_s7 + $0x670] sm:$0xff]  }
 0xaaa   : > { %v10350_v44 = vld [vmem:[%s12921_s7 + $0x630] sm:$0xff]  }
 0xaac   : > { %9182 = vmatpush3.bf16.msra.mxu1 %v10313_v28 }
 0xaad   : > { %9183 = vmatprep.subr.bf16.mxu1 %v10316_v47  ;;  %v4733_v32 = vpop.f32.mrb[152].mxu0  ;;  %v10352_v47 = vld [vmem:[%s12921_s7 + $0x678] sm:$0xff]  }
 0xaae   : > { %v9660_v35 = vpop.f32.mrb[153].mxu0 }
 0xaaf   : > { %v4736_v37 = vpop.f32.mrb[154].mxu0 }
 0xab0   : > { %9184 = vmatpush3.bf16.msra.mxu1 %v10317_v48  ;;  %v4783_v39 = vpack.c.bf16 %v4736_v37, %v4733_v32  ;;  %v9661_v53 = vpop.f32.mrb[155].mxu0  ;;  %v10345_v48 = vld [vmem:[%s12921_s7 + $0x698] sm:$0xff]  }
 0xab1   : > { %9185 = vmatprep.subr.bf16.mxu1 %v10320_v49  ;;  %v10353_v49 = vld [vmem:[%s12921_s7 + $0x638] sm:$0xff]  }
 0xab2   : > { %5443 = vmatprep.mubr.bf16.mxu0 %v4783_v39 }
 0xab3   : > { %5444 = vmatmul.mubr.bf16.vlgmr.msra.gmra.mrb[176].mxu0 %v4782_v41 }
 0xab4   : > { %9186 = vmatpush3.bf16.msra.mxu1 %v10321_v38  ;;  %9200 = vmatpush3.bf16.msra.mxu0 %v10332_v55  ;;  %v10348_v38 = vld [vmem:[%s12921_s7 + $0x6a0] sm:$0xff]   ;;  %v10351_v55 = vld [vmem:[%s12921_s7 + $0x6a8] sm:$0xff]  }
 0xab5   : > { %9187 = vmatprep.subr.bf16.mxu1 %v10324_v56  ;;  %v4741_v60 = vpop.f32.mrb[156].mxu0  ;;  %9201 = vmatprep.subr.bf16.mxu0 %v10334_v57 }
 0xab6   : > { %v9664_v63 = vpop.f32.mrb[157].mxu0 }
 0xab7   : > { %v4744_v0 = vpop.f32.mrb[158].mxu0 }
 0xab8   : > { %9188 = vmatpush3.bf16.msra.mxu1 %v10325_v58  ;;  %v4784_v1 = vpack.c.bf16 %v4744_v0, %v4741_v60  ;;  %v9665_v3 = vpop.f32.mrb[159].mxu0  ;;  %9202 = vmatpush3.bf16.msra.mxu0 %v10335_v59  ;;  %v10354_v59 = vld [vmem:[%s12921_s7 + $0x6b0] sm:$0xff]  }
 0xab9   : > { %9189 = vmatprep.subr.bf16.mxu1 %v10328_v61  ;;  %9203 = vmatprep.subr.bf16.mxu0 %v10337_v62  ;;  %v10355_v62 = vld [vmem:[%s12921_s7 + $0x6b8] sm:$0xff]  }
 0xabc   : > { %9190 = vmatpush3.bf16.msra.mxu1 %v10329_v2  ;;  %9204 = vmatpush3.bf16.msra.mxu0 %v10338_v4 }
 0xabd   : > { %v4749_v9 = vpop.f32.mrb[160].mxu0  ;;  %9191 = vmatprep.subr.bf16.mxu1 %v10331_v5  ;;  %9205 = vmatprep.subr.bf16.mxu0 %v10340_v6  ;;  %v4936_v5 = vsub.s32 5, %v10772_v42 }
 0xabe   : > { %v9668_v11 = vpop.f32.mrb[161].mxu0 }
 0xabf   : > { %v4752_v12 = vpop.f32.mrb[162].mxu0  ;;  %v4937_v6 = vrot.slane %v12012_v36, %v4936_v5  ;;  %v10359_v36 = vld [vmem:[%s12921_s7 + $0x6c8] sm:$0xff]  }
 0xac0   : > { %v4785_v13 = vpack.c.bf16 %v4752_v12, %v4749_v9  ;;  %9192 = vmatpush3.bf16.msra.mxu1 %v10333_v7  ;;  %9206 = vmatpush3.bf16.msra.mxu0 %v10341_v8  ;;  %v9669_v16 = vpop.f32.mrb[163].mxu0  ;;  %v10356_v7 = vld [vmem:[%s12921_s7 + $0x700] sm:$0xff]   ;;  %v10358_v9 = vld [vmem:[%s12921_s7 + $0x708] sm:$0xff]  }
 0xac1   : > { %9682 = vmatprep.subr.bf16.mxu1 %v10590_v26  ;;  %9207 = vmatprep.subr.bf16.mxu0 %v10343_v10  ;;  %v10357_v8 = vld [vmem:[%s12921_s7 + $0x6c0] sm:$0xff]  }
 0xac2   : > { %5484 = vmatprep.mubr.bf16.mxu1 %v4785_v13 }
 0xac3   : > { %5485 = vmatmul.mubr.bf16.vlgmr.msra.gmra.mrb[240].mxu1 %v4784_v1 }
 0xac4   : > { %9683 = vmatpush3.bf16.msra.mxu1 %v10336_v14  ;;  %9208 = vmatpush3.bf16.msra.mxu0 %v10344_v15  ;;  %v10360_v15 = vld [vmem:[%s12921_s7 + $0x710] sm:$0xff]  }
 0xac5   : > { %9684 = vmatprep.subr.bf16.mxu1 %v10590_v26  ;;  %9209 = vmatprep.subr.bf16.mxu0 %v10346_v17  ;;  %v4757_v20 = vpop.f32.mrb[164].mxu0 }
 0xac6   : > { %v9672_v23 = vpop.f32.mrb[165].mxu0  ;;  %9698 = vmatprep.mubr.msk.bf16.mxu1 %vm10591_vm0, %v10590_v26 }
 0xac7   : > { %v4760_v24 = vpop.f32.mrb[166].mxu0  ;;  %v10362_v23 = vld [vmem:[%s12921_s7 + $0x718] sm:$0xff]  }
 0xac8   : > { %9685 = vmatpush3.bf16.msra.mxu1 %v10339_v18  ;;  %9210 = vmatpush3.bf16.msra.mxu0 %v10347_v19  ;;  %v4786_v28 = vpack.c.bf16 %v4760_v24, %v4757_v20  ;;  %v9673_v41 = vpop.f32.mrb[167].mxu0  ;;  %v10361_v20 = vld [vmem:[%s12921_s7 + $0x6d0] sm:$0xff]   ;;  %v10363_v24 = vld [vmem:[%s12921_s7 + $0x6d8] sm:$0xff]  }
 0xac9   : > { %9686 = vmatprep.subr.bf16.mxu1 %v10590_v26  ;;  %9211 = vmatprep.subr.bf16.mxu0 %v10349_v21  ;;  %v10366_v41 = vld [vmem:[%s12921_s7 + $0x728] sm:$0xff]  }
 0xacc   : > { %9687 = vmatpush3.bf16.msra.mxu1 %v10342_v25  ;;  %9212 = vmatpush3.bf16.msra.mxu0 %v10350_v44  ;;  %v10364_v25 = vld [vmem:[%s12921_s7 + $0x720] sm:$0xff]  }
 0xacd   : > { %9688 = vmatprep.subr.bf16.mxu1 %v10590_v26  ;;  %v4765_v32 = vpop.f32.mrb[168].mxu0  ;;  %9213 = vmatprep.subr.bf16.mxu0 %v10352_v47 }
 0xace   : > { %v9676_v35 = vpop.f32.mrb[169].mxu0 }
 0xacf   : > { %v4768_v37 = vpop.f32.mrb[170].mxu0 }
 0xad0   : > { %9689 = vmatpush3.bf16.msra.mxu1 %v10345_v48  ;;  %v4787_v39 = vpack.c.bf16 %v4768_v37, %v4765_v32  ;;  %9214 = vmatpush3.bf16.msra.mxu0 %v10353_v49  ;;  %v9677_v53 = vpop.f32.mrb[171].mxu0  ;;  %v10367_v48 = vld [vmem:[%s12921_s7 + $0x6e8] sm:$0xff]  }
 0xad1   : > { %9690 = vmatprep.subr.bf16.mxu1 %v10590_v26  ;;  %9702 = vmatprep.subr.bf16.mxu0 %v10590_v26 }
 0xad2   : > { %5525 = vmatprep.mubr.bf16.mxu0 %v4787_v39 }
 0xad3   : > { %5526 = vmatmul.mubr.bf16.vlgmr.msra.gmra.mrb[180].mxu0 %v4786_v28  ;;  %v10365_v28 = vld [vmem:[%s12921_s7 + $0x6e0] sm:$0xff]  }
 0xad4   : > { %9691 = vmatpush3.bf16.msra.mxu1 %v10348_v38  ;;  %9704 = vmatprep.mubr.msk.bf16.mxu0 %vm10591_vm0, %v10590_v26 }
 0xad5   : > { %9692 = vmatprep.subr.bf16.mxu1 %v10590_v26  ;;  %v4773_v56 = vpop.f32.mrb[172].mxu0 }
 0xad6   : > { %v9680_v57 = vpop.f32.mrb[173].mxu0 }
 0xad7   : > { %v4776_v58 = vpop.f32.mrb[174].mxu0 }
 0xad8   : > { %9693 = vmatpush3.bf16.msra.mxu1 %v10351_v55  ;;  %v4788_v60 = vpack.c.bf16 %v4776_v58, %v4773_v56  ;;  %v9681_v61 = vpop.f32.mrb[175].mxu0 }
 0xad9   : > { %9694 = vmatprep.subr.bf16.mxu1 %v10590_v26 }
 0xadc   : > { %9695 = vmatpush3.bf16.msra.mxu1 %v10354_v59 }
 0xadd   : > { %9696 = vmatprep.subr.bf16.mxu1 %v10590_v26 }
 0xae0   : > { %9697 = vmatpush3.bf16.msra.mxu1 %v10355_v62 }
 0xae1   : > { %9240 = vmatprep.subr.bf16.mxu1 %v10356_v7 }
 0xae3   : > { %9699 = vmatmul.mubr.bf16.vlgmr.msra.gmra.mrb[244].mxu1 %v4788_v60 }
 0xae4   : > { %9241 = vmatpush3.bf16.msra.mxu1 %v10357_v8 }
 0xae5   : > { %9242 = vmatprep.subr.bf16.mxu1 %v10358_v9  ;;  %v10392_v9 = vld [vmem:[%s12921_s7 + $0x820] sm:$0xff]  }
 0xae8   : > { %9243 = vmatpush3.bf16.msra.mxu1 %v10359_v36  ;;  %v10397_v36 = vld [vmem:[%s12921_s7 + $0x7e8] sm:$0xff]  }
 0xae9   : > { %9244 = vmatprep.subr.bf16.mxu1 %v10360_v15  ;;  %v10405_v15 = vld [vmem:[%s12921_s7 + $0x7f8] sm:$0xff]  }
 0xaec   : > { %9245 = vmatpush3.bf16.msra.mxu1 %v10361_v20 }
 0xaed   : > { %9246 = vmatprep.subr.bf16.mxu1 %v10362_v23 }
 0xaf0   : > { %9247 = vmatpush3.bf16.msra.mxu1 %v10363_v24 }
 0xaf1   : > { %9248 = vmatprep.subr.bf16.mxu1 %v10364_v25 }
 0xaf4   : > { %9249 = vmatpush3.bf16.msra.mxu1 %v10365_v28  ;;  %v10373_v28 = vld [vmem:[%s12921_s7 + $0x740] sm:$0xff]  }
 0xaf5   : > { %9250 = vmatprep.subr.bf16.mxu1 %v10366_v41 }
 0xaf8   : > { %9251 = vmatpush3.bf16.msra.mxu1 %v10367_v48  ;;  %v10378_v48 = vld [vmem:[%s12921_s7 + $0x790] sm:$0xff]  }
 0xaf9   : > { %9252 = vmatprep.subr.bf16.mxu1 %v10368_v22  ;;  %v10395_v22 = vld [vmem:[%s12921_s7 + $0x770] sm:$0xff]  }
 0xafc   : > { %9253 = vmatpush3.bf16.msra.mxu1 %v10369_v27 }
 0xb76   : > { %v9149_v63 = vpop.f32.mrb[236].mxu1 }
 0xb77   : > { %v9150_v0 = vpop.f32.mrb[237].mxu1 }
 0xb78   : > { %v9151_v1 = vadd.f32 %v9150_v0, %v9149_v63  ;;  %v9152_v2 = vpop.f32.mrb[238].mxu1 }
 0xb79   : > { %v9153_v3 = vpop.f32.mrb[239].mxu1 }
 0xb7a   : > { %v9154_v4 = vadd.f32 %v9153_v3, %v9152_v2  ;;  %v5405_v12 = vadd.f32 %v9151_v1, %v4937_v6 }
 0xb7c   : > { %v5408_v17 = vadd.f32 %v9154_v4, %v4937_v6 }
 0xb86   : > { %v9171_v10 = vpop.f32.mrb[176].mxu0 }
 0xb87   : > { %v9172_v11 = vpop.f32.mrb[177].mxu0 }
 0xb88   : > { %v9173_v13 = vadd.f32 %v9172_v11, %v9171_v10  ;;  %v9174_v14 = vpop.f32.mrb[178].mxu0  ;;  %v10393_v10 = vld [vmem:[%s12921_s7 + $0x7e0] sm:$0xff]   ;;  %v10396_v11 = vld [vmem:[%s12921_s7 + $0x828] sm:$0xff]  }
 0xb89   : > { %v9175_v16 = vpop.f32.mrb[179].mxu0 }
 0xb8a   : > { %v5446_v18 = vadd.f32 %v9173_v13, %v5405_v12  ;;  %v9176_v19 = vadd.f32 %v9175_v16, %v9174_v14  ;;  %v10400_v12 = vld [vmem:[%s12921_s7 + $0x830] sm:$0xff]   ;;  %v10403_v14 = vld [vmem:[%s12921_s7 + $0x838] sm:$0xff]  }
 0xb8b   : > { %v10401_v13 = vld [vmem:[%s12921_s7 + $0x7f0] sm:$0xff]  }
 0xb8c   : > { %v5449_v21 = vadd.f32 %v9176_v19, %v5408_v17 }
 0xb96   : > { %v9193_v44 = vpop.f32.mrb[240].mxu1 }
 0xb97   : > { %v9194_v47 = vpop.f32.mrb[241].mxu1 }
 0xb98   : > { %v9195_v49 = vadd.f32 %v9194_v47, %v9193_v44  ;;  %v9196_v32 = vpop.f32.mrb[242].mxu1  ;;  %v10374_v44 = vld [vmem:[%s12921_s7 + $0x788] sm:$0xff]  }
 0xb99   : > { %v9197_v35 = vpop.f32.mrb[243].mxu1  ;;  %v10375_v47 = vld [vmem:[%s12921_s7 + $0x748] sm:$0xff]  }
 0xb9a   : > { %v5487_v37 = vadd.f32 %v9195_v49, %v5446_v18  ;;  %v9198_v38 = vadd.f32 %v9197_v35, %v9196_v32 }
 0xb9c   : > { %v5490_v39 = vadd.f32 %v9198_v38, %v5449_v21 }
 0xba6   : > { %v9215_v53 = vpop.f32.mrb[180].mxu0 }
 0xba7   : > { %v9216_v55 = vpop.f32.mrb[181].mxu0 }
 0xba8   : > { %v9217_v56 = vadd.f32 %v9216_v55, %v9215_v53  ;;  %v9218_v57 = vpop.f32.mrb[182].mxu0  ;;  %v10382_v53 = vld [vmem:[%s12921_s7 + $0x798] sm:$0xff]  }
 0xba9   : > { %v9219_v58 = vpop.f32.mrb[183].mxu0  ;;  %v10383_v55 = vld [vmem:[%s12921_s7 + $0x758] sm:$0xff]  }
 0xbaa   : > { %v9220_v59 = vadd.f32 %v9219_v58, %v9218_v57  ;;  %v5528_v60 = vadd.f32 %v9217_v56, %v5487_v37  ;;  %v10379_v37 = vld [vmem:[%s12921_s7 + $0x750] sm:$0xff]   ;;  %v10386_v56 = vld [vmem:[%s12921_s7 + $0x7a0] sm:$0xff]  }
 0xbac   : > { %v5531_v61 = vadd.f32 %v9220_v59, %v5490_v39 }
 0xbb6   : > { %v5568_v62 = vpop.f32.mrb[244].mxu1 }
 0xbb7   : > { %v5569_v63 = vadd.f32 %v5568_v62, %v5528_v60  ;;  %v9700_v0 = vpop.f32.mrb[245].mxu1  ;;  %v10387_v60 = vld [vmem:[%s12921_s7 + $0x760] sm:$0xff]  }
 0xbb8   : > { %v5571_v1 = vpop.f32.mrb[246].mxu1  ;;  %v10391_v0 = vld [vmem:[%s12921_s7 + $0x768] sm:$0xff]  }
 0xbb9   : > { %v12345_v2 = vadd.f32 %v5569_v63, %v3769_v29  ;;  %v5572_v3 = vadd.f32 %v5571_v1, %v5531_v61  ;;  %v9701_v4 = vpop.f32.mrb[247].mxu1  ;;  %v10370_v29 = vld [vmem:[%s12921_s7 + $0x738] sm:$0xff]   ;;  %v10390_v63 = vld [vmem:[%s12921_s7 + $0x7a8] sm:$0xff]   ;;  %v10394_v1 = vld [vmem:[%s12921_s7 + $0x7b0] sm:$0xff]  }
 0xbba   : > { %9254 = vmatprep.subr.bf16.mxu1 %v10370_v29 }
 0xbbb   : > { %v12349_v5 = vadd.f32 %v5572_v3, %v3770_v40  ;;  %v5577_v6 = vmax.f32 %v12345_v2, 0.0  ;;  %v10371_v40 = vld [vmem:[%s12921_s7 + $0x6f8] sm:$0xff]  }
 0xbbc   : > { %9255 = vmatpush3.bf16.msra.mxu1 %v10371_v40  ;;  %v10398_v40 = vld [vmem:[%s12921_s7 + $0x7b8] sm:$0xff]  }
 0xbbd   : > { %v5578_v7 = vmax.f32 %v12349_v5, 0.0 }
 0xbbf   : > { %v5579_v8 = vpack.c.bf16 %v5578_v7, %v5577_v6 }
 0xbc1   : > { %9703 = vmatpush3.bf16.msra.mxu0 %v5579_v8 }
 0xbc4   : > { %9705 = vmatmul.mubr.bf16.vlgmr.msra.gmra.mrb[184].mxu0 %v12045_v50  ;;  %v10372_v50 = vld [vmem:[%s12921_s7 + $0x780] sm:$0xff]  }
 0xbc5   : > { %9708 = vmatprep.mubr.msk.bf16.mxu0 %vm10591_vm0, %v10590_v26  ;;  %9262 = vmatprep.subr.bf16.mxu1 %v10372_v50  ;;  %v10399_v50 = vld [vmem:[%s12921_s7 + $0x778] sm:$0xff]  }
 0xbcc   : > { %9709 = vmatmul.mubr.bf16.gmra.mrb[188].mxu0 %v12053_v30  ;;  %v10376_v30 = vld [vmem:[%s12921_s7 + $0x800] sm:$0xff]  }
 0xbcd   : > { %9712 = vmatprep.mubr.msk.bf16.mxu0 %vm10591_vm0, %v10590_v26  ;;  %9284 = vmatprep.subr.bf16.mxu0 %v10376_v30 }
 0xbd4   : > { %9713 = vmatmul.mubr.bf16.gmra.mrb[192].mxu0 %v12061_v51  ;;  %v10377_v51 = vld [vmem:[%s12921_s7 + $0x7c0] sm:$0xff]  }
 0xbd5   : > { %9716 = vmatprep.mubr.msk.bf16.mxu0 %vm10591_vm0, %v10590_v26  ;;  %9285 = vmatpush3.bf16.msra.mxu0 %v10377_v51  ;;  %v10402_v51 = vld [vmem:[%s12921_s7 + $0x880] sm:$0xff]  }
 0xbdc   : > { %9717 = vmatmul.mubr.bf16.gmra.mrb[196].mxu0 %v12069_v46  ;;  %v10380_v46 = vld [vmem:[%s12921_s7 + $0x808] sm:$0xff]  }
 0xbdd   : > { %9720 = vmatprep.mubr.msk.bf16.mxu0 %vm10591_vm0, %v10590_v26  ;;  %9286 = vmatprep.subr.bf16.mxu0 %v10380_v46 }
 0xbe4   : > { %9721 = vmatmul.mubr.bf16.gmra.mrb[200].mxu0 %v12077_v54  ;;  %v10381_v54 = vld [vmem:[%s12921_s7 + $0x7c8] sm:$0xff]  }
 0xbe5   : > { %9724 = vmatprep.mubr.msk.bf16.mxu0 %vm10591_vm0, %v10590_v26  ;;  %9287 = vmatpush3.bf16.msra.mxu0 %v10381_v54 }
 0xbec   : > { %9725 = vmatmul.mubr.bf16.gmra.mrb[204].mxu0 %v12085_v31  ;;  %v10384_v31 = vld [vmem:[%s12921_s7 + $0x810] sm:$0xff]  }
 0xbed   : > { %9728 = vmatprep.mubr.msk.bf16.mxu0 %vm10591_vm0, %v10590_v26  ;;  %9288 = vmatprep.subr.bf16.mxu0 %v10384_v31  ;;  %v10404_v31 = vld [vmem:[%s12921_s7 + $0x840] sm:$0xff]  }
 0xbf4   : > { %9729 = vmatmul.mubr.bf16.gmra.mrb[208].mxu0 %v12093_v52  ;;  %v10385_v52 = vld [vmem:[%s12921_s7 + $0x7d0] sm:$0xff]  }
 0xbf5   : > { %9732 = vmatprep.mubr.msk.bf16.mxu0 %vm10591_vm0, %v10590_v26  ;;  %9289 = vmatpush3.bf16.msra.mxu0 %v10385_v52 }
 0xbfc   : > { %9733 = vmatmul.mubr.bf16.gmra.mrb[212].mxu0 %v12101_v33  ;;  %v10388_v33 = vld [vmem:[%s12921_s7 + $0x818] sm:$0xff]  }
 0xbfd   : > { %9736 = vmatprep.mubr.msk.bf16.mxu0 %vm10591_vm0, %v10590_v26  ;;  %9290 = vmatprep.subr.bf16.mxu0 %v10388_v33  ;;  %v10408_v33 = vld [vmem:[%s12921_s7 + $0x8c0] sm:$0xff]  }
 0xc04   : > { %9737 = vmatmul.mubr.bf16.gmra.mrb[216].mxu0 %v12109_v34  ;;  %v10389_v34 = vld [vmem:[%s12921_s7 + $0x7d8] sm:$0xff]  }
 0xc05   : > { %9291 = vmatpush3.bf16.msra.mxu0 %v10389_v34 }
 0xc06   : > { %9292 = vmatprep.subr.bf16.mxu0 %v10392_v9  ;;  %v10406_v9 = vld [vmem:[%s12921_s7 + $0x888] sm:$0xff]  }
 0xc09   : > { %9293 = vmatpush3.bf16.msra.mxu0 %v10393_v10  ;;  %v10407_v10 = vld [vmem:[%s12921_s7 + $0x848] sm:$0xff]  }
 0xc0a   : > { %9294 = vmatprep.subr.bf16.mxu0 %v10396_v11  ;;  %v10411_v11 = vld [vmem:[%s12921_s7 + $0x8c8] sm:$0xff]  }
 0xc0d   : > { %9295 = vmatpush3.bf16.msra.mxu0 %v10397_v36  ;;  %v10409_v36 = vld [vmem:[%s12921_s7 + $0x890] sm:$0xff]  }
 0xc0e   : > { %9296 = vmatprep.subr.bf16.mxu0 %v10400_v12 }
 0xc11   : > { %9297 = vmatpush3.bf16.msra.mxu0 %v10401_v13 }
 0xc12   : > { %9298 = vmatprep.subr.bf16.mxu0 %v10403_v14 }
 0xc15   : > { %9299 = vmatpush3.bf16.msra.mxu0 %v10405_v15  ;;  %v10410_v15 = vld [vmem:[%s12921_s7 + $0x850] sm:$0xff]  }
 0xc16   : > { %9740 = vmatprep.subr.bf16.mxu0 %v10590_v26 }
 0xc97   : > { %v5614_v16 = vpop.f32.mrb[184].mxu0 }
 0xc98   : > { %v9706_v17 = vpop.f32.mrb[185].mxu0 }
 0xc99   : > { %v5617_v18 = vpop.f32.mrb[186].mxu0 }
 0xc9a   : > { %v5685_v19 = vpack.c.bf16 %v5617_v18, %v5614_v16  ;;  %v9707_v20 = vpop.f32.mrb[187].mxu0  ;;  %v10414_v16 = vld [vmem:[%s12921_s7 + $0x8d0] sm:$0xff]  }
 0xc9b   : > { %v10413_v20 = vld [vmem:[%s12921_s7 + $0x858] sm:$0xff]  }
 0xc9f   : > { %v5622_v21 = vpop.f32.mrb[188].mxu0 }
 0xca0   : > { %v9710_v23 = vpop.f32.mrb[189].mxu0 }
 0xca1   : > { %v5625_v24 = vpop.f32.mrb[190].mxu0  ;;  %v10415_v23 = vld [vmem:[%s12921_s7 + $0x8a0] sm:$0xff]  }
 0xca2   : > { %v5686_v25 = vpack.c.bf16 %v5625_v24, %v5622_v21  ;;  %v9711_v41 = vpop.f32.mrb[191].mxu0  ;;  %v10417_v21 = vld [vmem:[%s12921_s7 + $0x8d8] sm:$0xff]  }
 0xca3   : > { %v10416_v41 = vld [vmem:[%s12921_s7 + $0x860] sm:$0xff]  }
 0xca4   : > { %6307 = vmatprep.mubr.bf16.mxu1 %v5686_v25 }
 0xca5   : > { %6308 = vmatmul.mubr.bf16.vlgmr.msra.gmra.mrb[248].mxu1 %v5685_v19  ;;  %v10412_v19 = vld [vmem:[%s12921_s7 + $0x898] sm:$0xff]  }
 0xca6   : > { %9263 = vmatpush3.bf16.msra.mxu1 %v10373_v28 }
 0xca7   : > { %9264 = vmatprep.subr.bf16.mxu1 %v10374_v44  ;;  %v5630_v49 = vpop.f32.mrb[192].mxu0  ;;  %v10420_v44 = vld [vmem:[%s12921_s7 + $0x8e0] sm:$0xff]  }
 0xca8   : > { %v9714_v32 = vpop.f32.mrb[193].mxu0 }
 0xca9   : > { %v5633_v35 = vpop.f32.mrb[194].mxu0  ;;  %v10419_v32 = vld [vmem:[%s12921_s7 + $0x868] sm:$0xff]  }
 0xcaa   : > { %9265 = vmatpush3.bf16.msra.mxu1 %v10375_v47  ;;  %v5687_v38 = vpack.c.bf16 %v5633_v35, %v5630_v49  ;;  %v9715_v39 = vpop.f32.mrb[195].mxu0  ;;  %v10418_v49 = vld [vmem:[%s12921_s7 + $0x8a8] sm:$0xff]  }
 0xcab   : > { %9266 = vmatprep.subr.bf16.mxu1 %v10378_v48  ;;  %v10423_v35 = vld [vmem:[%s12921_s7 + $0x8e8] sm:$0xff]  }
 0xcae   : > { %9267 = vmatpush3.bf16.msra.mxu1 %v10379_v37  ;;  %v10421_v37 = vld [vmem:[%s12921_s7 + $0x8b0] sm:$0xff]  }
 0xcaf   : > { %9268 = vmatprep.subr.bf16.mxu1 %v10382_v53  ;;  %v5638_v57 = vpop.f32.mrb[196].mxu0 }
 0xcb0   : > { %v9718_v58 = vpop.f32.mrb[197].mxu0 }
 0xcb1   : > { %v5641_v59 = vpop.f32.mrb[198].mxu0 }
 0xcb2   : > { %9269 = vmatpush3.bf16.msra.mxu1 %v10383_v55  ;;  %v5688_v61 = vpack.c.bf16 %v5641_v59, %v5638_v57  ;;  %v9719_v62 = vpop.f32.mrb[199].mxu0  ;;  %v10422_v55 = vld [vmem:[%s12921_s7 + $0x870] sm:$0xff]   ;;  %v10424_v59 = vld [vmem:[%s12921_s7 + $0x8b8] sm:$0xff]  }
 0xcb3   : > { %9270 = vmatprep.subr.bf16.mxu1 %v10386_v56  ;;  %v10426_v56 = vld [vmem:[%s12921_s7 + $0x8f0] sm:$0xff]  }
 0xcb4   : > { %6348 = vmatprep.mubr.bf16.mxu1 %v5688_v61  ;;  %v10427_v61 = vld [vmem:[%s12921_s7 + $0x8f8] sm:$0xff]  }
 0xcb6   : > { %9271 = vmatpush3.bf16.msra.mxu1 %v10387_v60  ;;  %v10425_v60 = vld [vmem:[%s12921_s7 + $0x878] sm:$0xff]  }
 0xcb7   : > { %9272 = vmatprep.subr.bf16.mxu1 %v10390_v63  ;;  %v5646_v3 = vpop.f32.mrb[200].mxu0 }
 0xcb8   : > { %v9722_v4 = vpop.f32.mrb[201].mxu0 }
 0xcb9   : > { %v5649_v8 = vpop.f32.mrb[202].mxu0 }
 0xcba   : > { %9273 = vmatpush3.bf16.msra.mxu1 %v10391_v0  ;;  %v5689_v27 = vpack.c.bf16 %v5649_v8, %v5646_v3  ;;  %v9723_v29 = vpop.f32.mrb[203].mxu0  ;;  %v10428_v8 = vld [vmem:[%s12921_s7 + $0x940] sm:$0xff]  }
 0xcbb   : > { %9274 = vmatprep.subr.bf16.mxu1 %v10394_v1  ;;  %v10431_v29 = vld [vmem:[%s12921_s7 + $0x908] sm:$0xff]  }
 0xcbe   : > { %9275 = vmatpush3.bf16.msra.mxu1 %v10395_v22  ;;  %v10429_v22 = vld [vmem:[%s12921_s7 + $0x900] sm:$0xff]  }
 0xcbf   : > { %9276 = vmatprep.subr.bf16.mxu1 %v10398_v40  ;;  %v5654_v30 = vpop.f32.mrb[204].mxu0  ;;  %v10432_v40 = vld [vmem:[%s12921_s7 + $0x950] sm:$0xff]  }
 0xcc0   : > { %v9726_v46 = vpop.f32.mrb[205].mxu0 }
 0xcc1   : > { %v5657_v54 = vpop.f32.mrb[206].mxu0  ;;  %v10435_v46 = vld [vmem:[%s12921_s7 + $0x918] sm:$0xff]  }
 0xcc2   : > { %9277 = vmatpush3.bf16.msra.mxu1 %v10399_v50  ;;  %v5690_v52 = vpack.c.bf16 %v5657_v54, %v5654_v30  ;;  %v9727_v34 = vpop.f32.mrb[207].mxu0  ;;  %v10433_v50 = vld [vmem:[%s12921_s7 + $0x910] sm:$0xff]   ;;  %v10434_v30 = vld [vmem:[%s12921_s7 + $0x958] sm:$0xff]   ;;  %v10436_v54 = vld [vmem:[%s12921_s7 + $0x960] sm:$0xff]  }
 0xcc3   : > { %9306 = vmatprep.subr.bf16.mxu1 %v10402_v51  ;;  %v5841_v51 = vsub.s32 6, %v10772_v42 }
 0xcc4   : > { %6389 = vmatprep.mubr.bf16.mxu0 %v5690_v52 }
 0xcc5   : > { %6349 = vmatmul.mubr.bf16.vlgmr.msra.gmra.mrb[252].mxu1 %v5687_v38  ;;  %6390 = vmatmul.mubr.bf16.vlgmr.msra.gmra.mrb[220].mxu0 %v5689_v27  ;;  %v10430_v27 = vld [vmem:[%s12921_s7 + $0x948] sm:$0xff]  }
 0xcc6   : > { %9307 = vmatpush3.bf16.msra.mxu1 %v10404_v31  ;;  %9741 = vmatpush3.bf16.msra.mxu0 %v10408_v33  ;;  %v12606_v31 = vld [vmem:[%s12922_s8] sm:$0xff] }
 0xcc7   : > { %9308 = vmatprep.subr.bf16.mxu1 %v10406_v9  ;;  %9742 = vmatprep.subr.bf16.mxu0 %v10590_v26  ;;  %v5662_v12 = vpop.f32.mrb[208].mxu0  ;;  %v5842_v52 = vrot.slane %v12606_v31, %v5841_v51  ;;  %v10437_v9 = vld [vmem:[%s12921_s7 + $0x920] sm:$0xff]  }
 0xcc8   : > { %v9730_v13 = vpop.f32.mrb[209].mxu0  ;;  %9756 = vmatprep.mubr.msk.bf16.mxu0 %vm10591_vm0, %v10590_v26  ;;  %v10444_v51 = vld [vmem:[%s12921_s7 + $0x9c0] sm:$0xff]  }
 0xcc9   : > { %v5665_v14 = vpop.f32.mrb[210].mxu0 }
 0xcca   : > { %9309 = vmatpush3.bf16.msra.mxu1 %v10407_v10  ;;  %9743 = vmatpush3.bf16.msra.mxu0 %v10411_v11  ;;  %v5691_v17 = vpack.c.bf16 %v5665_v14, %v5662_v12  ;;  %v9731_v18 = vpop.f32.mrb[211].mxu0 }
 0xccb   : > { %9310 = vmatprep.subr.bf16.mxu1 %v10409_v36  ;;  %9744 = vmatprep.subr.bf16.mxu0 %v10590_v26  ;;  %v10438_v36 = vld [vmem:[%s12921_s7 + $0x968] sm:$0xff]  }
 0xcce   : > { %9311 = vmatpush3.bf16.msra.mxu1 %v10410_v15  ;;  %9745 = vmatpush3.bf16.msra.mxu0 %v10414_v16 }
 0xccf   : > { %9312 = vmatprep.subr.bf16.mxu1 %v10412_v19  ;;  %9746 = vmatprep.subr.bf16.mxu0 %v10590_v26  ;;  %v5670_v24 = vpop.f32.mrb[212].mxu0 }
 0xcd0   : > { %v9734_v25 = vpop.f32.mrb[213].mxu0 }
 0xcd1   : > { %v5673_v28 = vpop.f32.mrb[214].mxu0 }
 0xcd2   : > { %9313 = vmatpush3.bf16.msra.mxu1 %v10413_v20  ;;  %9747 = vmatpush3.bf16.msra.mxu0 %v10417_v21  ;;  %v5692_v47 = vpack.c.bf16 %v5673_v28, %v5670_v24  ;;  %v9735_v48 = vpop.f32.mrb[215].mxu0  ;;  %v10439_v24 = vld [vmem:[%s12921_s7 + $0x928] sm:$0xff]  }
 0xcd3   : > { %9314 = vmatprep.subr.bf16.mxu1 %v10415_v23  ;;  %9748 = vmatprep.subr.bf16.mxu0 %v10590_v26 }
 0xcd4   : > { %6430 = vmatprep.mubr.bf16.mxu1 %v5692_v47 }
 0xcd6   : > { %9315 = vmatpush3.bf16.msra.mxu1 %v10416_v41  ;;  %9749 = vmatpush3.bf16.msra.mxu0 %v10420_v44 }
 0xcd7   : > { %9316 = vmatprep.subr.bf16.mxu1 %v10418_v49  ;;  %9750 = vmatprep.subr.bf16.mxu0 %v10590_v26  ;;  %v5678_v38 = vpop.f32.mrb[216].mxu0 }
 0xcd8   : > { %v9738_v39 = vpop.f32.mrb[217].mxu0 }
 0xcd9   : > { %v5681_v53 = vpop.f32.mrb[218].mxu0 }
 0xcda   : > { %9317 = vmatpush3.bf16.msra.mxu1 %v10419_v32  ;;  %9751 = vmatpush3.bf16.msra.mxu0 %v10423_v35  ;;  %v5693_v57 = vpack.c.bf16 %v5681_v53, %v5678_v38  ;;  %v9739_v58 = vpop.f32.mrb[219].mxu0 }
 0xcdb   : > { %9318 = vmatprep.subr.bf16.mxu1 %v10421_v37  ;;  %9752 = vmatprep.subr.bf16.mxu0 %v10590_v26 }
 0xcde   : > { %9319 = vmatpush3.bf16.msra.mxu1 %v10422_v55  ;;  %9753 = vmatpush3.bf16.msra.mxu0 %v10426_v56 }
 0xcdf   : > { %9320 = vmatprep.subr.bf16.mxu1 %v10424_v59  ;;  %9754 = vmatprep.subr.bf16.mxu0 %v10590_v26 }
 0xce2   : > { %9321 = vmatpush3.bf16.msra.mxu1 %v10425_v60  ;;  %9755 = vmatpush3.bf16.msra.mxu0 %v10427_v61 }
 0xce3   : > { %9760 = vmatprep.subr.bf16.mxu1 %v10590_v26  ;;  %9347 = vmatprep.subr.bf16.mxu0 %v10428_v8  ;;  %v10522_v8 = vld [vmem:[%s12918_s4 + $0x30] sm:$0xff]  }
 0xce5   : > { %6431 = vmatmul.mubr.bf16.vlgmr.msra.gmra.mrb[0].mxu1 %v5691_v17  ;;  %9757 = vmatmul.mubr.bf16.vlgmr.msra.gmra.mrb[224].mxu0 %v5693_v57 }
 0xce6   : > { %9762 = vmatprep.mubr.msk.bf16.mxu1 %vm10591_vm0, %v10590_v26  ;;  %9348 = vmatpush3.bf16.msra.mxu0 %v10429_v22  ;;  %v10523_v22 = vld [vmem:[%s12918_s4 + $0x38] sm:$0xff]  }
 0xce7   : > { %9349 = vmatprep.subr.bf16.mxu0 %v10430_v27  ;;  %v10524_v27 = vld [vmem:[%s12918_s4 + $0x40] sm:$0xff]  }
 0xcea   : > { %9350 = vmatpush3.bf16.msra.mxu0 %v10431_v29  ;;  %v10440_v29 = vld [vmem:[%s12921_s7 + $0x970] sm:$0xff]  }
 0xceb   : > { %9351 = vmatprep.subr.bf16.mxu0 %v10432_v40  ;;  %v10441_v40 = vld [vmem:[%s12921_s7 + $0x930] sm:$0xff]  }
 0xcee   : > { %9352 = vmatpush3.bf16.msra.mxu0 %v10433_v50  ;;  %v10442_v50 = vld [vmem:[%s12921_s7 + $0x978] sm:$0xff]  }
 0xcef   : > { %9353 = vmatprep.subr.bf16.mxu0 %v10434_v30  ;;  %v10443_v30 = vld [vmem:[%s12921_s7 + $0x938] sm:$0xff]  }
 0xcf2   : > { %9354 = vmatpush3.bf16.msra.mxu0 %v10435_v46  ;;  %v10448_v46 = vld [vmem:[%s12921_s7 + $0xa40] sm:$0xff]  }
 0xcf3   : > { %9355 = vmatprep.subr.bf16.mxu0 %v10436_v54  ;;  %v10449_v54 = vld [vmem:[%s12921_s7 + $0xa00] sm:$0xff]  }
 0xcf6   : > { %9356 = vmatpush3.bf16.msra.mxu0 %v10437_v9  ;;  %v10457_v9 = vld [vmem:[%s12921_s7 + $0xa10] sm:$0xff]  }
 0xcf7   : > { %9357 = vmatprep.subr.bf16.mxu0 %v10438_v36  ;;  %v10464_v36 = vld [vmem:[%s12921_s7 + $0xa60] sm:$0xff]  }
 0xcfa   : > { %9358 = vmatpush3.bf16.msra.mxu0 %v10439_v24 }
 0xcfb   : > { %9359 = vmatprep.subr.bf16.mxu0 %v10440_v29 }
 0xcfe   : > { %9360 = vmatpush3.bf16.msra.mxu0 %v10441_v40  ;;  %v10467_v40 = vld [vmem:[%s12921_s7 + $0x9b0] sm:$0xff]  }
 0xcff   : > { %9361 = vmatprep.subr.bf16.mxu0 %v10442_v50 }
 0xd02   : > { %9362 = vmatpush3.bf16.msra.mxu0 %v10443_v30 }
 0xd03   : > { %9369 = vmatprep.subr.bf16.mxu0 %v10444_v51  ;;  %v10470_v51 = vld [vmem:[%s12921_s7 + $0x9f8] sm:$0xff]  }
 0xd78   : > { %v9256_v62 = vpop.f32.mrb[248].mxu1 }
 0xd79   : > { %v9257_v63 = vpop.f32.mrb[249].mxu1 }
 0xd7a   : > { %v9258_v0 = vadd.f32 %v9257_v63, %v9256_v62  ;;  %v9259_v1 = vpop.f32.mrb[250].mxu1  ;;  %v10516_v62 = vld [vmem:[%s12918_s4] sm:$0xff]   ;;  %v10517_v63 = vld [vmem:[%s12918_s4 + $0x8] sm:$0xff]  }
 0xd7b   : > { %v9260_v3 = vpop.f32.mrb[251].mxu1 }
 0xd7c   : > { %v9261_v4 = vadd.f32 %v9260_v3, %v9259_v1  ;;  %v6310_v12 = vadd.f32 %v9258_v0, %v5842_v52  ;;  %v10518_v0 = vld [vmem:[%s12918_s4 + $0x10] sm:$0xff]   ;;  %v10519_v1 = vld [vmem:[%s12918_s4 + $0x18] sm:$0xff]   ;;  %v10520_v3 = vld [vmem:[%s12918_s4 + $0x20] sm:$0xff]  }
 0xd7e   : > { %v6313_v19 = vadd.f32 %v9261_v4, %v5842_v52  ;;  %v10521_v4 = vld [vmem:[%s12918_s4 + $0x28] sm:$0xff]  }
 0xd7f   : > { %v10452_v52 = vld [vmem:[%s12921_s7 + $0xa48] sm:$0xff]  }
 0xd98   : > { %v9278_v33 = vpop.f32.mrb[252].mxu1  ;;  %v9300_v34 = vpop.f32.mrb[220].mxu0 }
 0xd99   : > { %v9279_v10 = vpop.f32.mrb[253].mxu1  ;;  %v9301_v11 = vpop.f32.mrb[221].mxu0 }
 0xd9a   : > { %v9280_v13 = vadd.f32 %v9279_v10, %v9278_v33  ;;  %v9281_v14 = vpop.f32.mrb[254].mxu1  ;;  %v9302_v15 = vadd.f32 %v9301_v11, %v9300_v34  ;;  %v9303_v16 = vpop.f32.mrb[222].mxu0  ;;  %v10453_v33 = vld [vmem:[%s12921_s7 + $0xa08] sm:$0xff]   ;;  %v10456_v34 = vld [vmem:[%s12921_s7 + $0xa50] sm:$0xff]   ;;  %v10460_v10 = vld [vmem:[%s12921_s7 + $0xa58] sm:$0xff]  }
 0xd9b   : > { %v9282_v17 = vpop.f32.mrb[255].mxu1  ;;  %v9304_v18 = vpop.f32.mrb[223].mxu0  ;;  %v10461_v11 = vld [vmem:[%s12921_s7 + $0xa18] sm:$0xff]  }
 0xd9c   : > { %v6351_v20 = vadd.f32 %v9280_v13, %v6310_v12  ;;  %v9283_v21 = vadd.f32 %v9282_v17, %v9281_v14  ;;  %v9305_v23 = vadd.f32 %v9304_v18, %v9303_v16  ;;  %v10465_v12 = vld [vmem:[%s12921_s7 + $0xa20] sm:$0xff]   ;;  %v10468_v13 = vld [vmem:[%s12921_s7 + $0xa68] sm:$0xff]   ;;  %v10473_v16 = vld [vmem:[%s12921_s7 + $0xa30] sm:$0xff]  }
 0xd9d   : > { %v10469_v14 = vld [vmem:[%s12921_s7 + $0xa28] sm:$0xff]   ;;  %v10475_v17 = vld [vmem:[%s12921_s7 + $0xa78] sm:$0xff]  }
 0xd9e   : > { %v6354_v25 = vadd.f32 %v9283_v21, %v6313_v19  ;;  %v6392_v28 = vadd.f32 %v9302_v15, %v6351_v20  ;;  %v10472_v15 = vld [vmem:[%s12921_s7 + $0xa70] sm:$0xff]   ;;  %v10477_v18 = vld [vmem:[%s12921_s7 + $0xa38] sm:$0xff]  }
 0xda0   : > { %v6395_v41 = vadd.f32 %v9305_v23, %v6354_v25 }
 0xdb8   : > { %v9322_v44 = vpop.f32.mrb[0].mxu1  ;;  %v6473_v47 = vpop.f32.mrb[224].mxu0 }
 0xdb9   : > { %v9323_v48 = vpop.f32.mrb[1].mxu1  ;;  %v9758_v49 = vpop.f32.mrb[225].mxu0 }
 0xdba   : > { %v9324_v32 = vadd.f32 %v9323_v48, %v9322_v44  ;;  %v9325_v35 = vpop.f32.mrb[2].mxu1  ;;  %v6476_v37 = vpop.f32.mrb[226].mxu0  ;;  %v10446_v49 = vld [vmem:[%s12921_s7 + $0x9c8] sm:$0xff]  }
 0xdbb   : > { %v9326_v38 = vpop.f32.mrb[3].mxu1  ;;  %v9759_v39 = vpop.f32.mrb[227].mxu0 }
 0xdbc   : > { %v9327_v53 = vadd.f32 %v9326_v38, %v9325_v35  ;;  %v6433_v55 = vadd.f32 %v9324_v32, %v6392_v28  ;;  %v10447_v32 = vld [vmem:[%s12921_s7 + $0x988] sm:$0xff]   ;;  %v10450_v35 = vld [vmem:[%s12921_s7 + $0x9d0] sm:$0xff]  }
 0xdbe   : > { %v6474_v56 = vadd.f32 %v6473_v47, %v6433_v55  ;;  %v6436_v57 = vadd.f32 %v9327_v53, %v6395_v41  ;;  %v10445_v47 = vld [vmem:[%s12921_s7 + $0x980] sm:$0xff]   ;;  %v10451_v53 = vld [vmem:[%s12921_s7 + $0x990] sm:$0xff]  }
 0xdc0   : > { %v6477_v58 = vadd.f32 %v6476_v37, %v6436_v57  ;;  %v6480_v59 = vmax.f32 %v6474_v56, 0.0  ;;  %v10454_v57 = vld [vmem:[%s12921_s7 + $0x9d8] sm:$0xff]  }
 0xdc2   : > { %v6481_v60 = vmax.f32 %v6477_v58, 0.0  ;;  %v10455_v58 = vld [vmem:[%s12921_s7 + $0x998] sm:$0xff]  }
 0xdc4   : > { %v6482_v61 = vpack.c.bf16 %v6481_v60, %v6480_v59  ;;  %v10458_v59 = vld [vmem:[%s12921_s7 + $0x9e0] sm:$0xff]  }
 0xdc6   : > { %9761 = vmatpush3.bf16.msra.mxu1 %v6482_v61 }
 0xdc7   : > { %9391 = vmatprep.subr.bf16.mxu1 %v10448_v46  ;;  %v10471_v46 = vld [vmem:[%s12921_s7 + $0x9b8] sm:$0xff]  }
 0xdc9   : > { %9763 = vmatmul.mubr.bf16.vlgmr.msra.gmra.mrb[4].mxu1 %v10516_v62 }
 0xdca   : > { %9766 = vmatprep.mubr.msk.bf16.mxu1 %vm10591_vm0, %v10590_v26  ;;  %9392 = vmatpush3.bf16.msra.mxu1 %v10449_v54 }
 0xdcb   : > { %9393 = vmatprep.subr.bf16.mxu1 %v10452_v52  ;;  %v10474_v52 = vld [vmem:[%s12921_s7 + $0xac0] sm:$0xff]  }
 0xdce   : > { %9394 = vmatpush3.bf16.msra.mxu1 %v10453_v33 }
 0xdcf   : > { %9395 = vmatprep.subr.bf16.mxu1 %v10456_v34 }
 0xdd1   : > { %9767 = vmatmul.mubr.bf16.gmra.mrb[8].mxu1 %v10517_v63  ;;  %v10459_v63 = vld [vmem:[%s12921_s7 + $0x9a0] sm:$0xff]  }
 0xdd2   : > { %9770 = vmatprep.mubr.msk.bf16.mxu1 %vm10591_vm0, %v10590_v26  ;;  %9396 = vmatpush3.bf16.msra.mxu1 %v10457_v9  ;;  %v10476_v9 = vld [vmem:[%s12921_s7 + $0xa80] sm:$0xff]  }
 0xdd3   : > { %9397 = vmatprep.subr.bf16.mxu1 %v10460_v10 }
 0xdd6   : > { %9398 = vmatpush3.bf16.msra.mxu1 %v10461_v11  ;;  %v10480_v11 = vld [vmem:[%s12921_s7 + $0xb00] sm:$0xff]  }
 0xdd7   : > { %9399 = vmatprep.subr.bf16.mxu1 %v10464_v36 }
 0xdd9   : > { %9771 = vmatmul.mubr.bf16.gmra.mrb[12].mxu1 %v10518_v0 }
 0xdda   : > { %9774 = vmatprep.mubr.msk.bf16.mxu1 %vm10591_vm0, %v10590_v26  ;;  %9400 = vmatpush3.bf16.msra.mxu1 %v10465_v12  ;;  %v10478_v12 = vld [vmem:[%s12921_s7 + $0xac8] sm:$0xff]  }
 0xddb   : > { %9401 = vmatprep.subr.bf16.mxu1 %v10468_v13  ;;  %v10479_v13 = vld [vmem:[%s12921_s7 + $0xa88] sm:$0xff]  }
 0xdde   : > { %9402 = vmatpush3.bf16.msra.mxu1 %v10469_v14  ;;  %v10483_v14 = vld [vmem:[%s12921_s7 + $0xb08] sm:$0xff]  }
 0xddf   : > { %9403 = vmatprep.subr.bf16.mxu1 %v10472_v15  ;;  %v10481_v15 = vld [vmem:[%s12921_s7 + $0xad0] sm:$0xff]  }
 0xde1   : > { %9775 = vmatmul.mubr.bf16.gmra.mrb[16].mxu1 %v10519_v1 }
 0xde2   : > { %9778 = vmatprep.mubr.msk.bf16.mxu1 %vm10591_vm0, %v10590_v26  ;;  %9404 = vmatpush3.bf16.msra.mxu1 %v10473_v16 }
 0xde3   : > { %9405 = vmatprep.subr.bf16.mxu1 %v10475_v17 }
 0xde6   : > { %9406 = vmatpush3.bf16.msra.mxu1 %v10477_v18 }
 0xde7   : > { %9798 = vmatprep.subr.bf16.mxu1 %v10590_v26 }
 0xde9   : > { %9779 = vmatmul.mubr.bf16.gmra.mrb[20].mxu1 %v10520_v3  ;;  %v10462_v3 = vld [vmem:[%s12921_s7 + $0x9e8] sm:$0xff]  }
 0xdea   : > { %9782 = vmatprep.mubr.msk.bf16.mxu1 %vm10591_vm0, %v10590_v26 }
 0xdf1   : > { %9783 = vmatmul.mubr.bf16.gmra.mrb[24].mxu1 %v10521_v4  ;;  %v10463_v4 = vld [vmem:[%s12921_s7 + $0x9a8] sm:$0xff]  }
 0xdf2   : > { %9786 = vmatprep.mubr.msk.bf16.mxu1 %vm10591_vm0, %v10590_v26 }
 0xdf9   : > { %9787 = vmatmul.mubr.bf16.gmra.mrb[28].mxu1 %v10522_v8  ;;  %v10466_v8 = vld [vmem:[%s12921_s7 + $0x9f0] sm:$0xff]  }
 0xdfa   : > { %9790 = vmatprep.mubr.msk.bf16.mxu1 %vm10591_vm0, %v10590_v26 }
 0xe01   : > { %9791 = vmatmul.mubr.bf16.gmra.mrb[32].mxu1 %v10523_v22 }
 0xe02   : > { %9794 = vmatprep.mubr.msk.bf16.mxu1 %vm10591_vm0, %v10590_v26 }
 0xe09   : > { %9795 = vmatmul.mubr.bf16.gmra.mrb[36].mxu1 %v10524_v27 }
 0xe9c   : > { %v6517_v19 = vpop.f32.mrb[4].mxu1 }
 0xe9d   : > { %v9764_v20 = vpop.f32.mrb[5].mxu1 }
 0xe9e   : > { %v6520_v21 = vpop.f32.mrb[6].mxu1  ;;  %v10486_v20 = vld [vmem:[%s12921_s7 + $0xb10] sm:$0xff]  }
 0xe9f   : > { %v6588_v23 = vpack.c.bf16 %v6520_v21, %v6517_v19  ;;  %v9765_v24 = vpop.f32.mrb[7].mxu1  ;;  %v10482_v19 = vld [vmem:[%s12921_s7 + $0xa90] sm:$0xff]  }
 0xea0   : > { %v10484_v24 = vld [vmem:[%s12921_s7 + $0xad8] sm:$0xff]  }
 0xea4   : > { %v6525_v25 = vpop.f32.mrb[8].mxu1 }
 0xea5   : > { %v9768_v28 = vpop.f32.mrb[9].mxu1 }
 0xea6   : > { %v6528_v41 = vpop.f32.mrb[10].mxu1  ;;  %v10489_v28 = vld [vmem:[%s12921_s7 + $0xb18] sm:$0xff]  }
 0xea7   : > { %v6589_v44 = vpack.c.bf16 %v6528_v41, %v6525_v25  ;;  %v9769_v48 = vpop.f32.mrb[11].mxu1  ;;  %v10485_v25 = vld [vmem:[%s12921_s7 + $0xa98] sm:$0xff]   ;;  %v10487_v41 = vld [vmem:[%s12921_s7 + $0xae0] sm:$0xff]  }
 0xea9   : > { %7210 = vmatprep.mubr.bf16.mxu0 %v6589_v44 }
 0xeaa   : > { %7211 = vmatmul.mubr.bf16.vlgmr.msra.gmra.mrb[228].mxu0 %v6588_v23 }
 0xeab   : > { %9370 = vmatpush3.bf16.msra.mxu0 %v10445_v47 }
 0xeac   : > { %9371 = vmatprep.subr.bf16.mxu0 %v10446_v49  ;;  %v6533_v37 = vpop.f32.mrb[12].mxu1  ;;  %v10488_v49 = vld [vmem:[%s12921_s7 + $0xaa0] sm:$0xff]  }
 0xead   : > { %v9772_v38 = vpop.f32.mrb[13].mxu1 }
 0xeae   : > { %v6536_v39 = vpop.f32.mrb[14].mxu1  ;;  %v10490_v38 = vld [vmem:[%s12921_s7 + $0xae8] sm:$0xff]  }
 0xeaf   : > { %9372 = vmatpush3.bf16.msra.mxu0 %v10447_v32  ;;  %v6590_v55 = vpack.c.bf16 %v6536_v39, %v6533_v37  ;;  %v9773_v56 = vpop.f32.mrb[15].mxu1  ;;  %v10492_v32 = vld [vmem:[%s12921_s7 + $0xb20] sm:$0xff]   ;;  %v10491_v39 = vld [vmem:[%s12921_s7 + $0xaa8] sm:$0xff]  }
 0xeb0   : > { %9373 = vmatprep.subr.bf16.mxu0 %v10450_v35 }
 0xeb3   : > { %9374 = vmatpush3.bf16.msra.mxu0 %v10451_v53  ;;  %v10495_v53 = vld [vmem:[%s12921_s7 + $0xb28] sm:$0xff]  }
 0xeb4   : > { %9375 = vmatprep.subr.bf16.mxu0 %v10454_v57  ;;  %v6541_v60 = vpop.f32.mrb[16].mxu1 }
 0xeb5   : > { %v9776_v61 = vpop.f32.mrb[17].mxu1 }
 0xeb6   : > { %v6544_v62 = vpop.f32.mrb[18].mxu1 }
 0xeb7   : > { %9376 = vmatpush3.bf16.msra.mxu0 %v10455_v58  ;;  %v6591_v0 = vpack.c.bf16 %v6544_v62, %v6541_v60  ;;  %v9777_v1 = vpop.f32.mrb[19].mxu1  ;;  %v10498_v60 = vld [vmem:[%s12921_s7 + $0xb30] sm:$0xff]  }
 0xeb8   : > { %9377 = vmatprep.subr.bf16.mxu0 %v10458_v59  ;;  %v10494_v59 = vld [vmem:[%s12921_s7 + $0xab0] sm:$0xff]   ;;  %v10499_v1 = vld [vmem:[%s12921_s7 + $0xb38] sm:$0xff]  }
 0xeb9   : > { %7251 = vmatprep.mubr.bf16.mxu0 %v6591_v0  ;;  %v10497_v0 = vld [vmem:[%s12921_s7 + $0xab8] sm:$0xff]  }
 0xebb   : > { %9378 = vmatpush3.bf16.msra.mxu0 %v10459_v63  ;;  %v10496_v63 = vld [vmem:[%s12921_s7 + $0xaf8] sm:$0xff]  }
 0xebc   : > { %9379 = vmatprep.subr.bf16.mxu0 %v10462_v3  ;;  %v6549_v22 = vpop.f32.mrb[20].mxu1 }
 0xebd   : > { %v9780_v27 = vpop.f32.mrb[21].mxu1 }
 0xebe   : > { %v6552_v29 = vpop.f32.mrb[22].mxu1 }
 0xebf   : > { %9380 = vmatpush3.bf16.msra.mxu0 %v10463_v4  ;;  %v6592_v50 = vpack.c.bf16 %v6552_v29, %v6549_v22  ;;  %v9781_v30 = vpop.f32.mrb[23].mxu1 }
 0xec0   : > { %9381 = vmatprep.subr.bf16.mxu0 %v10466_v8 }
 0xec3   : > { %9382 = vmatpush3.bf16.msra.mxu0 %v10467_v40  ;;  %v6744_v40 = vsub.s32 7, %v10772_v42 }
 0xec4   : > { %9383 = vmatprep.subr.bf16.mxu0 %v10470_v51  ;;  %v6557_v54 = vpop.f32.mrb[24].mxu1 }
 0xec5   : > { %v9784_v33 = vpop.f32.mrb[25].mxu1 }
 0xec6   : > { %v6560_v34 = vpop.f32.mrb[26].mxu1 }
 0xec7   : > { %9384 = vmatpush3.bf16.msra.mxu0 %v10471_v46  ;;  %v6593_v10 = vpack.c.bf16 %v6560_v34, %v6557_v54  ;;  %v9785_v36 = vpop.f32.mrb[27].mxu1 }
 0xec8   : > { %9413 = vmatprep.subr.bf16.mxu0 %v10474_v52 }
 0xec9   : > { %7292 = vmatprep.mubr.bf16.mxu1 %v6593_v10 }
 0xeca   : > { %7252 = vmatmul.mubr.bf16.vlgmr.msra.gmra.mrb[232].mxu0 %v6590_v55  ;;  %7293 = vmatmul.mubr.bf16.vlgmr.msra.gmra.mrb[40].mxu1 %v6592_v50  ;;  %v10493_v55 = vld [vmem:[%s12921_s7 + $0xaf0] sm:$0xff]   ;;  %v6745_v50 = vrot.slane %v12606_v31, %v6744_v40 }
 0xecb   : > { %9414 = vmatpush3.bf16.msra.mxu0 %v10476_v9  ;;  %9799 = vmatpush3.bf16.msra.mxu1 %v10480_v11 }
 0xecc   : > { %9415 = vmatprep.subr.bf16.mxu0 %v10478_v12  ;;  %9800 = vmatprep.subr.bf16.mxu1 %v10590_v26  ;;  %v6565_v16 = vpop.f32.mrb[28].mxu1 }
 0xecd   : > { %v9788_v17 = vpop.f32.mrb[29].mxu1  ;;  %9814 = vmatprep.mubr.msk.bf16.mxu1 %vm10591_vm0, %v10590_v26 }
 0xece   : > { %v6568_v18 = vpop.f32.mrb[30].mxu1 }
 0xecf   : > { %9416 = vmatpush3.bf16.msra.mxu0 %v10479_v13  ;;  %9801 = vmatpush3.bf16.msra.mxu1 %v10483_v14  ;;  %v6594_v21 = vpack.c.bf16 %v6568_v18, %v6565_v16  ;;  %v9789_v23 = vpop.f32.mrb[31].mxu1 }
 0xed0   : > { %9417 = vmatprep.subr.bf16.mxu0 %v10481_v15  ;;  %9802 = vmatprep.subr.bf16.mxu1 %v10590_v26 }
 0xed3   : > { %9418 = vmatpush3.bf16.msra.mxu0 %v10482_v19  ;;  %9803 = vmatpush3.bf16.msra.mxu1 %v10486_v20 }
 0xed4   : > { %9419 = vmatprep.subr.bf16.mxu0 %v10484_v24  ;;  %9804 = vmatprep.subr.bf16.mxu1 %v10590_v26  ;;  %v6573_v44 = vpop.f32.mrb[32].mxu1 }
 0xed5   : > { %v9792_v47 = vpop.f32.mrb[33].mxu1 }
 0xed6   : > { %v6576_v48 = vpop.f32.mrb[34].mxu1 }
 0xed7   : > { %9420 = vmatpush3.bf16.msra.mxu0 %v10485_v25  ;;  %9805 = vmatpush3.bf16.msra.mxu1 %v10489_v28  ;;  %v6595_v35 = vpack.c.bf16 %v6576_v48, %v6573_v44  ;;  %v9793_v37 = vpop.f32.mrb[35].mxu1 }
 0xed8   : > { %9421 = vmatprep.subr.bf16.mxu0 %v10487_v41  ;;  %9806 = vmatprep.subr.bf16.mxu1 %v10590_v26 }
 0xed9   : > { %7333 = vmatprep.mubr.bf16.mxu0 %v6595_v35 }
 0xedb   : > { %9422 = vmatpush3.bf16.msra.mxu0 %v10488_v49  ;;  %9807 = vmatpush3.bf16.msra.mxu1 %v10492_v32 }
 0xedc   : > { %9423 = vmatprep.subr.bf16.mxu0 %v10490_v38  ;;  %9808 = vmatprep.subr.bf16.mxu1 %v10590_v26  ;;  %v6581_v56 = vpop.f32.mrb[36].mxu1 }
 0xedd   : > { %v9796_v57 = vpop.f32.mrb[37].mxu1 }
 0xede   : > { %v6584_v58 = vpop.f32.mrb[38].mxu1 }
 0xedf   : > { %9424 = vmatpush3.bf16.msra.mxu0 %v10491_v39  ;;  %9809 = vmatpush3.bf16.msra.mxu1 %v10495_v53  ;;  %v6596_v61 = vpack.c.bf16 %v6584_v58, %v6581_v56  ;;  %v9797_v62 = vpop.f32.mrb[39].mxu1 }
 0xee0   : > { %9425 = vmatprep.subr.bf16.mxu0 %v10493_v55  ;;  %9810 = vmatprep.subr.bf16.mxu1 %v10590_v26 }
 0xee3   : > { %9426 = vmatpush3.bf16.msra.mxu0 %v10494_v59  ;;  %9811 = vmatpush3.bf16.msra.mxu1 %v10498_v60 }
 0xee4   : > { %9427 = vmatprep.subr.bf16.mxu0 %v10496_v63  ;;  %9812 = vmatprep.subr.bf16.mxu1 %v10590_v26  ;;  %v339_v63 = vld [vmem:[%s12922_s8 + $0x8] sm:$0xff] }
 0xee7   : > { %9428 = vmatpush3.bf16.msra.mxu0 %v10497_v0  ;;  %9813 = vmatpush3.bf16.msra.mxu1 %v10499_v1  ;;  %v7413_v0 = vrot.slane %v339_v63, %v406_v45 }
 0xeea   : > { %7334 = vmatmul.mubr.bf16.vlgmr.msra.gmra.mrb[236].mxu0 %v6594_v21  ;;  %9815 = vmatmul.mubr.bf16.vlgmr.msra.gmra.mrb[44].mxu1 %v6596_v61 }
 0xf7d   : > { %v9363_v3 = vpop.f32.mrb[228].mxu0 }
 0xf7e   : > { %v9364_v4 = vpop.f32.mrb[229].mxu0 }
 0xf7f   : > { %v9365_v8 = vadd.f32 %v9364_v4, %v9363_v3  ;;  %v9366_v22 = vpop.f32.mrb[230].mxu0  ;;  %v7419_v3 = vrot.slane %v339_v63, %v2045_v43 }
 0xf80   : > { %v9367_v27 = vpop.f32.mrb[231].mxu0 }
 0xf81   : > { %v9368_v29 = vadd.f32 %v9367_v27, %v9366_v22  ;;  %v7213_v52 = vadd.f32 %v9365_v8, %v6745_v50 }
 0xf83   : > { %v7216_v36 = vadd.f32 %v9368_v29, %v6745_v50 }
 0xf9d   : > { %v9385_v30 = vpop.f32.mrb[232].mxu0  ;;  %v9407_v51 = vpop.f32.mrb[40].mxu1 }
 0xf9e   : > { %v9386_v46 = vpop.f32.mrb[233].mxu0  ;;  %v9408_v54 = vpop.f32.mrb[41].mxu1 }
 0xf9f   : > { %v9387_v26 = vadd.f32 %v9386_v46, %v9385_v30  ;;  %v9388_v33 = vpop.f32.mrb[234].mxu0  ;;  %v9409_v34 = vadd.f32 %v9408_v54, %v9407_v51  ;;  %v9410_v9 = vpop.f32.mrb[42].mxu1 }
 0xfa0   : > { %v9389_v10 = vpop.f32.mrb[235].mxu0  ;;  %v9411_v11 = vpop.f32.mrb[43].mxu1 }
 0xfa1   : > { %v7254_v12 = vadd.f32 %v9387_v26, %v7213_v52  ;;  %v9390_v13 = vadd.f32 %v9389_v10, %v9388_v33  ;;  %v9412_v14 = vadd.f32 %v9411_v11, %v9410_v9 }
 0xfa3   : > { %v7257_v15 = vadd.f32 %v9390_v13, %v7216_v36  ;;  %v7295_v16 = vadd.f32 %v9409_v34, %v7254_v12 }
 0xfa5   : > { %v7298_v17 = vadd.f32 %v9412_v14, %v7257_v15 }
 0xfbd   : > { %v9429_v18 = vpop.f32.mrb[236].mxu0  ;;  %v7376_v31 = vpop.f32.mrb[44].mxu1 }
 0xfbe   : > { %v9430_v19 = vpop.f32.mrb[237].mxu0  ;;  %v9816_v20 = vpop.f32.mrb[45].mxu1 }
 0xfbf   : > { %v9431_v21 = vadd.f32 %v9430_v19, %v9429_v18  ;;  %v9432_v23 = vpop.f32.mrb[238].mxu0  ;;  %v7379_v24 = vpop.f32.mrb[46].mxu1 }
 0xfc0   : > { %v9433_v25 = vpop.f32.mrb[239].mxu0  ;;  %v9817_v28 = vpop.f32.mrb[47].mxu1 }
 0xfc1   : > { %v9434_v41 = vadd.f32 %v9433_v25, %v9432_v23  ;;  %v7336_v44 = vadd.f32 %v9431_v21, %v7295_v16 }
 0xfc3   : > { %v7377_v47 = vadd.f32 %v7376_v31, %v7336_v44  ;;  %v7339_v48 = vadd.f32 %v9434_v41, %v7298_v17 }
 0xfc5   : > { %v7380_v49 = vadd.f32 %v7379_v24, %v7339_v48  ;;  %v7383_v32 = vadd.f32 %v7377_v47, %v5577_v6 }
 0xfc7   : > { %v7385_v35 = vmax.f32 %v7383_v32, 0.0  ;;  %v7384_v37 = vadd.f32 %v7380_v49, %v5578_v7 }
 0xfc9   : > { %7387 = vadd.xlane.f32.xlu0 %v7385_v35  ;;  %v7386_v38 = vmax.f32 %v7384_v37, 0.0 }
 0xfcd   : > { %7389 = vadd.xlane.f32.xlu0 %v7386_v38 }
0x1056   : > { %v7388_v39 = vpop.xlane.xlu0 %7387 }
0x1057   : > { %v7392_v53 = vmul.f32 0.0078125, %v7388_v39 }
0x1059   : > { %v7394_v55 = vsub.f32 %v7385_v35, %v7392_v53 }
0x105a   : > { %v7390_v56 = vpop.xlane.xlu0 %7389 }
0x105b   : > { %v7393_v57 = vmul.f32 0.0078125, %v7390_v56  ;;  %v7396_v58 = vmul.f32 %v7394_v55, %v7394_v55 }
0x105d   : > { %v7395_v59 = vsub.f32 %v7386_v38, %v7393_v57  ;;  %7398 = vadd.xlane.f32.xlu1 %v7396_v58 }
0x105f   : > { %v7397_v60 = vmul.f32 %v7395_v59, %v7395_v59 }
0x1061   : > { %7400 = vadd.xlane.f32.xlu1 %v7397_v60 }
0x10ea   : > { %v7399_v2 = vpop.xlane.xlu1 %7398 }
0x10eb   : > { %v7402_v6 = vmul.f32 0.0078125, %v7399_v2 }
0x10ed   : > { %v7404_v61 = vadd.f32 1e-05, %v7402_v6 }
0x10ee   : > { %v7401_v62 = vpop.xlane.xlu1 %7400 }
0x10ef   : > { %10500 = vrsqrt.f32 %v7404_v61  ;;  %v7403_v5 = vmul.f32 0.0078125, %v7401_v62 }
0x10f1   : > { %v7405_v7 = vadd.f32 1e-05, %v7403_v5 }
0x10f3   : > { %10502 = vrsqrt.f32 %v7405_v7 }
0x10f9   : > { %v10501_v1 = vpop.eup %10500 }
0x10fa   : > { %v7408_v4 = vmul.f32 %v10501_v1, %v7394_v55 }
0x10fc   : > { %v7414_v8 = vmul.f32 %v7413_v0, %v7408_v4 }
0x10fd   : > { %v10503_v22 = vpop.eup %10502 }
0x10fe   : > { %v7409_v27 = vmul.f32 %v10503_v22, %v7395_v59  ;;  %v7420_v29 = vadd.f32 %v7419_v3, %v7414_v8 }
0x1100   : > { %v7415_v40 = vmul.f32 %v7413_v0, %v7409_v27  ;;  %7422 = vst [vmem:[%s328_s28] sm:$0xff] %v7420_v29 }
0x1102   : > { %v7421_v42 = vadd.f32 %v7419_v3, %v7415_v40 }
0x1104   : > { %7423 = vst [vmem:[%s328_s28 + $0x8] sm:$0xff] %v7421_v42 }
0x1105   : > { %10538 = shalt.err (!%p10535_p3)
}
0x1106   : > { %s10539_s26 = scalar_lea.hbm %s12869_s21, 256  ;;  %s10543_s28 = scalar_lea.hbm %s12923_s9, 512 }
0x1107   : > { %p10540_p4 = scmp.ne.s32.totalorder %s12869_s21, %s10539_s26  ;;  %p10544_p9 = scmp.lt.u32.totalorder %s12869_s21, %s12923_s9 }
0x1108   : > { %p10545_p10 = scmp.lt.u32.totalorder %s10543_s28, %s10539_s26  ;;  %p10547_p12 = scmp.lt.u32.totalorder %s10539_s26, %s12869_s21 }
0x1109   : > { %p10541_p7 = pnand %p10540_p4, %p10683_p5 }
0x110a   : > { %p10546_p11 = por %p10545_p10, %p10544_p9 }
0x110b   : > { %p10542_p8 = pneg %p10541_p7 }
0x110c   : > { %p10548_p13 = por %p10547_p12, %p10546_p11 }
0x110e   : > { %p10549_p0 = pnand %p10548_p13, %p10542_p8 }
0x1110   : > { %10552 = shalt.err (!%p10549_p0)
}
0x1111   : > { %s10593_s24 = smov 128   ;;  %s10594_s13 = smov 8  }
0x1112   : > { %9826 = dma.vmem_to_hbm [thread:$0]  (%p10683_p5), %s12871_s29, 256, %s12869_s21, %s12873_s22, %s10593_s24, %s10593_s24, %s10594_s13  }
0x1113 PF: > { %p9832_p1 = scmp.ge.s32.totalorder %s10587_s12, 2  ;;  %s7453_s23 = sand.u32 1, %s10575_s30  }
0x1114   : > { %s7454_s25 = scalar_lea.sflag [#allocation3], %s7453_s23 }
0x1115   : > { %p9829_p2 = pnand %p9832_p1, %p10687_p6 }
0x1117   : > { %10570 = dma.done.wait (!%p9829_p2), %s7454_s25, 256  }
0x1118   : > { %10572 = vsyncadd (!%p9829_p2), %s7454_s25, 4294967040  ;;  %p19_p3 = scmp.ge.s32.totalorder %s10670_s15, 4   ;;  %s12926_s30 = smov %s10579_s10 }
0x1119   : > { %s12927_s10 = smov %s10583_s11  ;;  %s12928_s11 = smov %s10681_s18 }
0x111a   : > { %s12929_s12 = smov %s10670_s15  ;;  %21 = sbr.rel (!%p19_p3) target bundleno = 3 (0x3), region = 95 }
0x1121   :  { %7459 = vsyncpa [#allocation3], 1 }
0x1122   :  { %7461 = vsyncpa [#allocation3 + $0x1], 1 }

</bundles_post_ra>
